<compile_context>
chip_gen: v5e
topology: v5e:2x2
jax: 0.10.0
libtpu: 0.0.40
codegen_flags: <defaults>
</compile_context>

<pallas_src>
import functools

import jax
import jax.numpy as jnp
from jax.experimental import pallas as pl
from jax.experimental.pallas import tpu as pltpu

_MAX_ROW_TILE = 512                 # rows per tile for row-streamed kernels
_VMEM_LIMIT = 48 * 1024 * 1024      # fits v7x (64 MiB) and raises v5e/v6e default
_LN_EPS = 1e-8                      # layer_norm_eps of the PyTorch module


def _round_up(x, m):
    return ((x + m - 1) // m) * m


def _sublane(dtype):
    # 8 rows per sublane tile for 4-byte types, 16 for 2-byte (bf16/f16).
    return 16 if jnp.dtype(dtype).itemsize == 2 else 8


def _choose_row_tile(n, sub):
    if n <= _MAX_ROW_TILE:
        return n
    t = (_MAX_ROW_TILE // sub) * sub
    while t > sub and n % t != 0:
        t -= sub
    return t


def _ln(x32, g, b, eps):
    """LayerNorm in f32 on the last axis; g/b are (1, H)."""
    mu = jnp.mean(x32, axis=-1, keepdims=True)
    xc = x32 - mu
    var = jnp.mean(xc * xc, axis=-1, keepdims=True)
    return xc * jax.lax.rsqrt(var + eps) * g + b


# ----------------------------------------------------------------------------
# Row-tiled kernels (grid over N rows; weights resident in VMEM)
# ----------------------------------------------------------------------------

def _kv_proj_kernel(x_ref, wT_ref, o_ref):
    # encoder K/V projection: x @ [Wk | Wv]  (bias-free, lane-dense 2H output)
    o_ref[...] = jnp.dot(x_ref[...], wT_ref[...],
                         preferred_element_type=jnp.float32).astype(o_ref.dtype)


def _ffn_ln_kernel(x_ref, w1T_ref, b1_ref, w2T_ref, b2_ref, g_ref, beta_ref,
                   o_ref, *, eps):
    # o = LayerNorm(x + ReLU(x@W1 + b1)@W2 + b2)
    x = x_ref[...]
    h = jnp.dot(x, w1T_ref[...], preferred_element_type=jnp.float32) + b1_ref[...]
    h = jnp.maximum(h, 0.0).astype(x.dtype)
    ff = jnp.dot(h, w2T_ref[...], preferred_element_type=jnp.float32) + b2_ref[...]
    o_ref[...] = _ln(x.astype(jnp.float32) + ff, g_ref[...], beta_ref[...],
                     eps).astype(o_ref.dtype)


def _row_call(kernel, row_inputs, const_inputs, out_dim, out_dtype):
    """Tile `kernel` over the leading row dimension (no per-call padding)."""
    n = row_inputs[0].shape[0]
    sub = _sublane(row_inputs[0].dtype)
    assert n % sub == 0, (n, sub)
    tn = _choose_row_tile(n, sub)
    grid = (n // tn,)
    in_specs = (
        [pl.BlockSpec((tn, a.shape[1]), lambda i: (i, 0)) for a in row_inputs]
        + [pl.BlockSpec(c.shape, lambda i: (0, 0)) for c in const_inputs]
    )
    return pl.pallas_call(
        kernel,
        grid=grid,
        in_specs=in_specs,
        out_specs=pl.BlockSpec((tn, out_dim), lambda i: (i, 0)),
        out_shape=jax.ShapeDtypeStruct((n, out_dim), out_dtype),
        compiler_params=pltpu.CompilerParams(
            dimension_semantics=("parallel",),
            vmem_limit_bytes=_VMEM_LIMIT),
    )(*row_inputs, *const_inputs)


def kv_proj(x2, wkvT):
    return _row_call(_kv_proj_kernel, [x2], [wkvT], wkvT.shape[1], x2.dtype)


def ffn_ln(x2, w1T, b1, w2T, b2, g, beta):
    kern = functools.partial(_ffn_ln_kernel, eps=_LN_EPS)
    return _row_call(kern, [x2], [w1T, b1, w2T, b2, g, beta],
                     x2.shape[1], x2.dtype)


# ----------------------------------------------------------------------------
# Fused attention-block kernels (one grid step per batch, all heads inside)
# ----------------------------------------------------------------------------

def _sa_block_kernel(h_ref, qm_ref, km_ref, wqkvT_ref, woT_ref, bo_ref, g_ref,
                     beta_ref, o_ref, *, num_heads, eps):
    """LN(hidden + SelfAttn(hidden) @ Wo + bo) for one batch element."""
    s, hdim = h_ref.shape[1], h_ref.shape[2]
    hd = hdim // num_heads
    x = h_ref[0]                                                   # (S, H)

    # fused QKV projection: one (H, 3H) weight, (S, 3H) stays in VMEM
    qkv = jnp.dot(x, wqkvT_ref[...],
                  preferred_element_type=jnp.float32).astype(x.dtype)

    # additive mask = finfo.min * !(key_pad & query_pad & causal), shared by heads
    km = km_ref[0]                                                 # (1, S)
    qm = qm_ref[0]                                                 # (S, 1)
    rows = jax.lax.broadcasted_iota(jnp.int32, (s, s), 0)
    cols = jax.lax.broadcasted_iota(jnp.int32, (s, s), 1)
    allow = (km > 0.5) & (qm > 0.5) & (cols <= rows)               # (S, S)
    neg = jnp.float32(jnp.finfo(jnp.float32).min)
    bias = neg * (1.0 - allow.astype(jnp.float32))

    # all heads per grid step (unrolled at trace time; 2-D ops only)
    ctx_heads = []
    for hh in range(num_heads):
        q_h = qkv[:, hh * hd:(hh + 1) * hd]
        k_h = qkv[:, hdim + hh * hd:hdim + (hh + 1) * hd]
        v_h = qkv[:, 2 * hdim + hh * hd:2 * hdim + (hh + 1) * hd]
        score = jax.lax.dot_general(q_h, k_h, (((1,), (1,)), ((), ())),
                                    preferred_element_type=jnp.float32) + bias
        mx = jnp.max(score, axis=-1, keepdims=True)
        p = jnp.exp(score - mx)
        proba = p / jnp.sum(p, axis=-1, keepdims=True)
        ctx_heads.append(jnp.dot(proba.astype(v_h.dtype), v_h,
                                 preferred_element_type=jnp.float32))
    ctx = jnp.concatenate(ctx_heads, axis=-1).astype(x.dtype)      # (S, H)

    out = jnp.dot(ctx, woT_ref[...],
                  preferred_element_type=jnp.float32) + bo_ref[...]
    o_ref[0] = _ln(x.astype(jnp.float32) + out, g_ref[...], beta_ref[...],
                   eps).astype(o_ref.dtype)


def _ca_block_kernel(h_ref, kv_ref, km_ref, wqT_ref, woT_ref, bo_ref, g_ref,
                     beta_ref, o_ref, *, num_heads, eps):
    """LN(hidden + CrossAttn(hidden, enc_kv) @ Wo + bo) for one batch element."""
    sq, hdim = h_ref.shape[1], h_ref.shape[2]
    hd = hdim // num_heads
    x = h_ref[0]                                                   # (Sq, H)
    kv = kv_ref[0]                                                 # (Sk, 2H)

    q = jnp.dot(x, wqT_ref[...],
                preferred_element_type=jnp.float32).astype(x.dtype)

    # encoder key padding mask only (cross-attention has no query/causal mask)
    km = km_ref[0]                                                 # (1, Sk)
    neg = jnp.float32(jnp.finfo(jnp.float32).min)
    bias = neg * (1.0 - (km > 0.5).astype(jnp.float32))            # (1, Sk)

    ctx_heads = []
    for hh in range(num_heads):
        q_h = q[:, hh * hd:(hh + 1) * hd]
        k_h = kv[:, hh * hd:(hh + 1) * hd]
        v_h = kv[:, hdim + hh * hd:hdim + (hh + 1) * hd]
        score = jax.lax.dot_general(q_h, k_h, (((1,), (1,)), ((), ())),
                                    preferred_element_type=jnp.float32) + bias
        mx = jnp.max(score, axis=-1, keepdims=True)
        p = jnp.exp(score - mx)
        proba = p / jnp.sum(p, axis=-1, keepdims=True)
        ctx_heads.append(jnp.dot(proba.astype(v_h.dtype), v_h,
                                 preferred_element_type=jnp.float32))
    ctx = jnp.concatenate(ctx_heads, axis=-1).astype(x.dtype)      # (Sq, H)

    out = jnp.dot(ctx, woT_ref[...],
                  preferred_element_type=jnp.float32) + bo_ref[...]
    o_ref[0] = _ln(x.astype(jnp.float32) + out, g_ref[...], beta_ref[...],
                   eps).astype(o_ref.dtype)


def sa_block(hidden, qmask, kmask, wqkvT, woT, bo, g, beta, num_heads):
    B, S, H = hidden.shape
    kern = functools.partial(_sa_block_kernel, num_heads=num_heads, eps=_LN_EPS)
    return pl.pallas_call(
        kern,
        grid=(B,),
        in_specs=[
            pl.BlockSpec((1, S, H), lambda i: (i, 0, 0)),
            pl.BlockSpec((1, S, 1), lambda i: (i, 0, 0)),
            pl.BlockSpec((1, 1, S), lambda i: (i, 0, 0)),
            pl.BlockSpec(wqkvT.shape, lambda i: (0, 0)),
            pl.BlockSpec(woT.shape, lambda i: (0, 0)),
            pl.BlockSpec(bo.shape, lambda i: (0, 0)),
            pl.BlockSpec(g.shape, lambda i: (0, 0)),
            pl.BlockSpec(beta.shape, lambda i: (0, 0)),
        ],
        out_specs=pl.BlockSpec((1, S, H), lambda i: (i, 0, 0)),
        out_shape=jax.ShapeDtypeStruct((B, S, H), hidden.dtype),
        compiler_params=pltpu.CompilerParams(
            dimension_semantics=("parallel",),
            vmem_limit_bytes=_VMEM_LIMIT),
    )(hidden, qmask, kmask, wqkvT, woT, bo, g, beta)


def ca_block(hidden, kv, kmask, wqT, woT, bo, g, beta, num_heads):
    B, S, H = hidden.shape
    Sk = kv.shape[1]
    kern = functools.partial(_ca_block_kernel, num_heads=num_heads, eps=_LN_EPS)
    return pl.pallas_call(
        kern,
        grid=(B,),
        in_specs=[
            pl.BlockSpec((1, S, H), lambda i: (i, 0, 0)),
            pl.BlockSpec((1, Sk, kv.shape[2]), lambda i: (i, 0, 0)),
            pl.BlockSpec((1, 1, Sk), lambda i: (i, 0, 0)),
            pl.BlockSpec(wqT.shape, lambda i: (0, 0)),
            pl.BlockSpec(woT.shape, lambda i: (0, 0)),
            pl.BlockSpec(bo.shape, lambda i: (0, 0)),
            pl.BlockSpec(g.shape, lambda i: (0, 0)),
            pl.BlockSpec(beta.shape, lambda i: (0, 0)),
        ],
        out_specs=pl.BlockSpec((1, S, H), lambda i: (i, 0, 0)),
        out_shape=jax.ShapeDtypeStruct((B, S, H), hidden.dtype),
        compiler_params=pltpu.CompilerParams(
            dimension_semantics=("parallel",),
            vmem_limit_bytes=_VMEM_LIMIT),
    )(hidden, kv, kmask, wqT, woT, bo, g, beta)


# ----------------------------------------------------------------------------
# Decoder forward (composition; no transposes, one up-front pad)
# ----------------------------------------------------------------------------

@functools.partial(jax.jit, static_argnames=("num_heads",))
def decoder_forward(params, hidden, attn_mask, enc_hidden, enc_mask, num_heads):
    """Inference forward of Decoder; returns the final hidden_states."""
    dt = hidden.dtype
    sub = _sublane(dt)
    B, S, H = hidden.shape
    Se = enc_hidden.shape[1]

    attn_mask = attn_mask.astype(jnp.float32)
    enc_mask = enc_mask.astype(jnp.float32)

    # Pad sequence lengths ONCE to the sublane multiple (padded positions get
    # mask=0 so they never contaminate valid rows; they are sliced off at the end).
    S_p, Se_p = _round_up(S, sub), _round_up(Se, sub)
    if S_p != S:
        hidden = jnp.pad(hidden, ((0, 0), (0, S_p - S), (0, 0)))
        attn_mask = jnp.pad(attn_mask, ((0, 0), (0, S_p - S)))
    if Se_p != Se:
        enc_hidden = jnp.pad(enc_hidden, ((0, 0), (0, Se_p - Se), (0, 0)))
        enc_mask = jnp.pad(enc_mask, ((0, 0), (0, Se_p - Se)))

    qmask = attn_mask[:, :, None]          # (B, S_p, 1)   decoder query padding
    kmask = attn_mask[:, None, :]          # (B, 1, S_p)   decoder key padding
    ekmask = enc_mask[:, None, :]          # (B, 1, Se_p)  encoder key padding
    enc2 = enc_hidden.reshape(B * Se_p, enc_hidden.shape[-1])

    for lp in params["layers"]:
        # 1) self-attention + out-proj + residual + LayerNorm (fused)
        hidden = sa_block(hidden, qmask, kmask, lp["sa_wqkv"], lp["sa_wo"],
                          lp["sa_bo"], lp["ln_sa_g"], lp["ln_sa_b"], num_heads)

        # 2) cross-attention: encoder K/V projection (row-tiled, lane-dense 2H),
        #    then fused Q-proj + attention + out-proj + residual + LayerNorm.
        #    The reference module re-uses layer_norm_self_attention here.
        kv = kv_proj(enc2, lp["ca_wkv"]).reshape(B, Se_p, 2 * H)
        hidden = ca_block(hidden, kv, ekmask, lp["ca_wq"], lp["ca_wo"],
                          lp["ca_bo"], lp["ln_sa_g"], lp["ln_sa_b"], num_heads)

        # 3) feed-forward + residual + LayerNorm (fused, row-tiled)
        hidden = ffn_ln(hidden.reshape(B * S_p, H), lp["ff_w1"], lp["ff_b1"],
                        lp["ff_w2"], lp["ff_b2"], lp["ln_ff_g"],
                        lp["ln_ff_b"]).reshape(B, S_p, H)

    return hidden[:, :S] if S_p != S else hidden


# ----------------------------------------------------------------------------
# Parameters (weights stored pre-transposed (in, out); QKV / KV pre-concatenated)
# ----------------------------------------------------------------------------

def init_params(key, num_layers, hidden, enc_hidden, inter, dtype=jnp.float32):
    std = 0.05
    layers = []
    for _ in range(num_layers):
        key, *ks = jax.random.split(key, 16)

        def nrm(k, shape):
            return std * jax.random.normal(k, shape, dtype)

        layers.append({
            # self-attention: q/k/v bias-free (concatenated), output layer with bias
            "sa_wqkv": nrm(ks[0], (hidden, 3 * hidden)),
            "sa_wo":   nrm(ks[1], (hidden, hidden)),
            "sa_bo":   nrm(ks[2], (1, hidden)),
            "ln_sa_g": 1.0 + 0.1 * jax.random.normal(ks[3], (1, hidden), dtype),
            "ln_sa_b": 0.1 * jax.random.normal(ks[4], (1, hidden), dtype),
            # cross-attention: q / (k|v) bias-free, output layer with bias
            "ca_wq":   nrm(ks[5], (hidden, hidden)),
            "ca_wkv":  nrm(ks[6], (enc_hidden, 2 * hidden)),
            "ca_wo":   nrm(ks[7], (hidden, hidden)),
            "ca_bo":   nrm(ks[8], (1, hidden)),
            # feed-forward
            "ff_w1":   nrm(ks[9], (hidden, inter)),
            "ff_b1":   nrm(ks[10], (1, inter)),
            "ff_w2":   nrm(ks[11], (inter, hidden)),
            "ff_b2":   nrm(ks[12], (1, hidden)),
            "ln_ff_g": 1.0 + 0.1 * jax.random.normal(ks[13], (1, hidden), dtype),
            "ln_ff_b": 0.1 * jax.random.normal(ks[14], (1, hidden), dtype),
        })
    return {"layers": layers}


# ----------------------------------------------------------------------------
# Pure-JAX reference (mirrors the PyTorch module, eval mode)
# ----------------------------------------------------------------------------

def _reference_decoder(params, hidden, attn_mask, enc_hidden, enc_mask,
                       num_heads, eps=_LN_EPS):
    B, S, H = hidden.shape
    Se = enc_hidden.shape[1]
    hd = H // num_heads
    neg = jnp.finfo(jnp.float32).min

    def split(x, s):
        return x.reshape(B, s, num_heads, hd).transpose(0, 2, 1, 3)

    def merge(x, s):
        return x.transpose(0, 2, 1, 3).reshape(B, s, H)

    def ln(x, g, b):
        mu = jnp.mean(x, axis=-1, keepdims=True)
        xc = x - mu
        var = jnp.mean(xc * xc, axis=-1, keepdims=True)
        return xc * jax.lax.rsqrt(var + eps) * g.reshape(-1) + b.reshape(-1)

    def mha(q, k, v, mask4):
        score = jnp.einsum("bhqd,bhkd->bhqk", q, k)
        score = score + neg * (~mask4).astype(jnp.float32)
        proba = jax.nn.softmax(score, axis=-1)
        return jnp.einsum("bhqk,bhkd->bhqd", proba, v)

    causal = jnp.tril(jnp.ones((S, S), dtype=bool))
    sa_mask = (attn_mask[:, None, None, :] & attn_mask[:, None, :, None]
               & causal[None, None])
    ca_mask = enc_mask[:, None, None, :]

    for lp in params["layers"]:
        wq = lp["sa_wqkv"][:, :H]
        wk = lp["sa_wqkv"][:, H:2 * H]
        wv = lp["sa_wqkv"][:, 2 * H:]
        q, k, v = split(hidden @ wq, S), split(hidden @ wk, S), split(hidden @ wv, S)
        sa = merge(mha(q, k, v, sa_mask), S) @ lp["sa_wo"] + lp["sa_bo"].reshape(-1)
        hidden = ln(hidden + sa, lp["ln_sa_g"], lp["ln_sa_b"])

        wkc, wvc = lp["ca_wkv"][:, :H], lp["ca_wkv"][:, H:]
        q = split(hidden @ lp["ca_wq"], S)
        k, v = split(enc_hidden @ wkc, Se), split(enc_hidden @ wvc, Se)
        ca = merge(mha(q, k, v, ca_mask), S) @ lp["ca_wo"] + lp["ca_bo"].reshape(-1)
        hidden = ln(hidden + ca, lp["ln_sa_g"], lp["ln_sa_b"])    # LN re-use quirk

        ff = jnp.maximum(hidden @ lp["ff_w1"] + lp["ff_b1"].reshape(-1), 0.0)
        ffo = ff @ lp["ff_w2"] + lp["ff_b2"].reshape(-1)
        hidden = ln(hidden + ffo, lp["ln_ff_g"], lp["ln_ff_b"])

    return hidden


# ----------------------------------------------------------------------------
# Smoke test
# ----------------------------------------------------------------------------

if __name__ == "__main__":
    B, S, Se = 2, 16, 12                    # batch, decoder seq, encoder seq
    H, E, NH, I, L = 128, 64, 4, 256, 2     # hidden, enc hidden, heads, ffn, layers

    key = jax.random.PRNGKey(0)
    kp, kh, ke = jax.random.split(key, 3)
    params = init_params(kp, L, H, E, I)
    hidden = jax.random.normal(kh, (B, S, H), jnp.float32)
    enc_hidden = jax.random.normal(ke, (B, Se, E), jnp.float32)

    # padding masks: batch 0 fully valid, batch 1 has trailing padding
    dec_lengths = jnp.array([S, S - 5])
    enc_lengths = jnp.array([Se, Se - 3])
    attn_mask = jnp.arange(S)[None, :] < dec_lengths[:, None]      # (B, S) bool
    enc_mask = jnp.arange(Se)[None, :] < enc_lengths[:, None]      # (B, Se) bool

    # f32 run
    out = decoder_forward(params, hidden, attn_mask.astype(jnp.float32),
                          enc_hidden, enc_mask.astype(jnp.float32), NH)
    out = jax.block_until_ready(out)

    # reference at full f32 precision (scoped, not a global config change)
    with jax.default_matmul_precision("highest"):
        ref = _reference_decoder(params, hidden, attn_mask, enc_hidden,
                                 enc_mask, NH)
        ref = jax.block_until_ready(ref)

    assert out.shape == (B, S, H)
    assert bool(jnp.all(jnp.isfinite(out)))
    err = float(jnp.max(jnp.abs(out - ref)))
    assert err < 5e-2, err

    # bf16 run (same kernels; weights/activations bf16, f32 accumulation)
    params_bf = jax.tree_util.tree_map(lambda a: a.astype(jnp.bfloat16), params)
    out_bf = decoder_forward(params_bf, hidden.astype(jnp.bfloat16),
                             attn_mask.astype(jnp.float32),
                             enc_hidden.astype(jnp.bfloat16),
                             enc_mask.astype(jnp.float32), NH)
    out_bf = jax.block_until_ready(out_bf).astype(jnp.float32)
    assert bool(jnp.all(jnp.isfinite(out_bf)))
    err_bf = float(jnp.max(jnp.abs(out_bf - ref)))
    assert err_bf < 5e-1, err_bf

    print("KERNEL_OK")
</pallas_src>

<mosaic_0001>
module attributes {stable_mosaic.version = 11 : i64} {
  func.func @_sa_block_kernel(%arg0: i32, %arg1: memref<1x16x128xf32, #tpu.memory_space<vmem>>, %arg2: memref<1x16x1xf32, #tpu.memory_space<vmem>>, %arg3: memref<1x1x16xf32, #tpu.memory_space<vmem>>, %arg4: memref<128x384xf32, #tpu.memory_space<vmem>>, %arg5: memref<128x128xf32, #tpu.memory_space<vmem>>, %arg6: memref<1x128xf32, #tpu.memory_space<vmem>>, %arg7: memref<1x128xf32, #tpu.memory_space<vmem>>, %arg8: memref<1x128xf32, #tpu.memory_space<vmem>>, %arg9: memref<1x16x128xf32, #tpu.memory_space<vmem>>) attributes {dimension_semantics = [#tpu.dimension_semantics<parallel>], iteration_bounds = array<i64: 2>, scalar_prefetch = 0 : i64, scratch_operands = 0 : i64, tpu.core_type = #tpu.core_type<tc>, window_params = [{transform_indices = @transform_0, window_bounds = array<i64: 1, 16, 128>}, {transform_indices = @transform_1, window_bounds = array<i64: 1, 16, 1>}, {transform_indices = @transform_2, window_bounds = array<i64: 1, 1, 16>}, {pipeline_mode = #tpu.pipeline_mode<synchronous>, transform_indices = @transform_3, window_bounds = array<i64: 128, 384>}, {pipeline_mode = #tpu.pipeline_mode<synchronous>, transform_indices = @transform_4, window_bounds = array<i64: 128, 128>}, {pipeline_mode = #tpu.pipeline_mode<synchronous>, transform_indices = @transform_5, window_bounds = array<i64: 1, 128>}, {pipeline_mode = #tpu.pipeline_mode<synchronous>, transform_indices = @transform_6, window_bounds = array<i64: 1, 128>}, {pipeline_mode = #tpu.pipeline_mode<synchronous>, transform_indices = @transform_7, window_bounds = array<i64: 1, 128>}, {transform_indices = @transform_8, window_bounds = array<i64: 1, 16, 128>}]} {
    %c0 = arith.constant 0 : index
    %c0_0 = arith.constant 0 : index
    %c0_1 = arith.constant 0 : index
    %0 = vector.load %arg1[%c0, %c0_0, %c0_1] : memref<1x16x128xf32, #tpu.memory_space<vmem>>, vector<1x16x128xf32>
    %1 = vector.shape_cast %0 : vector<1x16x128xf32> to vector<16x128xf32>
    %c0_2 = arith.constant 0 : index
    %c0_3 = arith.constant 0 : index
    %2 = vector.load %arg4[%c0_2, %c0_3] : memref<128x384xf32, #tpu.memory_space<vmem>>, vector<128x384xf32>
    %cst = arith.constant dense<0.000000e+00> : vector<16x384xf32>
    %3 = tpu.matmul %1, %2, %cst {dimension_numbers = #tpu.dot_dimension_numbers<[1], [0], [0], [1], [0, 0, 1, 1], [], []>} : vector<16x128xf32>, vector<128x384xf32>, vector<16x384xf32> -> vector<16x384xf32>
    %c0_4 = arith.constant 0 : index
    %c0_5 = arith.constant 0 : index
    %c0_6 = arith.constant 0 : index
    %4 = vector.load %arg3[%c0_4, %c0_5, %c0_6] : memref<1x1x16xf32, #tpu.memory_space<vmem>>, vector<1x1x16xf32>
    %5 = vector.shape_cast %4 : vector<1x1x16xf32> to vector<1x16xf32>
    %c0_7 = arith.constant 0 : index
    %c0_8 = arith.constant 0 : index
    %c0_9 = arith.constant 0 : index
    %6 = vector.load %arg2[%c0_7, %c0_8, %c0_9] : memref<1x16x1xf32, #tpu.memory_space<vmem>>, vector<1x16x1xf32>
    %7 = vector.shape_cast %6 : vector<1x16x1xf32> to vector<16x1xf32>
    %8 = tpu.iota {dimensions = array<i32: 0>} : vector<16x16xi32>
    %9 = tpu.iota {dimensions = array<i32: 1>} : vector<16x16xi32>
    %cst_10 = arith.constant 5.000000e-01 : f32
    %10 = vector.broadcast %cst_10 : f32 to vector<1x16xf32>
    %11 = arith.cmpf ogt, %5, %10 : vector<1x16xf32>
    %cst_11 = arith.constant 5.000000e-01 : f32
    %12 = vector.broadcast %cst_11 : f32 to vector<16x1xf32>
    %13 = arith.cmpf ogt, %7, %12 : vector<16x1xf32>
    %14 = vector.broadcast %11 : vector<1x16xi1> to vector<16x16xi1>
    %15 = vector.broadcast %13 : vector<16x1xi1> to vector<16x16xi1>
    %16 = arith.andi %14, %15 : vector<16x16xi1>
    %17 = arith.cmpi sle, %9, %8 : vector<16x16xi32>
    %18 = arith.andi %16, %17 : vector<16x16xi1>
    %19 = arith.extui %18 : vector<16x16xi1> to vector<16x16xi32>
    %20 = arith.sitofp %19 : vector<16x16xi32> to vector<16x16xf32>
    %cst_12 = arith.constant 1.000000e+00 : f32
    %21 = vector.broadcast %cst_12 : f32 to vector<16x16xf32>
    %22 = arith.subf %21, %20 : vector<16x16xf32>
    %cst_13 = arith.constant -3.40282347E+38 : f32
    %23 = vector.broadcast %cst_13 : f32 to vector<16x16xf32>
    %24 = arith.mulf %23, %22 : vector<16x16xf32>
    %25 = vector.extract_strided_slice %3 {offsets = [0, 0], sizes = [16, 32], strides = [1, 1]} : vector<16x384xf32> to vector<16x32xf32>
    %26 = vector.extract_strided_slice %3 {offsets = [0, 128], sizes = [16, 32], strides = [1, 1]} : vector<16x384xf32> to vector<16x32xf32>
    %27 = vector.extract_strided_slice %3 {offsets = [0, 256], sizes = [16, 32], strides = [1, 1]} : vector<16x384xf32> to vector<16x32xf32>
    %cst_14 = arith.constant dense<0.000000e+00> : vector<16x16xf32>
    %28 = tpu.matmul %25, %26, %cst_14 {dimension_numbers = #tpu.dot_dimension_numbers<[1], [1], [0], [0], [0, 0, 1, 0], [], []>} : vector<16x32xf32>, vector<16x32xf32>, vector<16x16xf32> -> vector<16x16xf32>
    %29 = arith.addf %28, %24 : vector<16x16xf32>
    %cst_15 = arith.constant dense<0xFF800000> : vector<16xf32>
    %30 = vector.multi_reduction <maximumf>, %29, %cst_15 [1] : vector<16x16xf32> to vector<16xf32>
    %31 = vector.shape_cast %30 : vector<16xf32> to vector<16x1xf32>
    %32 = vector.broadcast %31 : vector<16x1xf32> to vector<16x16xf32>
    %33 = arith.subf %29, %32 : vector<16x16xf32>
    %34 = math.exp %33 : vector<16x16xf32>
    %cst_16 = arith.constant dense<0.000000e+00> : vector<16xf32>
    %35 = vector.multi_reduction <add>, %34, %cst_16 [1] : vector<16x16xf32> to vector<16xf32>
    %36 = vector.shape_cast %35 : vector<16xf32> to vector<16x1xf32>
    %37 = vector.broadcast %36 : vector<16x1xf32> to vector<16x16xf32>
    %38 = arith.divf %34, %37 : vector<16x16xf32>
    %cst_17 = arith.constant dense<0.000000e+00> : vector<16x32xf32>
    %39 = tpu.matmul %38, %27, %cst_17 {dimension_numbers = #tpu.dot_dimension_numbers<[1], [0], [0], [1], [0, 0, 1, 1], [], []>} : vector<16x16xf32>, vector<16x32xf32>, vector<16x32xf32> -> vector<16x32xf32>
    %40 = vector.extract_strided_slice %3 {offsets = [0, 32], sizes = [16, 32], strides = [1, 1]} : vector<16x384xf32> to vector<16x32xf32>
    %41 = vector.extract_strided_slice %3 {offsets = [0, 160], sizes = [16, 32], strides = [1, 1]} : vector<16x384xf32> to vector<16x32xf32>
    %42 = vector.extract_strided_slice %3 {offsets = [0, 288], sizes = [16, 32], strides = [1, 1]} : vector<16x384xf32> to vector<16x32xf32>
    %cst_18 = arith.constant dense<0.000000e+00> : vector<16x16xf32>
    %43 = tpu.matmul %40, %41, %cst_18 {dimension_numbers = #tpu.dot_dimension_numbers<[1], [1], [0], [0], [0, 0, 1, 0], [], []>} : vector<16x32xf32>, vector<16x32xf32>, vector<16x16xf32> -> vector<16x16xf32>
    %44 = arith.addf %43, %24 : vector<16x16xf32>
    %cst_19 = arith.constant dense<0xFF800000> : vector<16xf32>
    %45 = vector.multi_reduction <maximumf>, %44, %cst_19 [1] : vector<16x16xf32> to vector<16xf32>
    %46 = vector.shape_cast %45 : vector<16xf32> to vector<16x1xf32>
    %47 = vector.broadcast %46 : vector<16x1xf32> to vector<16x16xf32>
    %48 = arith.subf %44, %47 : vector<16x16xf32>
    %49 = math.exp %48 : vector<16x16xf32>
    %cst_20 = arith.constant dense<0.000000e+00> : vector<16xf32>
    %50 = vector.multi_reduction <add>, %49, %cst_20 [1] : vector<16x16xf32> to vector<16xf32>
    %51 = vector.shape_cast %50 : vector<16xf32> to vector<16x1xf32>
    %52 = vector.broadcast %51 : vector<16x1xf32> to vector<16x16xf32>
    %53 = arith.divf %49, %52 : vector<16x16xf32>
    %cst_21 = arith.constant dense<0.000000e+00> : vector<16x32xf32>
    %54 = tpu.matmul %53, %42, %cst_21 {dimension_numbers = #tpu.dot_dimension_numbers<[1], [0], [0], [1], [0, 0, 1, 1], [], []>} : vector<16x16xf32>, vector<16x32xf32>, vector<16x32xf32> -> vector<16x32xf32>
    %55 = vector.extract_strided_slice %3 {offsets = [0, 64], sizes = [16, 32], strides = [1, 1]} : vector<16x384xf32> to vector<16x32xf32>
    %56 = vector.extract_strided_slice %3 {offsets = [0, 192], sizes = [16, 32], strides = [1, 1]} : vector<16x384xf32> to vector<16x32xf32>
    %57 = vector.extract_strided_slice %3 {offsets = [0, 320], sizes = [16, 32], strides = [1, 1]} : vector<16x384xf32> to vector<16x32xf32>
    %cst_22 = arith.constant dense<0.000000e+00> : vector<16x16xf32>
    %58 = tpu.matmul %55, %56, %cst_22 {dimension_numbers = #tpu.dot_dimension_numbers<[1], [1], [0], [0], [0, 0, 1, 0], [], []>} : vector<16x32xf32>, vector<16x32xf32>, vector<16x16xf32> -> vector<16x16xf32>
    %59 = arith.addf %58, %24 : vector<16x16xf32>
    %cst_23 = arith.constant dense<0xFF800000> : vector<16xf32>
    %60 = vector.multi_reduction <maximumf>, %59, %cst_23 [1] : vector<16x16xf32> to vector<16xf32>
    %61 = vector.shape_cast %60 : vector<16xf32> to vector<16x1xf32>
    %62 = vector.broadcast %61 : vector<16x1xf32> to vector<16x16xf32>
    %63 = arith.subf %59, %62 : vector<16x16xf32>
    %64 = math.exp %63 : vector<16x16xf32>
    %cst_24 = arith.constant dense<0.000000e+00> : vector<16xf32>
    %65 = vector.multi_reduction <add>, %64, %cst_24 [1] : vector<16x16xf32> to vector<16xf32>
    %66 = vector.shape_cast %65 : vector<16xf32> to vector<16x1xf32>
    %67 = vector.broadcast %66 : vector<16x1xf32> to vector<16x16xf32>
    %68 = arith.divf %64, %67 : vector<16x16xf32>
    %cst_25 = arith.constant dense<0.000000e+00> : vector<16x32xf32>
    %69 = tpu.matmul %68, %57, %cst_25 {dimension_numbers = #tpu.dot_dimension_numbers<[1], [0], [0], [1], [0, 0, 1, 1], [], []>} : vector<16x16xf32>, vector<16x32xf32>, vector<16x32xf32> -> vector<16x32xf32>
    %70 = vector.extract_strided_slice %3 {offsets = [0, 96], sizes = [16, 32], strides = [1, 1]} : vector<16x384xf32> to vector<16x32xf32>
    %71 = vector.extract_strided_slice %3 {offsets = [0, 224], sizes = [16, 32], strides = [1, 1]} : vector<16x384xf32> to vector<16x32xf32>
    %72 = vector.extract_strided_slice %3 {offsets = [0, 352], sizes = [16, 32], strides = [1, 1]} : vector<16x384xf32> to vector<16x32xf32>
    %cst_26 = arith.constant dense<0.000000e+00> : vector<16x16xf32>
    %73 = tpu.matmul %70, %71, %cst_26 {dimension_numbers = #tpu.dot_dimension_numbers<[1], [1], [0], [0], [0, 0, 1, 0], [], []>} : vector<16x32xf32>, vector<16x32xf32>, vector<16x16xf32> -> vector<16x16xf32>
    %74 = arith.addf %73, %24 : vector<16x16xf32>
    %cst_27 = arith.constant dense<0xFF800000> : vector<16xf32>
    %75 = vector.multi_reduction <maximumf>, %74, %cst_27 [1] : vector<16x16xf32> to vector<16xf32>
    %76 = vector.shape_cast %75 : vector<16xf32> to vector<16x1xf32>
    %77 = vector.broadcast %76 : vector<16x1xf32> to vector<16x16xf32>
    %78 = arith.subf %74, %77 : vector<16x16xf32>
    %79 = math.exp %78 : vector<16x16xf32>
    %cst_28 = arith.constant dense<0.000000e+00> : vector<16xf32>
    %80 = vector.multi_reduction <add>, %79, %cst_28 [1] : vector<16x16xf32> to vector<16xf32>
    %81 = vector.shape_cast %80 : vector<16xf32> to vector<16x1xf32>
    %82 = vector.broadcast %81 : vector<16x1xf32> to vector<16x16xf32>
    %83 = arith.divf %79, %82 : vector<16x16xf32>
    %cst_29 = arith.constant dense<0.000000e+00> : vector<16x32xf32>
    %84 = tpu.matmul %83, %72, %cst_29 {dimension_numbers = #tpu.dot_dimension_numbers<[1], [0], [0], [1], [0, 0, 1, 1], [], []>} : vector<16x16xf32>, vector<16x32xf32>, vector<16x32xf32> -> vector<16x32xf32>
    %85 = tpu.concatenate %39, %54, %69, %84 in 1 : vector<16x32xf32>, vector<16x32xf32>, vector<16x32xf32>, vector<16x32xf32> -> vector<16x128xf32>
    %c0_30 = arith.constant 0 : index
    %c0_31 = arith.constant 0 : index
    %86 = vector.load %arg5[%c0_30, %c0_31] : memref<128x128xf32, #tpu.memory_space<vmem>>, vector<128x128xf32>
    %cst_32 = arith.constant dense<0.000000e+00> : vector<16x128xf32>
    %87 = tpu.matmul %85, %86, %cst_32 {dimension_numbers = #tpu.dot_dimension_numbers<[1], [0], [0], [1], [0, 0, 1, 1], [], []>} : vector<16x128xf32>, vector<128x128xf32>, vector<16x128xf32> -> vector<16x128xf32>
    %c0_33 = arith.constant 0 : index
    %c0_34 = arith.constant 0 : index
    %88 = vector.load %arg6[%c0_33, %c0_34] : memref<1x128xf32, #tpu.memory_space<vmem>>, vector<1x128xf32>
    %89 = vector.broadcast %88 : vector<1x128xf32> to vector<16x128xf32>
    %90 = arith.addf %87, %89 : vector<16x128xf32>
    %91 = arith.addf %1, %90 : vector<16x128xf32>
    %c0_35 = arith.constant 0 : index
    %c0_36 = arith.constant 0 : index
    %92 = vector.load %arg7[%c0_35, %c0_36] : memref<1x128xf32, #tpu.memory_space<vmem>>, vector<1x128xf32>
    %c0_37 = arith.constant 0 : index
    %c0_38 = arith.constant 0 : index
    %93 = vector.load %arg8[%c0_37, %c0_38] : memref<1x128xf32, #tpu.memory_space<vmem>>, vector<1x128xf32>
    %cst_39 = arith.constant dense<0.000000e+00> : vector<16xf32>
    %94 = vector.multi_reduction <add>, %91, %cst_39 [1] : vector<16x128xf32> to vector<16xf32>
    %95 = vector.shape_cast %94 : vector<16xf32> to vector<16x1xf32>
    %cst_40 = arith.constant 1.280000e+02 : f32
    %96 = vector.broadcast %cst_40 : f32 to vector<16x1xf32>
    %97 = arith.divf %95, %96 : vector<16x1xf32>
    %98 = vector.broadcast %97 : vector<16x1xf32> to vector<16x128xf32>
    %99 = arith.subf %91, %98 : vector<16x128xf32>
    %100 = arith.mulf %99, %99 : vector<16x128xf32>
    %cst_41 = arith.constant dense<0.000000e+00> : vector<16xf32>
    %101 = vector.multi_reduction <add>, %100, %cst_41 [1] : vector<16x128xf32> to vector<16xf32>
    %102 = vector.shape_cast %101 : vector<16xf32> to vector<16x1xf32>
    %cst_42 = arith.constant 1.280000e+02 : f32
    %103 = vector.broadcast %cst_42 : f32 to vector<16x1xf32>
    %104 = arith.divf %102, %103 : vector<16x1xf32>
    %cst_43 = arith.constant 9.99999993E-9 : f32
    %105 = vector.broadcast %cst_43 : f32 to vector<16x1xf32>
    %106 = arith.addf %104, %105 : vector<16x1xf32>
    %107 = math.rsqrt %106 : vector<16x1xf32>
    %108 = vector.broadcast %107 : vector<16x1xf32> to vector<16x128xf32>
    %109 = arith.mulf %99, %108 : vector<16x128xf32>
    %110 = vector.broadcast %92 : vector<1x128xf32> to vector<16x128xf32>
    %111 = arith.mulf %109, %110 : vector<16x128xf32>
    %112 = vector.broadcast %93 : vector<1x128xf32> to vector<16x128xf32>
    %113 = arith.addf %111, %112 : vector<16x128xf32>
    %c0_44 = arith.constant 0 : index
    %c0_45 = arith.constant 0 : index
    %c0_46 = arith.constant 0 : index
    %114 = vector.load %arg9[%c0_44, %c0_45, %c0_46] : memref<1x16x128xf32, #tpu.memory_space<vmem>>, vector<1x16x128xf32>
    %115 = vector.shape_cast %114 : vector<1x16x128xf32> to vector<16x128xf32>
    %116 = vector.shape_cast %113 : vector<16x128xf32> to vector<1x16x128xf32>
    tpu.vector_store %arg9[%c0_44, %c0_45, %c0_46], %116 {strides = array<i32>} : memref<1x16x128xf32, #tpu.memory_space<vmem>>, vector<1x16x128xf32>,
    return
  }
  func.func @transform_0(%arg0: i32) -> (i32, i32, i32) {
    %c0_i32 = arith.constant 0 : i32
    %c0_i32_0 = arith.constant 0 : i32
    %c0_i32_1 = arith.constant 0 : i32
    return %arg0, %c0_i32, %c0_i32_0 : i32, i32, i32
  }
  func.func @transform_1(%arg0: i32) -> (i32, i32, i32) {
    %c0_i32 = arith.constant 0 : i32
    %c0_i32_0 = arith.constant 0 : i32
    %c0_i32_1 = arith.constant 0 : i32
    return %arg0, %c0_i32, %c0_i32_0 : i32, i32, i32
  }
  func.func @transform_2(%arg0: i32) -> (i32, i32, i32) {
    %c0_i32 = arith.constant 0 : i32
    %c0_i32_0 = arith.constant 0 : i32
    %c0_i32_1 = arith.constant 0 : i32
    return %arg0, %c0_i32, %c0_i32_0 : i32, i32, i32
  }
  func.func @transform_3(%arg0: i32) -> (i32, i32) {
    %c0_i32 = arith.constant 0 : i32
    %c0_i32_0 = arith.constant 0 : i32
    %c0_i32_1 = arith.constant 0 : i32
    return %c0_i32, %c0_i32_0 : i32, i32
  }
  func.func @transform_4(%arg0: i32) -> (i32, i32) {
    %c0_i32 = arith.constant 0 : i32
    %c0_i32_0 = arith.constant 0 : i32
    %c0_i32_1 = arith.constant 0 : i32
    return %c0_i32, %c0_i32_0 : i32, i32
  }
  func.func @transform_5(%arg0: i32) -> (i32, i32) {
    %c0_i32 = arith.constant 0 : i32
    %c0_i32_0 = arith.constant 0 : i32
    %c0_i32_1 = arith.constant 0 : i32
    return %c0_i32, %c0_i32_0 : i32, i32
  }
  func.func @transform_6(%arg0: i32) -> (i32, i32) {
    %c0_i32 = arith.constant 0 : i32
    %c0_i32_0 = arith.constant 0 : i32
    %c0_i32_1 = arith.constant 0 : i32
    return %c0_i32, %c0_i32_0 : i32, i32
  }
  func.func @transform_7(%arg0: i32) -> (i32, i32) {
    %c0_i32 = arith.constant 0 : i32
    %c0_i32_0 = arith.constant 0 : i32
    %c0_i32_1 = arith.constant 0 : i32
    return %c0_i32, %c0_i32_0 : i32, i32
  }
  func.func @transform_8(%arg0: i32) -> (i32, i32, i32) {
    %c0_i32 = arith.constant 0 : i32
    %c0_i32_0 = arith.constant 0 : i32
    %c0_i32_1 = arith.constant 0 : i32
    return %arg0, %c0_i32, %c0_i32_0 : i32, i32, i32
  }
}

module attributes {stable_mosaic.version = 11 : i64} {
  func.func @_kv_proj_kernel(%arg0: i32, %arg1: memref<32x64xf32, #tpu.memory_space<vmem>>, %arg2: memref<64x256xf32, #tpu.memory_space<vmem>>, %arg3: memref<32x256xf32, #tpu.memory_space<vmem>>) attributes {dimension_semantics = [#tpu.dimension_semantics<parallel>], iteration_bounds = array<i64: 1>, scalar_prefetch = 0 : i64, scratch_operands = 0 : i64, tpu.core_type = #tpu.core_type<tc>, window_params = [{transform_indices = @transform_0, window_bounds = array<i64: 32, 64>}, {pipeline_mode = #tpu.pipeline_mode<synchronous>, transform_indices = @transform_1, window_bounds = array<i64: 64, 256>}, {transform_indices = @transform_2, window_bounds = array<i64: 32, 256>}]} {
    %c0 = arith.constant 0 : index
    %c0_0 = arith.constant 0 : index
    %0 = vector.load %arg1[%c0, %c0_0] : memref<32x64xf32, #tpu.memory_space<vmem>>, vector<32x64xf32>
    %c0_1 = arith.constant 0 : index
    %c0_2 = arith.constant 0 : index
    %1 = vector.load %arg2[%c0_1, %c0_2] : memref<64x256xf32, #tpu.memory_space<vmem>>, vector<64x256xf32>
    %cst = arith.constant dense<0.000000e+00> : vector<32x256xf32>
    %2 = tpu.matmul %0, %1, %cst {dimension_numbers = #tpu.dot_dimension_numbers<[1], [0], [0], [1], [0, 0, 1, 1], [], []>} : vector<32x64xf32>, vector<64x256xf32>, vector<32x256xf32> -> vector<32x256xf32>
    %c0_3 = arith.constant 0 : index
    %c0_4 = arith.constant 0 : index
    %3 = vector.load %arg3[%c0_3, %c0_4] : memref<32x256xf32, #tpu.memory_space<vmem>>, vector<32x256xf32>
    tpu.vector_store %arg3[%c0_3, %c0_4], %2 {strides = array<i32>} : memref<32x256xf32, #tpu.memory_space<vmem>>, vector<32x256xf32>,
    return
  }
  func.func @transform_0(%arg0: i32) -> (i32, i32) {
    %c0_i32 = arith.constant 0 : i32
    %c0_i32_0 = arith.constant 0 : i32
    return %arg0, %c0_i32 : i32, i32
  }
  func.func @transform_1(%arg0: i32) -> (i32, i32) {
    %c0_i32 = arith.constant 0 : i32
    %c0_i32_0 = arith.constant 0 : i32
    %c0_i32_1 = arith.constant 0 : i32
    return %c0_i32, %c0_i32_0 : i32, i32
  }
  func.func @transform_2(%arg0: i32) -> (i32, i32) {
    %c0_i32 = arith.constant 0 : i32
    %c0_i32_0 = arith.constant 0 : i32
    return %arg0, %c0_i32 : i32, i32
  }
}

module attributes {stable_mosaic.version = 11 : i64} {
  func.func @_ca_block_kernel(%arg0: i32, %arg1: memref<1x16x128xf32, #tpu.memory_space<vmem>>, %arg2: memref<1x16x256xf32, #tpu.memory_space<vmem>>, %arg3: memref<1x1x16xf32, #tpu.memory_space<vmem>>, %arg4: memref<128x128xf32, #tpu.memory_space<vmem>>, %arg5: memref<128x128xf32, #tpu.memory_space<vmem>>, %arg6: memref<1x128xf32, #tpu.memory_space<vmem>>, %arg7: memref<1x128xf32, #tpu.memory_space<vmem>>, %arg8: memref<1x128xf32, #tpu.memory_space<vmem>>, %arg9: memref<1x16x128xf32, #tpu.memory_space<vmem>>) attributes {dimension_semantics = [#tpu.dimension_semantics<parallel>], iteration_bounds = array<i64: 2>, scalar_prefetch = 0 : i64, scratch_operands = 0 : i64, tpu.core_type = #tpu.core_type<tc>, window_params = [{transform_indices = @transform_0, window_bounds = array<i64: 1, 16, 128>}, {transform_indices = @transform_1, window_bounds = array<i64: 1, 16, 256>}, {transform_indices = @transform_2, window_bounds = array<i64: 1, 1, 16>}, {pipeline_mode = #tpu.pipeline_mode<synchronous>, transform_indices = @transform_3, window_bounds = array<i64: 128, 128>}, {pipeline_mode = #tpu.pipeline_mode<synchronous>, transform_indices = @transform_4, window_bounds = array<i64: 128, 128>}, {pipeline_mode = #tpu.pipeline_mode<synchronous>, transform_indices = @transform_5, window_bounds = array<i64: 1, 128>}, {pipeline_mode = #tpu.pipeline_mode<synchronous>, transform_indices = @transform_6, window_bounds = array<i64: 1, 128>}, {pipeline_mode = #tpu.pipeline_mode<synchronous>, transform_indices = @transform_7, window_bounds = array<i64: 1, 128>}, {transform_indices = @transform_8, window_bounds = array<i64: 1, 16, 128>}]} {
    %c0 = arith.constant 0 : index
    %c0_0 = arith.constant 0 : index
    %c0_1 = arith.constant 0 : index
    %0 = vector.load %arg1[%c0, %c0_0, %c0_1] : memref<1x16x128xf32, #tpu.memory_space<vmem>>, vector<1x16x128xf32>
    %1 = vector.shape_cast %0 : vector<1x16x128xf32> to vector<16x128xf32>
    %c0_2 = arith.constant 0 : index
    %c0_3 = arith.constant 0 : index
    %c0_4 = arith.constant 0 : index
    %2 = vector.load %arg2[%c0_2, %c0_3, %c0_4] : memref<1x16x256xf32, #tpu.memory_space<vmem>>, vector<1x16x256xf32>
    %3 = vector.shape_cast %2 : vector<1x16x256xf32> to vector<16x256xf32>
    %c0_5 = arith.constant 0 : index
    %c0_6 = arith.constant 0 : index
    %4 = vector.load %arg4[%c0_5, %c0_6] : memref<128x128xf32, #tpu.memory_space<vmem>>, vector<128x128xf32>
    %cst = arith.constant dense<0.000000e+00> : vector<16x128xf32>
    %5 = tpu.matmul %1, %4, %cst {dimension_numbers = #tpu.dot_dimension_numbers<[1], [0], [0], [1], [0, 0, 1, 1], [], []>} : vector<16x128xf32>, vector<128x128xf32>, vector<16x128xf32> -> vector<16x128xf32>
    %c0_7 = arith.constant 0 : index
    %c0_8 = arith.constant 0 : index
    %c0_9 = arith.constant 0 : index
    %6 = vector.load %arg3[%c0_7, %c0_8, %c0_9] : memref<1x1x16xf32, #tpu.memory_space<vmem>>, vector<1x1x16xf32>
    %7 = vector.shape_cast %6 : vector<1x1x16xf32> to vector<1x16xf32>
    %cst_10 = arith.constant 5.000000e-01 : f32
    %8 = vector.broadcast %cst_10 : f32 to vector<1x16xf32>
    %9 = arith.cmpf ogt, %7, %8 : vector<1x16xf32>
    %10 = arith.extui %9 : vector<1x16xi1> to vector<1x16xi32>
    %11 = arith.sitofp %10 : vector<1x16xi32> to vector<1x16xf32>
    %cst_11 = arith.constant 1.000000e+00 : f32
    %12 = vector.broadcast %cst_11 : f32 to vector<1x16xf32>
    %13 = arith.subf %12, %11 : vector<1x16xf32>
    %cst_12 = arith.constant -3.40282347E+38 : f32
    %14 = vector.broadcast %cst_12 : f32 to vector<1x16xf32>
    %15 = arith.mulf %14, %13 : vector<1x16xf32>
    %16 = vector.extract_strided_slice %5 {offsets = [0, 0], sizes = [16, 32], strides = [1, 1]} : vector<16x128xf32> to vector<16x32xf32>
    %17 = vector.extract_strided_slice %3 {offsets = [0, 0], sizes = [16, 32], strides = [1, 1]} : vector<16x256xf32> to vector<16x32xf32>
    %18 = vector.extract_strided_slice %3 {offsets = [0, 128], sizes = [16, 32], strides = [1, 1]} : vector<16x256xf32> to vector<16x32xf32>
    %cst_13 = arith.constant dense<0.000000e+00> : vector<16x16xf32>
    %19 = tpu.matmul %16, %17, %cst_13 {dimension_numbers = #tpu.dot_dimension_numbers<[1], [1], [0], [0], [0, 0, 1, 0], [], []>} : vector<16x32xf32>, vector<16x32xf32>, vector<16x16xf32> -> vector<16x16xf32>
    %20 = vector.broadcast %15 : vector<1x16xf32> to vector<16x16xf32>
    %21 = arith.addf %19, %20 : vector<16x16xf32>
    %cst_14 = arith.constant dense<0xFF800000> : vector<16xf32>
    %22 = vector.multi_reduction <maximumf>, %21, %cst_14 [1] : vector<16x16xf32> to vector<16xf32>
    %23 = vector.shape_cast %22 : vector<16xf32> to vector<16x1xf32>
    %24 = vector.broadcast %23 : vector<16x1xf32> to vector<16x16xf32>
    %25 = arith.subf %21, %24 : vector<16x16xf32>
    %26 = math.exp %25 : vector<16x16xf32>
    %cst_15 = arith.constant dense<0.000000e+00> : vector<16xf32>
    %27 = vector.multi_reduction <add>, %26, %cst_15 [1] : vector<16x16xf32> to vector<16xf32>
    %28 = vector.shape_cast %27 : vector<16xf32> to vector<16x1xf32>
    %29 = vector.broadcast %28 : vector<16x1xf32> to vector<16x16xf32>
    %30 = arith.divf %26, %29 : vector<16x16xf32>
    %cst_16 = arith.constant dense<0.000000e+00> : vector<16x32xf32>
    %31 = tpu.matmul %30, %18, %cst_16 {dimension_numbers = #tpu.dot_dimension_numbers<[1], [0], [0], [1], [0, 0, 1, 1], [], []>} : vector<16x16xf32>, vector<16x32xf32>, vector<16x32xf32> -> vector<16x32xf32>
    %32 = vector.extract_strided_slice %5 {offsets = [0, 32], sizes = [16, 32], strides = [1, 1]} : vector<16x128xf32> to vector<16x32xf32>
    %33 = vector.extract_strided_slice %3 {offsets = [0, 32], sizes = [16, 32], strides = [1, 1]} : vector<16x256xf32> to vector<16x32xf32>
    %34 = vector.extract_strided_slice %3 {offsets = [0, 160], sizes = [16, 32], strides = [1, 1]} : vector<16x256xf32> to vector<16x32xf32>
    %cst_17 = arith.constant dense<0.000000e+00> : vector<16x16xf32>
    %35 = tpu.matmul %32, %33, %cst_17 {dimension_numbers = #tpu.dot_dimension_numbers<[1], [1], [0], [0], [0, 0, 1, 0], [], []>} : vector<16x32xf32>, vector<16x32xf32>, vector<16x16xf32> -> vector<16x16xf32>
    %36 = vector.broadcast %15 : vector<1x16xf32> to vector<16x16xf32>
    %37 = arith.addf %35, %36 : vector<16x16xf32>
    %cst_18 = arith.constant dense<0xFF800000> : vector<16xf32>
    %38 = vector.multi_reduction <maximumf>, %37, %cst_18 [1] : vector<16x16xf32> to vector<16xf32>
    %39 = vector.shape_cast %38 : vector<16xf32> to vector<16x1xf32>
    %40 = vector.broadcast %39 : vector<16x1xf32> to vector<16x16xf32>
    %41 = arith.subf %37, %40 : vector<16x16xf32>
    %42 = math.exp %41 : vector<16x16xf32>
    %cst_19 = arith.constant dense<0.000000e+00> : vector<16xf32>
    %43 = vector.multi_reduction <add>, %42, %cst_19 [1] : vector<16x16xf32> to vector<16xf32>
    %44 = vector.shape_cast %43 : vector<16xf32> to vector<16x1xf32>
    %45 = vector.broadcast %44 : vector<16x1xf32> to vector<16x16xf32>
    %46 = arith.divf %42, %45 : vector<16x16xf32>
    %cst_20 = arith.constant dense<0.000000e+00> : vector<16x32xf32>
    %47 = tpu.matmul %46, %34, %cst_20 {dimension_numbers = #tpu.dot_dimension_numbers<[1], [0], [0], [1], [0, 0, 1, 1], [], []>} : vector<16x16xf32>, vector<16x32xf32>, vector<16x32xf32> -> vector<16x32xf32>
    %48 = vector.extract_strided_slice %5 {offsets = [0, 64], sizes = [16, 32], strides = [1, 1]} : vector<16x128xf32> to vector<16x32xf32>
    %49 = vector.extract_strided_slice %3 {offsets = [0, 64], sizes = [16, 32], strides = [1, 1]} : vector<16x256xf32> to vector<16x32xf32>
    %50 = vector.extract_strided_slice %3 {offsets = [0, 192], sizes = [16, 32], strides = [1, 1]} : vector<16x256xf32> to vector<16x32xf32>
    %cst_21 = arith.constant dense<0.000000e+00> : vector<16x16xf32>
    %51 = tpu.matmul %48, %49, %cst_21 {dimension_numbers = #tpu.dot_dimension_numbers<[1], [1], [0], [0], [0, 0, 1, 0], [], []>} : vector<16x32xf32>, vector<16x32xf32>, vector<16x16xf32> -> vector<16x16xf32>
    %52 = vector.broadcast %15 : vector<1x16xf32> to vector<16x16xf32>
    %53 = arith.addf %51, %52 : vector<16x16xf32>
    %cst_22 = arith.constant dense<0xFF800000> : vector<16xf32>
    %54 = vector.multi_reduction <maximumf>, %53, %cst_22 [1] : vector<16x16xf32> to vector<16xf32>
    %55 = vector.shape_cast %54 : vector<16xf32> to vector<16x1xf32>
    %56 = vector.broadcast %55 : vector<16x1xf32> to vector<16x16xf32>
    %57 = arith.subf %53, %56 : vector<16x16xf32>
    %58 = math.exp %57 : vector<16x16xf32>
    %cst_23 = arith.constant dense<0.000000e+00> : vector<16xf32>
    %59 = vector.multi_reduction <add>, %58, %cst_23 [1] : vector<16x16xf32> to vector<16xf32>
    %60 = vector.shape_cast %59 : vector<16xf32> to vector<16x1xf32>
    %61 = vector.broadcast %60 : vector<16x1xf32> to vector<16x16xf32>
    %62 = arith.divf %58, %61 : vector<16x16xf32>
    %cst_24 = arith.constant dense<0.000000e+00> : vector<16x32xf32>
    %63 = tpu.matmul %62, %50, %cst_24 {dimension_numbers = #tpu.dot_dimension_numbers<[1], [0], [0], [1], [0, 0, 1, 1], [], []>} : vector<16x16xf32>, vector<16x32xf32>, vector<16x32xf32> -> vector<16x32xf32>
    %64 = vector.extract_strided_slice %5 {offsets = [0, 96], sizes = [16, 32], strides = [1, 1]} : vector<16x128xf32> to vector<16x32xf32>
    %65 = vector.extract_strided_slice %3 {offsets = [0, 96], sizes = [16, 32], strides = [1, 1]} : vector<16x256xf32> to vector<16x32xf32>
    %66 = vector.extract_strided_slice %3 {offsets = [0, 224], sizes = [16, 32], strides = [1, 1]} : vector<16x256xf32> to vector<16x32xf32>
    %cst_25 = arith.constant dense<0.000000e+00> : vector<16x16xf32>
    %67 = tpu.matmul %64, %65, %cst_25 {dimension_numbers = #tpu.dot_dimension_numbers<[1], [1], [0], [0], [0, 0, 1, 0], [], []>} : vector<16x32xf32>, vector<16x32xf32>, vector<16x16xf32> -> vector<16x16xf32>
    %68 = vector.broadcast %15 : vector<1x16xf32> to vector<16x16xf32>
    %69 = arith.addf %67, %68 : vector<16x16xf32>
    %cst_26 = arith.constant dense<0xFF800000> : vector<16xf32>
    %70 = vector.multi_reduction <maximumf>, %69, %cst_26 [1] : vector<16x16xf32> to vector<16xf32>
    %71 = vector.shape_cast %70 : vector<16xf32> to vector<16x1xf32>
    %72 = vector.broadcast %71 : vector<16x1xf32> to vector<16x16xf32>
    %73 = arith.subf %69, %72 : vector<16x16xf32>
    %74 = math.exp %73 : vector<16x16xf32>
    %cst_27 = arith.constant dense<0.000000e+00> : vector<16xf32>
    %75 = vector.multi_reduction <add>, %74, %cst_27 [1] : vector<16x16xf32> to vector<16xf32>
    %76 = vector.shape_cast %75 : vector<16xf32> to vector<16x1xf32>
    %77 = vector.broadcast %76 : vector<16x1xf32> to vector<16x16xf32>
    %78 = arith.divf %74, %77 : vector<16x16xf32>
    %cst_28 = arith.constant dense<0.000000e+00> : vector<16x32xf32>
    %79 = tpu.matmul %78, %66, %cst_28 {dimension_numbers = #tpu.dot_dimension_numbers<[1], [0], [0], [1], [0, 0, 1, 1], [], []>} : vector<16x16xf32>, vector<16x32xf32>, vector<16x32xf32> -> vector<16x32xf32>
    %80 = tpu.concatenate %31, %47, %63, %79 in 1 : vector<16x32xf32>, vector<16x32xf32>, vector<16x32xf32>, vector<16x32xf32> -> vector<16x128xf32>
    %c0_29 = arith.constant 0 : index
    %c0_30 = arith.constant 0 : index
    %81 = vector.load %arg5[%c0_29, %c0_30] : memref<128x128xf32, #tpu.memory_space<vmem>>, vector<128x128xf32>
    %cst_31 = arith.constant dense<0.000000e+00> : vector<16x128xf32>
    %82 = tpu.matmul %80, %81, %cst_31 {dimension_numbers = #tpu.dot_dimension_numbers<[1], [0], [0], [1], [0, 0, 1, 1], [], []>} : vector<16x128xf32>, vector<128x128xf32>, vector<16x128xf32> -> vector<16x128xf32>
    %c0_32 = arith.constant 0 : index
    %c0_33 = arith.constant 0 : index
    %83 = vector.load %arg6[%c0_32, %c0_33] : memref<1x128xf32, #tpu.memory_space<vmem>>, vector<1x128xf32>
    %84 = vector.broadcast %83 : vector<1x128xf32> to vector<16x128xf32>
    %85 = arith.addf %82, %84 : vector<16x128xf32>
    %86 = arith.addf %1, %85 : vector<16x128xf32>
    %c0_34 = arith.constant 0 : index
    %c0_35 = arith.constant 0 : index
    %87 = vector.load %arg7[%c0_34, %c0_35] : memref<1x128xf32, #tpu.memory_space<vmem>>, vector<1x128xf32>
    %c0_36 = arith.constant 0 : index
    %c0_37 = arith.constant 0 : index
    %88 = vector.load %arg8[%c0_36, %c0_37] : memref<1x128xf32, #tpu.memory_space<vmem>>, vector<1x128xf32>
    %cst_38 = arith.constant dense<0.000000e+00> : vector<16xf32>
    %89 = vector.multi_reduction <add>, %86, %cst_38 [1] : vector<16x128xf32> to vector<16xf32>
    %90 = vector.shape_cast %89 : vector<16xf32> to vector<16x1xf32>
    %cst_39 = arith.constant 1.280000e+02 : f32
    %91 = vector.broadcast %cst_39 : f32 to vector<16x1xf32>
    %92 = arith.divf %90, %91 : vector<16x1xf32>
    %93 = vector.broadcast %92 : vector<16x1xf32> to vector<16x128xf32>
    %94 = arith.subf %86, %93 : vector<16x128xf32>
    %95 = arith.mulf %94, %94 : vector<16x128xf32>
    %cst_40 = arith.constant dense<0.000000e+00> : vector<16xf32>
    %96 = vector.multi_reduction <add>, %95, %cst_40 [1] : vector<16x128xf32> to vector<16xf32>
    %97 = vector.shape_cast %96 : vector<16xf32> to vector<16x1xf32>
    %cst_41 = arith.constant 1.280000e+02 : f32
    %98 = vector.broadcast %cst_41 : f32 to vector<16x1xf32>
    %99 = arith.divf %97, %98 : vector<16x1xf32>
    %cst_42 = arith.constant 9.99999993E-9 : f32
    %100 = vector.broadcast %cst_42 : f32 to vector<16x1xf32>
    %101 = arith.addf %99, %100 : vector<16x1xf32>
    %102 = math.rsqrt %101 : vector<16x1xf32>
    %103 = vector.broadcast %102 : vector<16x1xf32> to vector<16x128xf32>
    %104 = arith.mulf %94, %103 : vector<16x128xf32>
    %105 = vector.broadcast %87 : vector<1x128xf32> to vector<16x128xf32>
    %106 = arith.mulf %104, %105 : vector<16x128xf32>
    %107 = vector.broadcast %88 : vector<1x128xf32> to vector<16x128xf32>
    %108 = arith.addf %106, %107 : vector<16x128xf32>
    %c0_43 = arith.constant 0 : index
    %c0_44 = arith.constant 0 : index
    %c0_45 = arith.constant 0 : index
    %109 = vector.load %arg9[%c0_43, %c0_44, %c0_45] : memref<1x16x128xf32, #tpu.memory_space<vmem>>, vector<1x16x128xf32>
    %110 = vector.shape_cast %109 : vector<1x16x128xf32> to vector<16x128xf32>
    %111 = vector.shape_cast %108 : vector<16x128xf32> to vector<1x16x128xf32>
    tpu.vector_store %arg9[%c0_43, %c0_44, %c0_45], %111 {strides = array<i32>} : memref<1x16x128xf32, #tpu.memory_space<vmem>>, vector<1x16x128xf32>,
    return
  }
  func.func @transform_0(%arg0: i32) -> (i32, i32, i32) {
    %c0_i32 = arith.constant 0 : i32
    %c0_i32_0 = arith.constant 0 : i32
    %c0_i32_1 = arith.constant 0 : i32
    return %arg0, %c0_i32, %c0_i32_0 : i32, i32, i32
  }
  func.func @transform_1(%arg0: i32) -> (i32, i32, i32) {
    %c0_i32 = arith.constant 0 : i32
    %c0_i32_0 = arith.constant 0 : i32
    %c0_i32_1 = arith.constant 0 : i32
    return %arg0, %c0_i32, %c0_i32_0 : i32, i32, i32
  }
  func.func @transform_2(%arg0: i32) -> (i32, i32, i32) {
    %c0_i32 = arith.constant 0 : i32
    %c0_i32_0 = arith.constant 0 : i32
    %c0_i32_1 = arith.constant 0 : i32
    return %arg0, %c0_i32, %c0_i32_0 : i32, i32, i32
  }
  func.func @transform_3(%arg0: i32) -> (i32, i32) {
    %c0_i32 = arith.constant 0 : i32
    %c0_i32_0 = arith.constant 0 : i32
    %c0_i32_1 = arith.constant 0 : i32
    return %c0_i32, %c0_i32_0 : i32, i32
  }
  func.func @transform_4(%arg0: i32) -> (i32, i32) {
    %c0_i32 = arith.constant 0 : i32
    %c0_i32_0 = arith.constant 0 : i32
    %c0_i32_1 = arith.constant 0 : i32
    return %c0_i32, %c0_i32_0 : i32, i32
  }
  func.func @transform_5(%arg0: i32) -> (i32, i32) {
    %c0_i32 = arith.constant 0 : i32
    %c0_i32_0 = arith.constant 0 : i32
    %c0_i32_1 = arith.constant 0 : i32
    return %c0_i32, %c0_i32_0 : i32, i32
  }
  func.func @transform_6(%arg0: i32) -> (i32, i32) {
    %c0_i32 = arith.constant 0 : i32
    %c0_i32_0 = arith.constant 0 : i32
    %c0_i32_1 = arith.constant 0 : i32
    return %c0_i32, %c0_i32_0 : i32, i32
  }
  func.func @transform_7(%arg0: i32) -> (i32, i32) {
    %c0_i32 = arith.constant 0 : i32
    %c0_i32_0 = arith.constant 0 : i32
    %c0_i32_1 = arith.constant 0 : i32
    return %c0_i32, %c0_i32_0 : i32, i32
  }
  func.func @transform_8(%arg0: i32) -> (i32, i32, i32) {
    %c0_i32 = arith.constant 0 : i32
    %c0_i32_0 = arith.constant 0 : i32
    %c0_i32_1 = arith.constant 0 : i32
    return %arg0, %c0_i32, %c0_i32_0 : i32, i32, i32
  }
}

module attributes {stable_mosaic.version = 11 : i64} {
  func.func @_ffn_ln_kernel(%arg0: i32, %arg1: memref<32x128xf32, #tpu.memory_space<vmem>>, %arg2: memref<128x256xf32, #tpu.memory_space<vmem>>, %arg3: memref<1x256xf32, #tpu.memory_space<vmem>>, %arg4: memref<256x128xf32, #tpu.memory_space<vmem>>, %arg5: memref<1x128xf32, #tpu.memory_space<vmem>>, %arg6: memref<1x128xf32, #tpu.memory_space<vmem>>, %arg7: memref<1x128xf32, #tpu.memory_space<vmem>>, %arg8: memref<32x128xf32, #tpu.memory_space<vmem>>) attributes {dimension_semantics = [#tpu.dimension_semantics<parallel>], iteration_bounds = array<i64: 1>, scalar_prefetch = 0 : i64, scratch_operands = 0 : i64, tpu.core_type = #tpu.core_type<tc>, window_params = [{transform_indices = @transform_0, window_bounds = array<i64: 32, 128>}, {pipeline_mode = #tpu.pipeline_mode<synchronous>, transform_indices = @transform_1, window_bounds = array<i64: 128, 256>}, {pipeline_mode = #tpu.pipeline_mode<synchronous>, transform_indices = @transform_2, window_bounds = array<i64: 1, 256>}, {pipeline_mode = #tpu.pipeline_mode<synchronous>, transform_indices = @transform_3, window_bounds = array<i64: 256, 128>}, {pipeline_mode = #tpu.pipeline_mode<synchronous>, transform_indices = @transform_4, window_bounds = array<i64: 1, 128>}, {pipeline_mode = #tpu.pipeline_mode<synchronous>, transform_indices = @transform_5, window_bounds = array<i64: 1, 128>}, {pipeline_mode = #tpu.pipeline_mode<synchronous>, transform_indices = @transform_6, window_bounds = array<i64: 1, 128>}, {transform_indices = @transform_7, window_bounds = array<i64: 32, 128>}]} {
    %c0 = arith.constant 0 : index
    %c0_0 = arith.constant 0 : index
    %0 = vector.load %arg1[%c0, %c0_0] : memref<32x128xf32, #tpu.memory_space<vmem>>, vector<32x128xf32>
    %c0_1 = arith.constant 0 : index
    %c0_2 = arith.constant 0 : index
    %1 = vector.load %arg2[%c0_1, %c0_2] : memref<128x256xf32, #tpu.memory_space<vmem>>, vector<128x256xf32>
    %cst = arith.constant dense<0.000000e+00> : vector<32x256xf32>
    %2 = tpu.matmul %0, %1, %cst {dimension_numbers = #tpu.dot_dimension_numbers<[1], [0], [0], [1], [0, 0, 1, 1], [], []>} : vector<32x128xf32>, vector<128x256xf32>, vector<32x256xf32> -> vector<32x256xf32>
    %c0_3 = arith.constant 0 : index
    %c0_4 = arith.constant 0 : index
    %3 = vector.load %arg3[%c0_3, %c0_4] : memref<1x256xf32, #tpu.memory_space<vmem>>, vector<1x256xf32>
    %4 = vector.broadcast %3 : vector<1x256xf32> to vector<32x256xf32>
    %5 = arith.addf %2, %4 : vector<32x256xf32>
    %cst_5 = arith.constant 0.000000e+00 : f32
    %6 = vector.broadcast %cst_5 : f32 to vector<32x256xf32>
    %7 = arith.maximumf %5, %6 : vector<32x256xf32>
    %c0_6 = arith.constant 0 : index
    %c0_7 = arith.constant 0 : index
    %8 = vector.load %arg4[%c0_6, %c0_7] : memref<256x128xf32, #tpu.memory_space<vmem>>, vector<256x128xf32>
    %cst_8 = arith.constant dense<0.000000e+00> : vector<32x128xf32>
    %9 = tpu.matmul %7, %8, %cst_8 {dimension_numbers = #tpu.dot_dimension_numbers<[1], [0], [0], [1], [0, 0, 1, 1], [], []>} : vector<32x256xf32>, vector<256x128xf32>, vector<32x128xf32> -> vector<32x128xf32>
    %c0_9 = arith.constant 0 : index
    %c0_10 = arith.constant 0 : index
    %10 = vector.load %arg5[%c0_9, %c0_10] : memref<1x128xf32, #tpu.memory_space<vmem>>, vector<1x128xf32>
    %11 = vector.broadcast %10 : vector<1x128xf32> to vector<32x128xf32>
    %12 = arith.addf %9, %11 : vector<32x128xf32>
    %13 = arith.addf %0, %12 : vector<32x128xf32>
    %c0_11 = arith.constant 0 : index
    %c0_12 = arith.constant 0 : index
    %14 = vector.load %arg6[%c0_11, %c0_12] : memref<1x128xf32, #tpu.memory_space<vmem>>, vector<1x128xf32>
    %c0_13 = arith.constant 0 : index
    %c0_14 = arith.constant 0 : index
    %15 = vector.load %arg7[%c0_13, %c0_14] : memref<1x128xf32, #tpu.memory_space<vmem>>, vector<1x128xf32>
    %cst_15 = arith.constant dense<0.000000e+00> : vector<32xf32>
    %16 = vector.multi_reduction <add>, %13, %cst_15 [1] : vector<32x128xf32> to vector<32xf32>
    %17 = vector.shape_cast %16 : vector<32xf32> to vector<32x1xf32>
    %cst_16 = arith.constant 1.280000e+02 : f32
    %18 = vector.broadcast %cst_16 : f32 to vector<32x1xf32>
    %19 = arith.divf %17, %18 : vector<32x1xf32>
    %20 = vector.broadcast %19 : vector<32x1xf32> to vector<32x128xf32>
    %21 = arith.subf %13, %20 : vector<32x128xf32>
    %22 = arith.mulf %21, %21 : vector<32x128xf32>
    %cst_17 = arith.constant dense<0.000000e+00> : vector<32xf32>
    %23 = vector.multi_reduction <add>, %22, %cst_17 [1] : vector<32x128xf32> to vector<32xf32>
    %24 = vector.shape_cast %23 : vector<32xf32> to vector<32x1xf32>
    %cst_18 = arith.constant 1.280000e+02 : f32
    %25 = vector.broadcast %cst_18 : f32 to vector<32x1xf32>
    %26 = arith.divf %24, %25 : vector<32x1xf32>
    %cst_19 = arith.constant 9.99999993E-9 : f32
    %27 = vector.broadcast %cst_19 : f32 to vector<32x1xf32>
    %28 = arith.addf %26, %27 : vector<32x1xf32>
    %29 = math.rsqrt %28 : vector<32x1xf32>
    %30 = vector.broadcast %29 : vector<32x1xf32> to vector<32x128xf32>
    %31 = arith.mulf %21, %30 : vector<32x128xf32>
    %32 = vector.broadcast %14 : vector<1x128xf32> to vector<32x128xf32>
    %33 = arith.mulf %31, %32 : vector<32x128xf32>
    %34 = vector.broadcast %15 : vector<1x128xf32> to vector<32x128xf32>
    %35 = arith.addf %33, %34 : vector<32x128xf32>
    %c0_20 = arith.constant 0 : index
    %c0_21 = arith.constant 0 : index
    %36 = vector.load %arg8[%c0_20, %c0_21] : memref<32x128xf32, #tpu.memory_space<vmem>>, vector<32x128xf32>
    tpu.vector_store %arg8[%c0_20, %c0_21], %35 {strides = array<i32>} : memref<32x128xf32, #tpu.memory_space<vmem>>, vector<32x128xf32>,
    return
  }
  func.func @transform_0(%arg0: i32) -> (i32, i32) {
    %c0_i32 = arith.constant 0 : i32
    %c0_i32_0 = arith.constant 0 : i32
    return %arg0, %c0_i32 : i32, i32
  }
  func.func @transform_1(%arg0: i32) -> (i32, i32) {
    %c0_i32 = arith.constant 0 : i32
    %c0_i32_0 = arith.constant 0 : i32
    %c0_i32_1 = arith.constant 0 : i32
    return %c0_i32, %c0_i32_0 : i32, i32
  }
  func.func @transform_2(%arg0: i32) -> (i32, i32) {
    %c0_i32 = arith.constant 0 : i32
    %c0_i32_0 = arith.constant 0 : i32
    %c0_i32_1 = arith.constant 0 : i32
    return %c0_i32, %c0_i32_0 : i32, i32
  }
  func.func @transform_3(%arg0: i32) -> (i32, i32) {
    %c0_i32 = arith.constant 0 : i32
    %c0_i32_0 = arith.constant 0 : i32
    %c0_i32_1 = arith.constant 0 : i32
    return %c0_i32, %c0_i32_0 : i32, i32
  }
  func.func @transform_4(%arg0: i32) -> (i32, i32) {
    %c0_i32 = arith.constant 0 : i32
    %c0_i32_0 = arith.constant 0 : i32
    %c0_i32_1 = arith.constant 0 : i32
    return %c0_i32, %c0_i32_0 : i32, i32
  }
  func.func @transform_5(%arg0: i32) -> (i32, i32) {
    %c0_i32 = arith.constant 0 : i32
    %c0_i32_0 = arith.constant 0 : i32
    %c0_i32_1 = arith.constant 0 : i32
    return %c0_i32, %c0_i32_0 : i32, i32
  }
  func.func @transform_6(%arg0: i32) -> (i32, i32) {
    %c0_i32 = arith.constant 0 : i32
    %c0_i32_0 = arith.constant 0 : i32
    %c0_i32_1 = arith.constant 0 : i32
    return %c0_i32, %c0_i32_0 : i32, i32
  }
  func.func @transform_7(%arg0: i32) -> (i32, i32) {
    %c0_i32 = arith.constant 0 : i32
    %c0_i32_0 = arith.constant 0 : i32
    return %arg0, %c0_i32 : i32, i32
  }
}

module attributes {stable_mosaic.version = 11 : i64} {
  func.func @_kv_proj_kernel(%arg0: i32, %arg1: memref<32x64xf32, #tpu.memory_space<vmem>>, %arg2: memref<64x256xf32, #tpu.memory_space<vmem>>, %arg3: memref<32x256xf32, #tpu.memory_space<vmem>>) attributes {dimension_semantics = [#tpu.dimension_semantics<parallel>], iteration_bounds = array<i64: 1>, scalar_prefetch = 0 : i64, scratch_operands = 0 : i64, tpu.core_type = #tpu.core_type<tc>, window_params = [{transform_indices = @transform_0, window_bounds = array<i64: 32, 64>}, {pipeline_mode = #tpu.pipeline_mode<synchronous>, transform_indices = @transform_1, window_bounds = array<i64: 64, 256>}, {transform_indices = @transform_2, window_bounds = array<i64: 32, 256>}]} {
    %c0 = arith.constant 0 : index
    %c0_0 = arith.constant 0 : index
    %0 = vector.load %arg1[%c0, %c0_0] : memref<32x64xf32, #tpu.memory_space<vmem>>, vector<32x64xf32>
    %c0_1 = arith.constant 0 : index
    %c0_2 = arith.constant 0 : index
    %1 = vector.load %arg2[%c0_1, %c0_2] : memref<64x256xf32, #tpu.memory_space<vmem>>, vector<64x256xf32>
    %cst = arith.constant dense<0.000000e+00> : vector<32x256xf32>
    %2 = tpu.matmul %0, %1, %cst {dimension_numbers = #tpu.dot_dimension_numbers<[1], [0], [0], [1], [0, 0, 1, 1], [], []>} : vector<32x64xf32>, vector<64x256xf32>, vector<32x256xf32> -> vector<32x256xf32>
    %c0_3 = arith.constant 0 : index
    %c0_4 = arith.constant 0 : index
    %3 = vector.load %arg3[%c0_3, %c0_4] : memref<32x256xf32, #tpu.memory_space<vmem>>, vector<32x256xf32>
    tpu.vector_store %arg3[%c0_3, %c0_4], %2 {strides = array<i32>} : memref<32x256xf32, #tpu.memory_space<vmem>>, vector<32x256xf32>,
    return
  }
  func.func @transform_0(%arg0: i32) -> (i32, i32) {
    %c0_i32 = arith.constant 0 : i32
    %c0_i32_0 = arith.constant 0 : i32
    return %arg0, %c0_i32 : i32, i32
  }
  func.func @transform_1(%arg0: i32) -> (i32, i32) {
    %c0_i32 = arith.constant 0 : i32
    %c0_i32_0 = arith.constant 0 : i32
    %c0_i32_1 = arith.constant 0 : i32
    return %c0_i32, %c0_i32_0 : i32, i32
  }
  func.func @transform_2(%arg0: i32) -> (i32, i32) {
    %c0_i32 = arith.constant 0 : i32
    %c0_i32_0 = arith.constant 0 : i32
    return %arg0, %c0_i32 : i32, i32
  }
}

module attributes {stable_mosaic.version = 11 : i64} {
  func.func @_sa_block_kernel(%arg0: i32, %arg1: memref<1x16x128xf32, #tpu.memory_space<vmem>>, %arg2: memref<1x16x1xf32, #tpu.memory_space<vmem>>, %arg3: memref<1x1x16xf32, #tpu.memory_space<vmem>>, %arg4: memref<128x384xf32, #tpu.memory_space<vmem>>, %arg5: memref<128x128xf32, #tpu.memory_space<vmem>>, %arg6: memref<1x128xf32, #tpu.memory_space<vmem>>, %arg7: memref<1x128xf32, #tpu.memory_space<vmem>>, %arg8: memref<1x128xf32, #tpu.memory_space<vmem>>, %arg9: memref<1x16x128xf32, #tpu.memory_space<vmem>>) attributes {dimension_semantics = [#tpu.dimension_semantics<parallel>], iteration_bounds = array<i64: 2>, scalar_prefetch = 0 : i64, scratch_operands = 0 : i64, tpu.core_type = #tpu.core_type<tc>, window_params = [{transform_indices = @transform_0, window_bounds = array<i64: 1, 16, 128>}, {transform_indices = @transform_1, window_bounds = array<i64: 1, 16, 1>}, {transform_indices = @transform_2, window_bounds = array<i64: 1, 1, 16>}, {pipeline_mode = #tpu.pipeline_mode<synchronous>, transform_indices = @transform_3, window_bounds = array<i64: 128, 384>}, {pipeline_mode = #tpu.pipeline_mode<synchronous>, transform_indices = @transform_4, window_bounds = array<i64: 128, 128>}, {pipeline_mode = #tpu.pipeline_mode<synchronous>, transform_indices = @transform_5, window_bounds = array<i64: 1, 128>}, {pipeline_mode = #tpu.pipeline_mode<synchronous>, transform_indices = @transform_6, window_bounds = array<i64: 1, 128>}, {pipeline_mode = #tpu.pipeline_mode<synchronous>, transform_indices = @transform_7, window_bounds = array<i64: 1, 128>}, {transform_indices = @transform_8, window_bounds = array<i64: 1, 16, 128>}]} {
    %c0 = arith.constant 0 : index
    %c0_0 = arith.constant 0 : index
    %c0_1 = arith.constant 0 : index
    %0 = vector.load %arg1[%c0, %c0_0, %c0_1] : memref<1x16x128xf32, #tpu.memory_space<vmem>>, vector<1x16x128xf32>
    %1 = vector.shape_cast %0 : vector<1x16x128xf32> to vector<16x128xf32>
    %c0_2 = arith.constant 0 : index
    %c0_3 = arith.constant 0 : index
    %2 = vector.load %arg4[%c0_2, %c0_3] : memref<128x384xf32, #tpu.memory_space<vmem>>, vector<128x384xf32>
    %cst = arith.constant dense<0.000000e+00> : vector<16x384xf32>
    %3 = tpu.matmul %1, %2, %cst {dimension_numbers = #tpu.dot_dimension_numbers<[1], [0], [0], [1], [0, 0, 1, 1], [], []>} : vector<16x128xf32>, vector<128x384xf32>, vector<16x384xf32> -> vector<16x384xf32>
    %c0_4 = arith.constant 0 : index
    %c0_5 = arith.constant 0 : index
    %c0_6 = arith.constant 0 : index
    %4 = vector.load %arg3[%c0_4, %c0_5, %c0_6] : memref<1x1x16xf32, #tpu.memory_space<vmem>>, vector<1x1x16xf32>
    %5 = vector.shape_cast %4 : vector<1x1x16xf32> to vector<1x16xf32>
    %c0_7 = arith.constant 0 : index
    %c0_8 = arith.constant 0 : index
    %c0_9 = arith.constant 0 : index
    %6 = vector.load %arg2[%c0_7, %c0_8, %c0_9] : memref<1x16x1xf32, #tpu.memory_space<vmem>>, vector<1x16x1xf32>
    %7 = vector.shape_cast %6 : vector<1x16x1xf32> to vector<16x1xf32>
    %8 = tpu.iota {dimensions = array<i32: 0>} : vector<16x16xi32>
    %9 = tpu.iota {dimensions = array<i32: 1>} : vector<16x16xi32>
    %cst_10 = arith.constant 5.000000e-01 : f32
    %10 = vector.broadcast %cst_10 : f32 to vector<1x16xf32>
    %11 = arith.cmpf ogt, %5, %10 : vector<1x16xf32>
    %cst_11 = arith.constant 5.000000e-01 : f32
    %12 = vector.broadcast %cst_11 : f32 to vector<16x1xf32>
    %13 = arith.cmpf ogt, %7, %12 : vector<16x1xf32>
    %14 = vector.broadcast %11 : vector<1x16xi1> to vector<16x16xi1>
    %15 = vector.broadcast %13 : vector<16x1xi1> to vector<16x16xi1>
    %16 = arith.andi %14, %15 : vector<16x16xi1>
    %17 = arith.cmpi sle, %9, %8 : vector<16x16xi32>
    %18 = arith.andi %16, %17 : vector<16x16xi1>
    %19 = arith.extui %18 : vector<16x16xi1> to vector<16x16xi32>
    %20 = arith.sitofp %19 : vector<16x16xi32> to vector<16x16xf32>
    %cst_12 = arith.constant 1.000000e+00 : f32
    %21 = vector.broadcast %cst_12 : f32 to vector<16x16xf32>
    %22 = arith.subf %21, %20 : vector<16x16xf32>
    %cst_13 = arith.constant -3.40282347E+38 : f32
    %23 = vector.broadcast %cst_13 : f32 to vector<16x16xf32>
    %24 = arith.mulf %23, %22 : vector<16x16xf32>
    %25 = vector.extract_strided_slice %3 {offsets = [0, 0], sizes = [16, 32], strides = [1, 1]} : vector<16x384xf32> to vector<16x32xf32>
    %26 = vector.extract_strided_slice %3 {offsets = [0, 128], sizes = [16, 32], strides = [1, 1]} : vector<16x384xf32> to vector<16x32xf32>
    %27 = vector.extract_strided_slice %3 {offsets = [0, 256], sizes = [16, 32], strides = [1, 1]} : vector<16x384xf32> to vector<16x32xf32>
    %cst_14 = arith.constant dense<0.000000e+00> : vector<16x16xf32>
    %28 = tpu.matmul %25, %26, %cst_14 {dimension_numbers = #tpu.dot_dimension_numbers<[1], [1], [0], [0], [0, 0, 1, 0], [], []>} : vector<16x32xf32>, vector<16x32xf32>, vector<16x16xf32> -> vector<16x16xf32>
    %29 = arith.addf %28, %24 : vector<16x16xf32>
    %cst_15 = arith.constant dense<0xFF800000> : vector<16xf32>
    %30 = vector.multi_reduction <maximumf>, %29, %cst_15 [1] : vector<16x16xf32> to vector<16xf32>
    %31 = vector.shape_cast %30 : vector<16xf32> to vector<16x1xf32>
    %32 = vector.broadcast %31 : vector<16x1xf32> to vector<16x16xf32>
    %33 = arith.subf %29, %32 : vector<16x16xf32>
    %34 = math.exp %33 : vector<16x16xf32>
    %cst_16 = arith.constant dense<0.000000e+00> : vector<16xf32>
    %35 = vector.multi_reduction <add>, %34, %cst_16 [1] : vector<16x16xf32> to vector<16xf32>
    %36 = vector.shape_cast %35 : vector<16xf32> to vector<16x1xf32>
    %37 = vector.broadcast %36 : vector<16x1xf32> to vector<16x16xf32>
    %38 = arith.divf %34, %37 : vector<16x16xf32>
    %cst_17 = arith.constant dense<0.000000e+00> : vector<16x32xf32>
    %39 = tpu.matmul %38, %27, %cst_17 {dimension_numbers = #tpu.dot_dimension_numbers<[1], [0], [0], [1], [0, 0, 1, 1], [], []>} : vector<16x16xf32>, vector<16x32xf32>, vector<16x32xf32> -> vector<16x32xf32>
    %40 = vector.extract_strided_slice %3 {offsets = [0, 32], sizes = [16, 32], strides = [1, 1]} : vector<16x384xf32> to vector<16x32xf32>
    %41 = vector.extract_strided_slice %3 {offsets = [0, 160], sizes = [16, 32], strides = [1, 1]} : vector<16x384xf32> to vector<16x32xf32>
    %42 = vector.extract_strided_slice %3 {offsets = [0, 288], sizes = [16, 32], strides = [1, 1]} : vector<16x384xf32> to vector<16x32xf32>
    %cst_18 = arith.constant dense<0.000000e+00> : vector<16x16xf32>
    %43 = tpu.matmul %40, %41, %cst_18 {dimension_numbers = #tpu.dot_dimension_numbers<[1], [1], [0], [0], [0, 0, 1, 0], [], []>} : vector<16x32xf32>, vector<16x32xf32>, vector<16x16xf32> -> vector<16x16xf32>
    %44 = arith.addf %43, %24 : vector<16x16xf32>
    %cst_19 = arith.constant dense<0xFF800000> : vector<16xf32>
    %45 = vector.multi_reduction <maximumf>, %44, %cst_19 [1] : vector<16x16xf32> to vector<16xf32>
    %46 = vector.shape_cast %45 : vector<16xf32> to vector<16x1xf32>
    %47 = vector.broadcast %46 : vector<16x1xf32> to vector<16x16xf32>
    %48 = arith.subf %44, %47 : vector<16x16xf32>
    %49 = math.exp %48 : vector<16x16xf32>
    %cst_20 = arith.constant dense<0.000000e+00> : vector<16xf32>
    %50 = vector.multi_reduction <add>, %49, %cst_20 [1] : vector<16x16xf32> to vector<16xf32>
    %51 = vector.shape_cast %50 : vector<16xf32> to vector<16x1xf32>
    %52 = vector.broadcast %51 : vector<16x1xf32> to vector<16x16xf32>
    %53 = arith.divf %49, %52 : vector<16x16xf32>
    %cst_21 = arith.constant dense<0.000000e+00> : vector<16x32xf32>
    %54 = tpu.matmul %53, %42, %cst_21 {dimension_numbers = #tpu.dot_dimension_numbers<[1], [0], [0], [1], [0, 0, 1, 1], [], []>} : vector<16x16xf32>, vector<16x32xf32>, vector<16x32xf32> -> vector<16x32xf32>
    %55 = vector.extract_strided_slice %3 {offsets = [0, 64], sizes = [16, 32], strides = [1, 1]} : vector<16x384xf32> to vector<16x32xf32>
    %56 = vector.extract_strided_slice %3 {offsets = [0, 192], sizes = [16, 32], strides = [1, 1]} : vector<16x384xf32> to vector<16x32xf32>
    %57 = vector.extract_strided_slice %3 {offsets = [0, 320], sizes = [16, 32], strides = [1, 1]} : vector<16x384xf32> to vector<16x32xf32>
    %cst_22 = arith.constant dense<0.000000e+00> : vector<16x16xf32>
    %58 = tpu.matmul %55, %56, %cst_22 {dimension_numbers = #tpu.dot_dimension_numbers<[1], [1], [0], [0], [0, 0, 1, 0], [], []>} : vector<16x32xf32>, vector<16x32xf32>, vector<16x16xf32> -> vector<16x16xf32>
    %59 = arith.addf %58, %24 : vector<16x16xf32>
    %cst_23 = arith.constant dense<0xFF800000> : vector<16xf32>
    %60 = vector.multi_reduction <maximumf>, %59, %cst_23 [1] : vector<16x16xf32> to vector<16xf32>
    %61 = vector.shape_cast %60 : vector<16xf32> to vector<16x1xf32>
    %62 = vector.broadcast %61 : vector<16x1xf32> to vector<16x16xf32>
    %63 = arith.subf %59, %62 : vector<16x16xf32>
    %64 = math.exp %63 : vector<16x16xf32>
    %cst_24 = arith.constant dense<0.000000e+00> : vector<16xf32>
    %65 = vector.multi_reduction <add>, %64, %cst_24 [1] : vector<16x16xf32> to vector<16xf32>
    %66 = vector.shape_cast %65 : vector<16xf32> to vector<16x1xf32>
    %67 = vector.broadcast %66 : vector<16x1xf32> to vector<16x16xf32>
    %68 = arith.divf %64, %67 : vector<16x16xf32>
    %cst_25 = arith.constant dense<0.000000e+00> : vector<16x32xf32>
    %69 = tpu.matmul %68, %57, %cst_25 {dimension_numbers = #tpu.dot_dimension_numbers<[1], [0], [0], [1], [0, 0, 1, 1], [], []>} : vector<16x16xf32>, vector<16x32xf32>, vector<16x32xf32> -> vector<16x32xf32>
    %70 = vector.extract_strided_slice %3 {offsets = [0, 96], sizes = [16, 32], strides = [1, 1]} : vector<16x384xf32> to vector<16x32xf32>
    %71 = vector.extract_strided_slice %3 {offsets = [0, 224], sizes = [16, 32], strides = [1, 1]} : vector<16x384xf32> to vector<16x32xf32>
    %72 = vector.extract_strided_slice %3 {offsets = [0, 352], sizes = [16, 32], strides = [1, 1]} : vector<16x384xf32> to vector<16x32xf32>
    %cst_26 = arith.constant dense<0.000000e+00> : vector<16x16xf32>
    %73 = tpu.matmul %70, %71, %cst_26 {dimension_numbers = #tpu.dot_dimension_numbers<[1], [1], [0], [0], [0, 0, 1, 0], [], []>} : vector<16x32xf32>, vector<16x32xf32>, vector<16x16xf32> -> vector<16x16xf32>
    %74 = arith.addf %73, %24 : vector<16x16xf32>
    %cst_27 = arith.constant dense<0xFF800000> : vector<16xf32>
    %75 = vector.multi_reduction <maximumf>, %74, %cst_27 [1] : vector<16x16xf32> to vector<16xf32>
    %76 = vector.shape_cast %75 : vector<16xf32> to vector<16x1xf32>
    %77 = vector.broadcast %76 : vector<16x1xf32> to vector<16x16xf32>
    %78 = arith.subf %74, %77 : vector<16x16xf32>
    %79 = math.exp %78 : vector<16x16xf32>
    %cst_28 = arith.constant dense<0.000000e+00> : vector<16xf32>
    %80 = vector.multi_reduction <add>, %79, %cst_28 [1] : vector<16x16xf32> to vector<16xf32>
    %81 = vector.shape_cast %80 : vector<16xf32> to vector<16x1xf32>
    %82 = vector.broadcast %81 : vector<16x1xf32> to vector<16x16xf32>
    %83 = arith.divf %79, %82 : vector<16x16xf32>
    %cst_29 = arith.constant dense<0.000000e+00> : vector<16x32xf32>
    %84 = tpu.matmul %83, %72, %cst_29 {dimension_numbers = #tpu.dot_dimension_numbers<[1], [0], [0], [1], [0, 0, 1, 1], [], []>} : vector<16x16xf32>, vector<16x32xf32>, vector<16x32xf32> -> vector<16x32xf32>
    %85 = tpu.concatenate %39, %54, %69, %84 in 1 : vector<16x32xf32>, vector<16x32xf32>, vector<16x32xf32>, vector<16x32xf32> -> vector<16x128xf32>
    %c0_30 = arith.constant 0 : index
    %c0_31 = arith.constant 0 : index
    %86 = vector.load %arg5[%c0_30, %c0_31] : memref<128x128xf32, #tpu.memory_space<vmem>>, vector<128x128xf32>
    %cst_32 = arith.constant dense<0.000000e+00> : vector<16x128xf32>
    %87 = tpu.matmul %85, %86, %cst_32 {dimension_numbers = #tpu.dot_dimension_numbers<[1], [0], [0], [1], [0, 0, 1, 1], [], []>} : vector<16x128xf32>, vector<128x128xf32>, vector<16x128xf32> -> vector<16x128xf32>
    %c0_33 = arith.constant 0 : index
    %c0_34 = arith.constant 0 : index
    %88 = vector.load %arg6[%c0_33, %c0_34] : memref<1x128xf32, #tpu.memory_space<vmem>>, vector<1x128xf32>
    %89 = vector.broadcast %88 : vector<1x128xf32> to vector<16x128xf32>
    %90 = arith.addf %87, %89 : vector<16x128xf32>
    %91 = arith.addf %1, %90 : vector<16x128xf32>
    %c0_35 = arith.constant 0 : index
    %c0_36 = arith.constant 0 : index
    %92 = vector.load %arg7[%c0_35, %c0_36] : memref<1x128xf32, #tpu.memory_space<vmem>>, vector<1x128xf32>
    %c0_37 = arith.constant 0 : index
    %c0_38 = arith.constant 0 : index
    %93 = vector.load %arg8[%c0_37, %c0_38] : memref<1x128xf32, #tpu.memory_space<vmem>>, vector<1x128xf32>
    %cst_39 = arith.constant dense<0.000000e+00> : vector<16xf32>
    %94 = vector.multi_reduction <add>, %91, %cst_39 [1] : vector<16x128xf32> to vector<16xf32>
    %95 = vector.shape_cast %94 : vector<16xf32> to vector<16x1xf32>
    %cst_40 = arith.constant 1.280000e+02 : f32
    %96 = vector.broadcast %cst_40 : f32 to vector<16x1xf32>
    %97 = arith.divf %95, %96 : vector<16x1xf32>
    %98 = vector.broadcast %97 : vector<16x1xf32> to vector<16x128xf32>
    %99 = arith.subf %91, %98 : vector<16x128xf32>
    %100 = arith.mulf %99, %99 : vector<16x128xf32>
    %cst_41 = arith.constant dense<0.000000e+00> : vector<16xf32>
    %101 = vector.multi_reduction <add>, %100, %cst_41 [1] : vector<16x128xf32> to vector<16xf32>
    %102 = vector.shape_cast %101 : vector<16xf32> to vector<16x1xf32>
    %cst_42 = arith.constant 1.280000e+02 : f32
    %103 = vector.broadcast %cst_42 : f32 to vector<16x1xf32>
    %104 = arith.divf %102, %103 : vector<16x1xf32>
    %cst_43 = arith.constant 9.99999993E-9 : f32
    %105 = vector.broadcast %cst_43 : f32 to vector<16x1xf32>
    %106 = arith.addf %104, %105 : vector<16x1xf32>
    %107 = math.rsqrt %106 : vector<16x1xf32>
    %108 = vector.broadcast %107 : vector<16x1xf32> to vector<16x128xf32>
    %109 = arith.mulf %99, %108 : vector<16x128xf32>
    %110 = vector.broadcast %92 : vector<1x128xf32> to vector<16x128xf32>
    %111 = arith.mulf %109, %110 : vector<16x128xf32>
    %112 = vector.broadcast %93 : vector<1x128xf32> to vector<16x128xf32>
    %113 = arith.addf %111, %112 : vector<16x128xf32>
    %c0_44 = arith.constant 0 : index
    %c0_45 = arith.constant 0 : index
    %c0_46 = arith.constant 0 : index
    %114 = vector.load %arg9[%c0_44, %c0_45, %c0_46] : memref<1x16x128xf32, #tpu.memory_space<vmem>>, vector<1x16x128xf32>
    %115 = vector.shape_cast %114 : vector<1x16x128xf32> to vector<16x128xf32>
    %116 = vector.shape_cast %113 : vector<16x128xf32> to vector<1x16x128xf32>
    tpu.vector_store %arg9[%c0_44, %c0_45, %c0_46], %116 {strides = array<i32>} : memref<1x16x128xf32, #tpu.memory_space<vmem>>, vector<1x16x128xf32>,
    return
  }
  func.func @transform_0(%arg0: i32) -> (i32, i32, i32) {
    %c0_i32 = arith.constant 0 : i32
    %c0_i32_0 = arith.constant 0 : i32
    %c0_i32_1 = arith.constant 0 : i32
    return %arg0, %c0_i32, %c0_i32_0 : i32, i32, i32
  }
  func.func @transform_1(%arg0: i32) -> (i32, i32, i32) {
    %c0_i32 = arith.constant 0 : i32
    %c0_i32_0 = arith.constant 0 : i32
    %c0_i32_1 = arith.constant 0 : i32
    return %arg0, %c0_i32, %c0_i32_0 : i32, i32, i32
  }
  func.func @transform_2(%arg0: i32) -> (i32, i32, i32) {
    %c0_i32 = arith.constant 0 : i32
    %c0_i32_0 = arith.constant 0 : i32
    %c0_i32_1 = arith.constant 0 : i32
    return %arg0, %c0_i32, %c0_i32_0 : i32, i32, i32
  }
  func.func @transform_3(%arg0: i32) -> (i32, i32) {
    %c0_i32 = arith.constant 0 : i32
    %c0_i32_0 = arith.constant 0 : i32
    %c0_i32_1 = arith.constant 0 : i32
    return %c0_i32, %c0_i32_0 : i32, i32
  }
  func.func @transform_4(%arg0: i32) -> (i32, i32) {
    %c0_i32 = arith.constant 0 : i32
    %c0_i32_0 = arith.constant 0 : i32
    %c0_i32_1 = arith.constant 0 : i32
    return %c0_i32, %c0_i32_0 : i32, i32
  }
  func.func @transform_5(%arg0: i32) -> (i32, i32) {
    %c0_i32 = arith.constant 0 : i32
    %c0_i32_0 = arith.constant 0 : i32
    %c0_i32_1 = arith.constant 0 : i32
    return %c0_i32, %c0_i32_0 : i32, i32
  }
  func.func @transform_6(%arg0: i32) -> (i32, i32) {
    %c0_i32 = arith.constant 0 : i32
    %c0_i32_0 = arith.constant 0 : i32
    %c0_i32_1 = arith.constant 0 : i32
    return %c0_i32, %c0_i32_0 : i32, i32
  }
  func.func @transform_7(%arg0: i32) -> (i32, i32) {
    %c0_i32 = arith.constant 0 : i32
    %c0_i32_0 = arith.constant 0 : i32
    %c0_i32_1 = arith.constant 0 : i32
    return %c0_i32, %c0_i32_0 : i32, i32
  }
  func.func @transform_8(%arg0: i32) -> (i32, i32, i32) {
    %c0_i32 = arith.constant 0 : i32
    %c0_i32_0 = arith.constant 0 : i32
    %c0_i32_1 = arith.constant 0 : i32
    return %arg0, %c0_i32, %c0_i32_0 : i32, i32, i32
  }
}

module attributes {stable_mosaic.version = 11 : i64} {
  func.func @_ffn_ln_kernel(%arg0: i32, %arg1: memref<32x128xf32, #tpu.memory_space<vmem>>, %arg2: memref<128x256xf32, #tpu.memory_space<vmem>>, %arg3: memref<1x256xf32, #tpu.memory_space<vmem>>, %arg4: memref<256x128xf32, #tpu.memory_space<vmem>>, %arg5: memref<1x128xf32, #tpu.memory_space<vmem>>, %arg6: memref<1x128xf32, #tpu.memory_space<vmem>>, %arg7: memref<1x128xf32, #tpu.memory_space<vmem>>, %arg8: memref<32x128xf32, #tpu.memory_space<vmem>>) attributes {dimension_semantics = [#tpu.dimension_semantics<parallel>], iteration_bounds = array<i64: 1>, scalar_prefetch = 0 : i64, scratch_operands = 0 : i64, tpu.core_type = #tpu.core_type<tc>, window_params = [{transform_indices = @transform_0, window_bounds = array<i64: 32, 128>}, {pipeline_mode = #tpu.pipeline_mode<synchronous>, transform_indices = @transform_1, window_bounds = array<i64: 128, 256>}, {pipeline_mode = #tpu.pipeline_mode<synchronous>, transform_indices = @transform_2, window_bounds = array<i64: 1, 256>}, {pipeline_mode = #tpu.pipeline_mode<synchronous>, transform_indices = @transform_3, window_bounds = array<i64: 256, 128>}, {pipeline_mode = #tpu.pipeline_mode<synchronous>, transform_indices = @transform_4, window_bounds = array<i64: 1, 128>}, {pipeline_mode = #tpu.pipeline_mode<synchronous>, transform_indices = @transform_5, window_bounds = array<i64: 1, 128>}, {pipeline_mode = #tpu.pipeline_mode<synchronous>, transform_indices = @transform_6, window_bounds = array<i64: 1, 128>}, {transform_indices = @transform_7, window_bounds = array<i64: 32, 128>}]} {
    %c0 = arith.constant 0 : index
    %c0_0 = arith.constant 0 : index
    %0 = vector.load %arg1[%c0, %c0_0] : memref<32x128xf32, #tpu.memory_space<vmem>>, vector<32x128xf32>
    %c0_1 = arith.constant 0 : index
    %c0_2 = arith.constant 0 : index
    %1 = vector.load %arg2[%c0_1, %c0_2] : memref<128x256xf32, #tpu.memory_space<vmem>>, vector<128x256xf32>
    %cst = arith.constant dense<0.000000e+00> : vector<32x256xf32>
    %2 = tpu.matmul %0, %1, %cst {dimension_numbers = #tpu.dot_dimension_numbers<[1], [0], [0], [1], [0, 0, 1, 1], [], []>} : vector<32x128xf32>, vector<128x256xf32>, vector<32x256xf32> -> vector<32x256xf32>
    %c0_3 = arith.constant 0 : index
    %c0_4 = arith.constant 0 : index
    %3 = vector.load %arg3[%c0_3, %c0_4] : memref<1x256xf32, #tpu.memory_space<vmem>>, vector<1x256xf32>
    %4 = vector.broadcast %3 : vector<1x256xf32> to vector<32x256xf32>
    %5 = arith.addf %2, %4 : vector<32x256xf32>
    %cst_5 = arith.constant 0.000000e+00 : f32
    %6 = vector.broadcast %cst_5 : f32 to vector<32x256xf32>
    %7 = arith.maximumf %5, %6 : vector<32x256xf32>
    %c0_6 = arith.constant 0 : index
    %c0_7 = arith.constant 0 : index
    %8 = vector.load %arg4[%c0_6, %c0_7] : memref<256x128xf32, #tpu.memory_space<vmem>>, vector<256x128xf32>
    %cst_8 = arith.constant dense<0.000000e+00> : vector<32x128xf32>
    %9 = tpu.matmul %7, %8, %cst_8 {dimension_numbers = #tpu.dot_dimension_numbers<[1], [0], [0], [1], [0, 0, 1, 1], [], []>} : vector<32x256xf32>, vector<256x128xf32>, vector<32x128xf32> -> vector<32x128xf32>
    %c0_9 = arith.constant 0 : index
    %c0_10 = arith.constant 0 : index
    %10 = vector.load %arg5[%c0_9, %c0_10] : memref<1x128xf32, #tpu.memory_space<vmem>>, vector<1x128xf32>
    %11 = vector.broadcast %10 : vector<1x128xf32> to vector<32x128xf32>
    %12 = arith.addf %9, %11 : vector<32x128xf32>
    %13 = arith.addf %0, %12 : vector<32x128xf32>
    %c0_11 = arith.constant 0 : index
    %c0_12 = arith.constant 0 : index
    %14 = vector.load %arg6[%c0_11, %c0_12] : memref<1x128xf32, #tpu.memory_space<vmem>>, vector<1x128xf32>
    %c0_13 = arith.constant 0 : index
    %c0_14 = arith.constant 0 : index
    %15 = vector.load %arg7[%c0_13, %c0_14] : memref<1x128xf32, #tpu.memory_space<vmem>>, vector<1x128xf32>
    %cst_15 = arith.constant dense<0.000000e+00> : vector<32xf32>
    %16 = vector.multi_reduction <add>, %13, %cst_15 [1] : vector<32x128xf32> to vector<32xf32>
    %17 = vector.shape_cast %16 : vector<32xf32> to vector<32x1xf32>
    %cst_16 = arith.constant 1.280000e+02 : f32
    %18 = vector.broadcast %cst_16 : f32 to vector<32x1xf32>
    %19 = arith.divf %17, %18 : vector<32x1xf32>
    %20 = vector.broadcast %19 : vector<32x1xf32> to vector<32x128xf32>
    %21 = arith.subf %13, %20 : vector<32x128xf32>
    %22 = arith.mulf %21, %21 : vector<32x128xf32>
    %cst_17 = arith.constant dense<0.000000e+00> : vector<32xf32>
    %23 = vector.multi_reduction <add>, %22, %cst_17 [1] : vector<32x128xf32> to vector<32xf32>
    %24 = vector.shape_cast %23 : vector<32xf32> to vector<32x1xf32>
    %cst_18 = arith.constant 1.280000e+02 : f32
    %25 = vector.broadcast %cst_18 : f32 to vector<32x1xf32>
    %26 = arith.divf %24, %25 : vector<32x1xf32>
    %cst_19 = arith.constant 9.99999993E-9 : f32
    %27 = vector.broadcast %cst_19 : f32 to vector<32x1xf32>
    %28 = arith.addf %26, %27 : vector<32x1xf32>
    %29 = math.rsqrt %28 : vector<32x1xf32>
    %30 = vector.broadcast %29 : vector<32x1xf32> to vector<32x128xf32>
    %31 = arith.mulf %21, %30 : vector<32x128xf32>
    %32 = vector.broadcast %14 : vector<1x128xf32> to vector<32x128xf32>
    %33 = arith.mulf %31, %32 : vector<32x128xf32>
    %34 = vector.broadcast %15 : vector<1x128xf32> to vector<32x128xf32>
    %35 = arith.addf %33, %34 : vector<32x128xf32>
    %c0_20 = arith.constant 0 : index
    %c0_21 = arith.constant 0 : index
    %36 = vector.load %arg8[%c0_20, %c0_21] : memref<32x128xf32, #tpu.memory_space<vmem>>, vector<32x128xf32>
    tpu.vector_store %arg8[%c0_20, %c0_21], %35 {strides = array<i32>} : memref<32x128xf32, #tpu.memory_space<vmem>>, vector<32x128xf32>,
    return
  }
  func.func @transform_0(%arg0: i32) -> (i32, i32) {
    %c0_i32 = arith.constant 0 : i32
    %c0_i32_0 = arith.constant 0 : i32
    return %arg0, %c0_i32 : i32, i32
  }
  func.func @transform_1(%arg0: i32) -> (i32, i32) {
    %c0_i32 = arith.constant 0 : i32
    %c0_i32_0 = arith.constant 0 : i32
    %c0_i32_1 = arith.constant 0 : i32
    return %c0_i32, %c0_i32_0 : i32, i32
  }
  func.func @transform_2(%arg0: i32) -> (i32, i32) {
    %c0_i32 = arith.constant 0 : i32
    %c0_i32_0 = arith.constant 0 : i32
    %c0_i32_1 = arith.constant 0 : i32
    return %c0_i32, %c0_i32_0 : i32, i32
  }
  func.func @transform_3(%arg0: i32) -> (i32, i32) {
    %c0_i32 = arith.constant 0 : i32
    %c0_i32_0 = arith.constant 0 : i32
    %c0_i32_1 = arith.constant 0 : i32
    return %c0_i32, %c0_i32_0 : i32, i32
  }
  func.func @transform_4(%arg0: i32) -> (i32, i32) {
    %c0_i32 = arith.constant 0 : i32
    %c0_i32_0 = arith.constant 0 : i32
    %c0_i32_1 = arith.constant 0 : i32
    return %c0_i32, %c0_i32_0 : i32, i32
  }
  func.func @transform_5(%arg0: i32) -> (i32, i32) {
    %c0_i32 = arith.constant 0 : i32
    %c0_i32_0 = arith.constant 0 : i32
    %c0_i32_1 = arith.constant 0 : i32
    return %c0_i32, %c0_i32_0 : i32, i32
  }
  func.func @transform_6(%arg0: i32) -> (i32, i32) {
    %c0_i32 = arith.constant 0 : i32
    %c0_i32_0 = arith.constant 0 : i32
    %c0_i32_1 = arith.constant 0 : i32
    return %c0_i32, %c0_i32_0 : i32, i32
  }
  func.func @transform_7(%arg0: i32) -> (i32, i32) {
    %c0_i32 = arith.constant 0 : i32
    %c0_i32_0 = arith.constant 0 : i32
    return %arg0, %c0_i32 : i32, i32
  }
}

</mosaic_0001>

<bundles_post_ra>
// kernel: decoder_forward.9
= control target key start
LH: loop header
LB: loop body
LE: loop exit
PB: predicated region body
PF: predicated region fallthrough
CT: control target
= control target key end

     0   :  { %vm31_vm0 = vcmask 523264   ;;  %s245_s1 = inlined_call_operand.vmem [shape: f32[64,256], index: 1, kind: input, shape index: {}]   ;;  %s246_s0 = inlined_call_operand.vmem [shape: f32[32,64], index: 0, kind: input, shape index: {}]   ;;  %s247_s2 = inlined_call_operand.vmem [shape: f32[32,256], index: 2, kind: output, shape index: {}]  }
   0x1   :  { %v29_v0 = vld [vmem:[%s245_s1 + $0x70] sm:$0xff]  ;;  %v30_v1 = vld [vmem:[%s245_s1 + $0x78] sm:$0xff]  ;;  %v27_v2 = vld [vmem:[%s245_s1 + $0x60] sm:$0xff] }
   0x2   :  { %122 = vmatpush.msra.mxu2 %v29_v0  ;;  %130 = vmatpush.msra.mxu3 %v30_v1  ;;  %v28_v3 = vld [vmem:[%s245_s1 + $0x68] sm:$0xff]  ;;  %v25_v4 = vld [vmem:[%s245_s1 + $0x50] sm:$0xff]  ;;  %v26_v5 = vld [vmem:[%s245_s1 + $0x58] sm:$0xff] }
   0x3   :  { %52 = vmatpush.msra.mxu0 %v29_v0  ;;  %81 = vmatpush.msra.mxu1 %v30_v1  ;;  %v23_v6 = vld [vmem:[%s245_s1 + $0x40] sm:$0xff]  ;;  %v24_v7 = vld [vmem:[%s245_s1 + $0x48] sm:$0xff]  ;;  %v21_v8 = vld [vmem:[%s245_s1 + $0x30] sm:$0xff] }
   0x4   :  { %123 = vmatpush.msra.mxu2 %v27_v2  ;;  %131 = vmatpush.msra.mxu3 %v28_v3  ;;  %v22_v9 = vld [vmem:[%s245_s1 + $0x38] sm:$0xff]  ;;  %v19_v10 = vld [vmem:[%s245_s1 + $0x20] sm:$0xff]  ;;  %v20_v11 = vld [vmem:[%s245_s1 + $0x28] sm:$0xff] }
   0x5   :  { %53 = vmatpush.msra.mxu0 %v27_v2  ;;  %82 = vmatpush.msra.mxu1 %v28_v3  ;;  %v17_v12 = vld [vmem:[%s245_s1 + $0x10] sm:$0xff]  ;;  %v18_v13 = vld [vmem:[%s245_s1 + $0x18] sm:$0xff]  ;;  %v15_v14 = vld [vmem:[%s245_s1] sm:$0xff] }
   0x6   :  { %124 = vmatpush.msra.mxu2 %v25_v4  ;;  %132 = vmatpush.msra.mxu3 %v26_v5  ;;  %v16_v15 = vld [vmem:[%s245_s1 + $0x8] sm:$0xff]  ;;  %v13_v16 = vld [vmem:[%s246_s0 + $0x10] sm:$0xff]  ;;  %v11_v17 = vld [vmem:[%s246_s0] sm:$0xff] }
   0x7   :  { %54 = vmatpush.msra.mxu0 %v25_v4  ;;  %83 = vmatpush.msra.mxu1 %v26_v5  ;;  %v14_v18 = vld [vmem:[%s246_s0 + $0x18] sm:$0xff]  ;;  %v12_v19 = vld [vmem:[%s246_s0 + $0x8] sm:$0xff] }
   0x8   :  { %125 = vmatpush.msra.mxu2 %v23_v6  ;;  %133 = vmatpush.msra.mxu3 %v24_v7 }
   0x9   :  { %55 = vmatpush.msra.mxu0 %v23_v6  ;;  %84 = vmatpush.msra.mxu1 %v24_v7 }
   0xa   :  { %126 = vmatpush.msra.mxu2 %v21_v8  ;;  %134 = vmatpush.msra.mxu3 %v22_v9 }
   0xb   :  { %56 = vmatpush.msra.mxu0 %v21_v8  ;;  %85 = vmatpush.msra.mxu1 %v22_v9 }
   0xc   :  { %127 = vmatpush.msra.mxu2 %v19_v10  ;;  %135 = vmatpush.msra.mxu3 %v20_v11 }
   0xd   :  { %57 = vmatpush.msra.mxu0 %v19_v10  ;;  %86 = vmatpush.msra.mxu1 %v20_v11 }
   0xe   :  { %128 = vmatpush.msra.mxu2 %v17_v12  ;;  %136 = vmatpush.msra.mxu3 %v18_v13 }
   0xf   :  { %58 = vmatpush.msra.mxu0 %v17_v12  ;;  %87 = vmatpush.msra.mxu1 %v18_v13 }
  0x10   :  { %129 = vmatpush.msra.mxu2 %v15_v14  ;;  %137 = vmatpush.msra.mxu3 %v16_v15 }
  0x11   :  { %116 = vmatmul.msk.f32.vlgmr.msra.gmra.mxu2 %vm31_vm0, %v13_v16  ;;  %120 = vmatmul.msk.f32.vlgmr.msra.gmra.mxu3 %vm31_vm0, %v13_v16 }
  0x12   :  { %59 = vmatpush.msra.mxu0 %v15_v14  ;;  %88 = vmatpush.msra.mxu1 %v16_v15 }
  0x13   :  { %114 = vmatmul.msk.f32.vlgmr.msra.gmra.mxu0 %vm31_vm0, %v11_v17  ;;  %118 = vmatmul.msk.f32.vlgmr.msra.gmra.mxu1 %vm31_vm0, %v11_v17 }
  0x19   :  { %117 = vmatmul.msk.f32.gmra.mxu2 %vm31_vm0, %v14_v18  ;;  %121 = vmatmul.msk.f32.gmra.mxu3 %vm31_vm0, %v14_v18 }
  0x1b   :  { %115 = vmatmul.msk.f32.gmra.mxu0 %vm31_vm0, %v12_v19  ;;  %119 = vmatmul.msk.f32.gmra.mxu1 %vm31_vm0, %v12_v19 }
  0x90   :  { %v61_v20 = vpop.f32.mrf.mxu0  ;;  %v90_v21 = vpop.f32.mrf.mxu1 }
  0x91   :  { %102 = vst [vmem:[%s247_s2] sm:$0xff] %v61_v20 }
  0x92   :  { %103 = vst [vmem:[%s247_s2 + $0x8] sm:$0xff] %v90_v21 }
  0x94   :  { %v67_v22 = vpop.f32.mrf.mxu2  ;;  %v96_v23 = vpop.f32.mrf.mxu3 }
  0x95   :  { %106 = vst [vmem:[%s247_s2 + $0x20] sm:$0xff] %v67_v22 }
  0x96   :  { %107 = vst [vmem:[%s247_s2 + $0x28] sm:$0xff] %v96_v23 }
  0x98   :  { %v64_v24 = vpop.f32.mrf.mxu0  ;;  %v93_v25 = vpop.f32.mrf.mxu1 }
  0x99   :  { %104 = vst [vmem:[%s247_s2 + $0x10] sm:$0xff] %v64_v24 }
  0x9a   :  { %105 = vst [vmem:[%s247_s2 + $0x18] sm:$0xff] %v93_v25 }
  0x9c   :  { %v70_v26 = vpop.f32.mrf.mxu2  ;;  %v99_v27 = vpop.f32.mrf.mxu3 }
  0x9d   :  { %108 = vst [vmem:[%s247_s2 + $0x30] sm:$0xff] %v70_v26 }
  0x9e   :  { %109 = vst [vmem:[%s247_s2 + $0x38] sm:$0xff] %v99_v27 }

// kernel: decoder_forward.11
= control target key start
LH: loop header
LB: loop body
LE: loop exit
PB: predicated region body
PF: predicated region fallthrough
CT: control target
= control target key end

     0   :  { %12 = vsyncpa [#allocation3], 0  ;;  %s568_s0 = inlined_call_operand.vmem [shape: f32[32,128], index: 0, kind: input, shape index: {}]   ;;  %s569_s1 = inlined_call_operand.hbm [shape: f32[128,256], index: 1, kind: input, shape index: {}]   ;;  %s570_s2 = inlined_call_operand.vmem [shape: f32[1,256], index: 2, kind: input, shape index: {}]   ;;  %s571_s3 = inlined_call_operand.hbm [shape: f32[256,128], index: 3, kind: input, shape index: {}]   ;;  %s572_s4 = inlined_call_operand.vmem [shape: f32[1,128], index: 4, kind: input, shape index: {}]   ;;  %s573_s5 = inlined_call_operand.vmem [shape: f32[1,128], index: 5, kind: input, shape index: {}]   ;;  %s574_s6 = inlined_call_operand.vmem [shape: f32[1,128], index: 6, kind: input, shape index: {}]   ;;  %s575_s7 = inlined_call_operand.vmem [shape: f32[32,128], index: 7, kind: output, shape index: {}]  }
   0x1   :  { %s20_s26 = sshll.u32 %s569_s1, 4  ;;  %s21_s26 = int_to_ptr.hbm [resolvable:$true] %s20_s26 }
   0x2   :  { %13 = vsyncpa [#allocation5], 0  ;;  %s449_s27 = smov [#allocation2]   ;;  %s35_s8 = sshll.u32 %s571_s3, 4  ;;  %s36_s8 = int_to_ptr.hbm [resolvable:$true] %s35_s8 }
   0x3   :  { %s22_s28 = sshll.u32 %s449_s27, 4  ;;  %s450_s9 = smov 256   ;;  %s23_s28 = int_to_ptr.vmem [resolvable:$true] %s22_s28 }
   0x4   :  { %s451_s10 = smov 16   ;;  %s452_s11 = smov [#allocation4]  }
   0x5   :  { %28 = dma.hbm_to_vmem [thread:$0]  %s21_s26, 4096, %s23_s28, [#allocation3], %s450_s9, %s450_s9, %s451_s10  }
   0x6   :  { %s37_s12 = sshll.u32 %s452_s11, 4  ;;  %s453_s13 = smov 128   ;;  %s38_s12 = int_to_ptr.vmem [resolvable:$true] %s37_s12 }
   0x7   :  { %s454_s14 = smov 8  }
   0x8   :  { %43 = dma.hbm_to_vmem [thread:$0]  %s36_s8, 4096, %s38_s12, [#allocation5], %s453_s13, %s453_s13, %s454_s14  }
   0x9   :  { %445 = dma.done.wait [#allocation3], 4096  }
   0xa   :  { %446 = vsyncadd [#allocation3], 4294963200 }
   0xb   :  { %447 = dma.done.wait [#allocation5], 4096  }
   0xc   :  { %448 = vsyncadd [#allocation5], 4294963200  ;;  %v92_v0 = vld [vmem:[#allocation2 + $0xf0] sm:$0xff]  ;;  %v90_v1 = vld [vmem:[#allocation2 + $0xe0] sm:$0xff] }
   0xd   :  { %v93_v2 = vld [vmem:[#allocation2 + $0xf8] sm:$0xff]  ;;  %100 = vmatpush.msra.mxu0 %v92_v0  ;;  %v91_v3 = vld [vmem:[#allocation2 + $0xe8] sm:$0xff]  ;;  %v88_v4 = vld [vmem:[#allocation2 + $0xd0] sm:$0xff] }
   0xe   :  { %129 = vmatpush.msra.mxu1 %v93_v2  ;;  %v89_v5 = vld [vmem:[#allocation2 + $0xd8] sm:$0xff]  ;;  %v86_v6 = vld [vmem:[#allocation2 + $0xc0] sm:$0xff]  ;;  %v87_v7 = vld [vmem:[#allocation2 + $0xc8] sm:$0xff] }
   0xf   :  { %101 = vmatpush.msra.mxu0 %v90_v1  ;;  %v84_v8 = vld [vmem:[#allocation2 + $0xb0] sm:$0xff]  ;;  %v85_v9 = vld [vmem:[#allocation2 + $0xb8] sm:$0xff]  ;;  %v82_v10 = vld [vmem:[#allocation2 + $0xa0] sm:$0xff] }
  0x10   :  { %130 = vmatpush.msra.mxu1 %v91_v3  ;;  %v83_v11 = vld [vmem:[#allocation2 + $0xa8] sm:$0xff]  ;;  %v80_v12 = vld [vmem:[#allocation2 + $0x90] sm:$0xff]  ;;  %v81_v13 = vld [vmem:[#allocation2 + $0x98] sm:$0xff] }
  0x11   :  { %102 = vmatpush.msra.mxu0 %v88_v4  ;;  %v78_v14 = vld [vmem:[#allocation2 + $0x80] sm:$0xff]  ;;  %v79_v15 = vld [vmem:[#allocation2 + $0x88] sm:$0xff]  ;;  %v76_v16 = vld [vmem:[#allocation2 + $0x70] sm:$0xff] }
  0x12   :  { %131 = vmatpush.msra.mxu1 %v89_v5  ;;  %v77_v17 = vld [vmem:[#allocation2 + $0x78] sm:$0xff]  ;;  %v74_v18 = vld [vmem:[#allocation2 + $0x60] sm:$0xff]  ;;  %v75_v19 = vld [vmem:[#allocation2 + $0x68] sm:$0xff] }
  0x13   :  { %103 = vmatpush.msra.mxu0 %v86_v6  ;;  %v72_v20 = vld [vmem:[#allocation2 + $0x50] sm:$0xff]  ;;  %v73_v21 = vld [vmem:[#allocation2 + $0x58] sm:$0xff]  ;;  %v70_v22 = vld [vmem:[#allocation2 + $0x40] sm:$0xff] }
  0x14   :  { %132 = vmatpush.msra.mxu1 %v87_v7  ;;  %v71_v23 = vld [vmem:[#allocation2 + $0x48] sm:$0xff]  ;;  %v68_v24 = vld [vmem:[#allocation2 + $0x30] sm:$0xff]  ;;  %v69_v25 = vld [vmem:[#allocation2 + $0x38] sm:$0xff] }
  0x15   :  { %104 = vmatpush.msra.mxu0 %v84_v8  ;;  %v66_v26 = vld [vmem:[#allocation2 + $0x20] sm:$0xff]  ;;  %v67_v27 = vld [vmem:[#allocation2 + $0x28] sm:$0xff]  ;;  %v181_v28 = vld [vmem:[#allocation4 + $0x78] sm:$0xff] }
  0x16   :  { %133 = vmatpush.msra.mxu1 %v85_v9  ;;  %v197_v29 = vld [vmem:[#allocation4 + $0xf8] sm:$0xff]  ;;  %v180_v30 = vld [vmem:[#allocation4 + $0x70] sm:$0xff]  ;;  %202 = vmatpush.msra.mxu2 %v181_v28  ;;  %v179_v34 = vld [vmem:[#allocation4 + $0x68] sm:$0xff] }
  0x17   :  { %105 = vmatpush.msra.mxu0 %v82_v10  ;;  %v196_v31 = vld [vmem:[#allocation4 + $0xf0] sm:$0xff]  ;;  %v65_v33 = vld [vmem:[#allocation2 + $0x18] sm:$0xff]  ;;  %231 = vmatpush.msra.mxu3 %v197_v29  ;;  %v195_v35 = vld [vmem:[#allocation4 + $0xe8] sm:$0xff] }
  0x18   :  { %134 = vmatpush.msra.mxu1 %v83_v11  ;;  %v64_v32 = vld [vmem:[#allocation2 + $0x10] sm:$0xff]  ;;  %v62_v36 = vld [vmem:[#allocation2] sm:$0xff]  ;;  %v63_v37 = vld [vmem:[#allocation2 + $0x8] sm:$0xff]  ;;  %203 = vmatpush.msra.mxu2 %v180_v30 }
  0x19   :  { %106 = vmatpush.msra.mxu0 %v80_v12  ;;  %232 = vmatpush.msra.mxu3 %v196_v31  ;;  %v505_v38 = vld [vmem:[%s568_s0] sm:$0xff]  ;;  %v177_v41 = vld [vmem:[#allocation4 + $0x58] sm:$0xff]  ;;  %v176_v43 = vld [vmem:[#allocation4 + $0x50] sm:$0xff] }
  0x1a   :  { %135 = vmatpush.msra.mxu1 %v81_v13  ;;  %204 = vmatpush.msra.mxu2 %v179_v34  ;;  %v178_v39 = vld [vmem:[#allocation4 + $0x60] sm:$0xff]  ;;  %v193_v42 = vld [vmem:[#allocation4 + $0xd8] sm:$0xff]  ;;  %v192_v44 = vld [vmem:[#allocation4 + $0xd0] sm:$0xff] }
  0x1b   :  { %107 = vmatpush.msra.mxu0 %v78_v14  ;;  %233 = vmatpush.msra.mxu3 %v195_v35  ;;  %v194_v40 = vld [vmem:[#allocation4 + $0xe0] sm:$0xff]  ;;  %v175_v45 = vld [vmem:[#allocation4 + $0x48] sm:$0xff]  ;;  %v173_v50 = vld [vmem:[#allocation4 + $0x38] sm:$0xff] }
  0x1c   :  { %136 = vmatpush.msra.mxu1 %v79_v15  ;;  %205 = vmatpush.msra.mxu2 %v178_v39  ;;  %v191_v46 = vld [vmem:[#allocation4 + $0xc8] sm:$0xff]  ;;  %v174_v48 = vld [vmem:[#allocation4 + $0x40] sm:$0xff]  ;;  %v189_v51 = vld [vmem:[#allocation4 + $0xb8] sm:$0xff] }
  0x1d   :  { %108 = vmatpush.msra.mxu0 %v76_v16  ;;  %234 = vmatpush.msra.mxu3 %v194_v40  ;;  %v512_v47 = vld [vmem:[%s568_s0 + $0x8] sm:$0xff]  ;;  %v190_v49 = vld [vmem:[#allocation4 + $0xc0] sm:$0xff]  ;;  %v172_v52 = vld [vmem:[#allocation4 + $0x30] sm:$0xff] }
  0x1e   :  { %137 = vmatpush.msra.mxu1 %v77_v17  ;;  %206 = vmatpush.msra.mxu2 %v177_v41  ;;  %v188_v53 = vld [vmem:[#allocation4 + $0xb0] sm:$0xff]  ;;  %v171_v54 = vld [vmem:[#allocation4 + $0x28] sm:$0xff]  ;;  %v170_v57 = vld [vmem:[#allocation4 + $0x20] sm:$0xff] }
  0x1f   :  { %109 = vmatpush.msra.mxu0 %v74_v18  ;;  %235 = vmatpush.msra.mxu3 %v193_v42  ;;  %v187_v55 = vld [vmem:[#allocation4 + $0xa8] sm:$0xff]  ;;  %v519_v56 = vld [vmem:[%s568_s0 + $0x10] sm:$0xff]  ;;  %v186_v58 = vld [vmem:[#allocation4 + $0xa0] sm:$0xff] }
  0x20   :  { %138 = vmatpush.msra.mxu1 %v75_v19  ;;  %207 = vmatpush.msra.mxu2 %v176_v43  ;;  %v169_v59 = vld [vmem:[#allocation4 + $0x18] sm:$0xff]  ;;  %v168_v61 = vld [vmem:[#allocation4 + $0x10] sm:$0xff]  ;;  %v167_v63 = vld [vmem:[#allocation4 + $0x8] sm:$0xff] }
  0x21   :  { %110 = vmatpush.msra.mxu0 %v72_v20  ;;  %236 = vmatpush.msra.mxu3 %v192_v44  ;;  %v526_v60 = vld [vmem:[%s568_s0 + $0x18] sm:$0xff]  ;;  %v184_v0 = vld [vmem:[#allocation4 + $0x90] sm:$0xff]  ;;  %v166_v1 = vld [vmem:[#allocation4] sm:$0xff] }
  0x22   :  { %139 = vmatpush.msra.mxu1 %v73_v21  ;;  %208 = vmatpush.msra.mxu2 %v175_v45  ;;  %v185_v62 = vld [vmem:[#allocation4 + $0x98] sm:$0xff]  ;;  %v183_v2 = vld [vmem:[#allocation4 + $0x88] sm:$0xff]  ;;  %v182_v3 = vld [vmem:[#allocation4 + $0x80] sm:$0xff] }
  0x23   :  { %111 = vmatpush.msra.mxu0 %v70_v22  ;;  %237 = vmatpush.msra.mxu3 %v191_v46  ;;  %v94_v4 = vld [vmem:[%s570_s2] sm:$0x3] }
  0x24   :  { %140 = vmatpush.msra.mxu1 %v71_v23  ;;  %209 = vmatpush.msra.mxu2 %v174_v48  ;;  %v96_v5 = vperm.slane %v94_v4, 0  ;;  %v97_v6 = vperm.slane %v94_v4, 1  ;;  %v384_v31 = vld [vmem:[%s572_s4] ss:$0 sm:$0xff] }
  0x25   :  { %112 = vmatpush.msra.mxu0 %v68_v24  ;;  %238 = vmatpush.msra.mxu3 %v190_v49 }
  0x26   :  { %141 = vmatpush.msra.mxu1 %v69_v25  ;;  %210 = vmatpush.msra.mxu2 %v173_v50 }
  0x27   :  { %113 = vmatpush.msra.mxu0 %v66_v26  ;;  %239 = vmatpush.msra.mxu3 %v189_v51 }
  0x28   :  { %142 = vmatpush.msra.mxu1 %v67_v27  ;;  %211 = vmatpush.msra.mxu2 %v172_v52 }
  0x29   :  { %114 = vmatpush.msra.mxu0 %v64_v32  ;;  %240 = vmatpush.msra.mxu3 %v188_v53  ;;  %v455_v53 = vmov 128.0  }
  0x2a   :  { %143 = vmatpush.msra.mxu1 %v65_v33  ;;  %212 = vmatpush.msra.mxu2 %v171_v54  ;;  %387 = vrcp.f32 %v455_v53 }
  0x2b   :  { %115 = vmatpush.msra.mxu0 %v62_v36  ;;  %241 = vmatpush.msra.mxu3 %v187_v55 }
  0x2c   :  { %144 = vmatpush.msra.mxu1 %v63_v37  ;;  %116 = vmatmul.f32.vlgmr.msra.gmra.mxu0 %v505_v38 }
  0x2d   :  { %145 = vmatmul.f32.vlgmr.msra.gmra.mxu1 %v505_v38  ;;  %213 = vmatpush.msra.mxu2 %v170_v57 }
  0x2e   :  { %242 = vmatpush.msra.mxu3 %v186_v58 }
  0x2f   :  { %214 = vmatpush.msra.mxu2 %v169_v59 }
  0x30   :  { %243 = vmatpush.msra.mxu3 %v185_v62  ;;  %v388_v54 = vpop.eup %387 }
  0x31   :  { %215 = vmatpush.msra.mxu2 %v168_v61  ;;  %v275_v55 = vmul.f32 128.0, %v388_v54  ;;  %vm279_vm0 = vweird.f32 %v388_v54 }
  0x32   :  { %244 = vmatpush.msra.mxu3 %v184_v0 }
  0x33   :  { %216 = vmatpush.msra.mxu2 %v167_v63 }
  0x34   :  { %119 = vmatmul.f32.gmra.mxu0 %v512_v47  ;;  %245 = vmatpush.msra.mxu3 %v183_v2 }
  0x35   :  { %148 = vmatmul.f32.gmra.mxu1 %v512_v47  ;;  %217 = vmatpush.msra.mxu2 %v166_v1 }
  0x36   :  { %246 = vmatpush.msra.mxu3 %v182_v3 }
  0x3c   :  { %122 = vmatmul.f32.gmra.mxu0 %v519_v56 }
  0x3d   :  { %151 = vmatmul.f32.gmra.mxu1 %v519_v56 }
  0x44   :  { %125 = vmatmul.f32.gmra.mxu0 %v526_v60 }
  0x45   :  { %154 = vmatmul.f32.gmra.mxu1 %v526_v60 }
  0xa9   :  { %v117_v7 = vpop.f32.mrf.mxu0 }
  0xaa   :  { %v146_v8 = vpop.f32.mrf.mxu1  ;;  %v118_v9 = vadd.f32 %v117_v7, %v96_v5 }
  0xab   :  { %v147_v10 = vadd.f32 %v146_v8, %v97_v6 }
  0xac   :  { %v158_v11 = vmax.f32 %v118_v9, 0.0 }
  0xad   :  { %v159_v12 = vmax.f32 %v147_v10, 0.0 }
  0xae   :  { %218 = vmatmul.f32.vlgmr.msra.gmra.mxu2 %v158_v11 }
  0xaf   :  { %247 = vmatmul.f32.vlgmr.msra.gmra.mxu3 %v159_v12 }
  0xb1   :  { %v120_v13 = vpop.f32.mrf.mxu0 }
  0xb2   :  { %v149_v14 = vpop.f32.mrf.mxu1  ;;  %v121_v15 = vadd.f32 %v120_v13, %v96_v5 }
  0xb3   :  { %v150_v16 = vadd.f32 %v149_v14, %v97_v6 }
  0xb4   :  { %v160_v17 = vmax.f32 %v121_v15, 0.0 }
  0xb5   :  { %v161_v18 = vmax.f32 %v150_v16, 0.0 }
  0xb6   :  { %221 = vmatmul.f32.gmra.mxu2 %v160_v17 }
  0xb7   :  { %250 = vmatmul.f32.gmra.mxu3 %v161_v18 }
  0xb9   :  { %v123_v19 = vpop.f32.mrf.mxu0 }
  0xba   :  { %v152_v20 = vpop.f32.mrf.mxu1  ;;  %v124_v21 = vadd.f32 %v123_v19, %v96_v5 }
  0xbb   :  { %v153_v22 = vadd.f32 %v152_v20, %v97_v6 }
  0xbc   :  { %v162_v23 = vmax.f32 %v124_v21, 0.0 }
  0xbd   :  { %v163_v24 = vmax.f32 %v153_v22, 0.0 }
  0xbe   :  { %224 = vmatmul.f32.gmra.mxu2 %v162_v23 }
  0xbf   :  { %253 = vmatmul.f32.gmra.mxu3 %v163_v24 }
  0xc1   :  { %v126_v25 = vpop.f32.mrf.mxu0 }
  0xc2   :  { %v155_v26 = vpop.f32.mrf.mxu1  ;;  %v127_v27 = vadd.f32 %v126_v25, %v96_v5 }
  0xc3   :  { %v156_v28 = vadd.f32 %v155_v26, %v97_v6 }
  0xc4   :  { %v164_v29 = vmax.f32 %v127_v27, 0.0 }
  0xc5   :  { %v165_v30 = vmax.f32 %v156_v28, 0.0  ;;  %v385_v28 = vld [vmem:[%s573_s5] ss:$0 sm:$0xff] }
  0xc6   :  { %227 = vmatmul.f32.gmra.mxu2 %v164_v29 }
  0xc7   :  { %256 = vmatmul.f32.gmra.mxu3 %v165_v30 }
 0x131   :  { %v219_v32 = vpop.f32.mrf.mxu2 }
 0x132   :  { %v248_v33 = vpop.f32.mrf.mxu3  ;;  %v220_v34 = vadd.f32 %v384_v31, %v219_v32 }
 0x134   :  { %v249_v35 = vadd.f32 %v248_v33, %v220_v34 }
 0x136   :  { %v260_v36 = vadd.f32 %v249_v35, %v505_v38 }
 0x138   :  { %266 = vadd.xlane.f32.xlu0 %v260_v36 }
 0x139   :  { %v222_v37 = vpop.f32.mrf.mxu2 }
 0x13a   :  { %v251_v39 = vpop.f32.mrf.mxu3  ;;  %v223_v40 = vadd.f32 %v384_v31, %v222_v37 }
 0x13c   :  { %v252_v41 = vadd.f32 %v251_v39, %v223_v40 }
 0x13e   :  { %v261_v42 = vadd.f32 %v252_v41, %v512_v47  ;;  %v276_v47 = vsub.f32 1.0, %v275_v55 }
 0x140   :  { %268 = vadd.xlane.f32.xlu0 %v261_v42  ;;  %v277_v57 = vmul.f32 %v388_v54, %v276_v47 }
 0x141   :  { %v225_v43 = vpop.f32.mrf.mxu2 }
 0x142   :  { %v254_v44 = vpop.f32.mrf.mxu3  ;;  %v226_v45 = vadd.f32 %v384_v31, %v225_v43  ;;  %v278_v58 = vadd.f32 %v388_v54, %v277_v57 }
 0x144   :  { %v255_v46 = vadd.f32 %v254_v44, %v226_v45  ;;  %v280_v59 = vsel %vm279_vm0, %v388_v54, %v278_v58 }
 0x146   :  { %v262_v48 = vadd.f32 %v255_v46, %v519_v56 }
 0x148   :  { %270 = vadd.xlane.f32.xlu1 %v262_v48 }
 0x149   :  { %v228_v49 = vpop.f32.mrf.mxu2 }
 0x14a   :  { %v257_v50 = vpop.f32.mrf.mxu3  ;;  %v229_v51 = vadd.f32 %v384_v31, %v228_v49  ;;  %v386_v31 = vld [vmem:[%s574_s6] ss:$0 sm:$0xff] }
 0x14c   :  { %v258_v52 = vadd.f32 %v257_v50, %v229_v51 }
 0x14e   :  { %v263_v38 = vadd.f32 %v258_v52, %v526_v60 }
 0x150   :  { %272 = vadd.xlane.f32.xlu1 %v263_v38 }
 0x1ab   :  { %v267_v61 = vpop.xlane.xlu0 %266 }
 0x1ac   :  { %v281_v62 = vmul.f32 %v280_v59, %v267_v61 }
 0x1ae   :  { %v285_v56 = vsub.f32 %v260_v36, %v281_v62 }
 0x1b0   :  { %v289_v63 = vmul.f32 %v285_v56, %v285_v56 }
 0x1b2   :  { %293 = vadd.xlane.f32.xlu2 %v289_v63 }
 0x1b3   :  { %v269_v0 = vpop.xlane.xlu0 %268 }
 0x1b4   :  { %v282_v1 = vmul.f32 %v280_v59, %v269_v0 }
 0x1b6   :  { %v286_v2 = vsub.f32 %v261_v42, %v282_v1 }
 0x1b8   :  { %v290_v3 = vmul.f32 %v286_v2, %v286_v2 }
 0x1ba   :  { %295 = vadd.xlane.f32.xlu2 %v290_v3 }
 0x1bb   :  { %v271_v60 = vpop.xlane.xlu1 %270 }
 0x1bc   :  { %v283_v4 = vmul.f32 %v280_v59, %v271_v60 }
 0x1be   :  { %v540_v5 = vsub.f32 %v262_v48, %v283_v4 }
 0x1c0   :  { %v291_v6 = vmul.f32 %v540_v5, %v540_v5 }
 0x1c2   :  { %297 = vadd.xlane.f32.xlu0 %v291_v6 }
 0x1c3   :  { %v273_v7 = vpop.xlane.xlu1 %272 }
 0x1c4   :  { %v284_v8 = vmul.f32 %v280_v59, %v273_v7 }
 0x1c6   :  { %v544_v9 = vsub.f32 %v263_v38, %v284_v8 }
 0x1c8   :  { %v292_v10 = vmul.f32 %v544_v9, %v544_v9 }
 0x1ca   :  { %299 = vadd.xlane.f32.xlu1 %v292_v10 }
 0x225   :  { %v294_v11 = vpop.xlane.xlu2 %293 }
 0x226   :  { %v301_v12 = vmul.f32 %v294_v11, %v280_v59 }
 0x228   :  { %v305_v13 = vadd.f32 1e-08, %v301_v12 }
 0x22a   :  { %389 = vrsqrt.f32 %v305_v13  ;;  %vm315_vm2 = vweird.f32 %v305_v13 }
 0x22d   :  { %v296_v14 = vpop.xlane.xlu2 %295 }
 0x22e   :  { %v302_v15 = vmul.f32 %v296_v14, %v280_v59 }
 0x230   :  { %v390_v16 = vpop.eup %389  ;;  %v306_v17 = vadd.f32 1e-08, %v302_v15 }
 0x231   :  { %v310_v18 = vmul.f32 %v390_v16, %v305_v13  ;;  %vm316_vm1 = vweird.f32 %v390_v16 }
 0x232   :  { %391 = vrsqrt.f32 %v306_v17  ;;  %vm317_vm3 = vmor %vm315_vm2, %vm316_vm1  ;;  %vm325_vm5 = vweird.f32 %v306_v17 }
 0x233   :  { %v311_v19 = vmul.f32 %v390_v16, %v310_v18 }
 0x235   :  { %v312_v20 = vmul.f32 0.5, %v311_v19  ;;  %v298_v21 = vpop.xlane.xlu0 %297 }
 0x236   :  { %v303_v22 = vmul.f32 %v298_v21, %v280_v59 }
 0x237   :  { %v313_v23 = vsub.f32 1.5, %v312_v20 }
 0x238   :  { %v392_v24 = vpop.eup %391  ;;  %v307_v25 = vadd.f32 1e-08, %v303_v22 }
 0x239   :  { %v314_v26 = vmul.f32 %v390_v16, %v313_v23  ;;  %v320_v27 = vmul.f32 %v392_v24, %v306_v17  ;;  %vm326_vm4 = vweird.f32 %v392_v24 }
 0x23a   :  { %393 = vrsqrt.f32 %v307_v25  ;;  %vm327_vm6 = vmor %vm325_vm5, %vm326_vm4  ;;  %vm335_vm8 = vweird.f32 %v307_v25 }
 0x23b   :  { %v318_v29 = vsel %vm317_vm3, %v390_v16, %v314_v26  ;;  %v321_v30 = vmul.f32 %v392_v24, %v320_v27 }
 0x23c   :  { %v349_v32 = vmul.f32 %v318_v29, %v285_v56 }
 0x23d   :  { %v322_v33 = vmul.f32 0.5, %v321_v30  ;;  %v300_v34 = vpop.xlane.xlu1 %299 }
 0x23e   :  { %v356_v35 = vmul.f32 %v385_v28, %v349_v32  ;;  %v304_v36 = vmul.f32 %v300_v34, %v280_v59 }
 0x23f   :  { %v323_v37 = vsub.f32 1.5, %v322_v33 }
 0x240   :  { %v394_v39 = vpop.eup %393  ;;  %v363_v40 = vadd.f32 %v386_v31, %v356_v35  ;;  %v308_v41 = vadd.f32 1e-08, %v304_v36 }
 0x241   :  { %v324_v42 = vmul.f32 %v392_v24, %v323_v37  ;;  %v330_v43 = vmul.f32 %v394_v39, %v307_v25  ;;  %vm336_vm7 = vweird.f32 %v394_v39 }
 0x242   :  { %367 = vst [vmem:[%s575_s7] sm:$0xff] %v363_v40  ;;  %395 = vrsqrt.f32 %v308_v41  ;;  %vm337_vm9 = vmor %vm335_vm8, %vm336_vm7  ;;  %vm345_vm11 = vweird.f32 %v308_v41 }
 0x243   :  { %v328_v44 = vsel %vm327_vm6, %v392_v24, %v324_v42  ;;  %v331_v45 = vmul.f32 %v394_v39, %v330_v43 }
 0x244   :  { %v350_v46 = vmul.f32 %v328_v44, %v286_v2 }
 0x245   :  { %v332_v48 = vmul.f32 0.5, %v331_v45 }
 0x246   :  { %v357_v49 = vmul.f32 %v385_v28, %v350_v46 }
 0x247   :  { %v333_v50 = vsub.f32 1.5, %v332_v48 }
 0x248   :  { %v396_v51 = vpop.eup %395  ;;  %v364_v52 = vadd.f32 %v386_v31, %v357_v49 }
 0x249   :  { %v334_v38 = vmul.f32 %v394_v39, %v333_v50  ;;  %v340_v53 = vmul.f32 %v396_v51, %v308_v41  ;;  %vm346_vm10 = vweird.f32 %v396_v51 }
 0x24a   :  { %368 = vst [vmem:[%s575_s7 + $0x8] sm:$0xff] %v364_v52  ;;  %vm347_vm12 = vmor %vm345_vm11, %vm346_vm10 }
 0x24b   :  { %v338_v54 = vsel %vm337_vm9, %v394_v39, %v334_v38  ;;  %v341_v55 = vmul.f32 %v396_v51, %v340_v53 }
 0x24c   :  { %v351_v47 = vmul.f32 %v338_v54, %v540_v5 }
 0x24d   :  { %v342_v57 = vmul.f32 0.5, %v341_v55 }
 0x24e   :  { %v358_v58 = vmul.f32 %v385_v28, %v351_v47 }
 0x24f   :  { %v343_v59 = vsub.f32 1.5, %v342_v57 }
 0x250   :  { %v365_v61 = vadd.f32 %v386_v31, %v358_v58 }
 0x251   :  { %v344_v62 = vmul.f32 %v396_v51, %v343_v59 }
 0x252   :  { %369 = vst [vmem:[%s575_s7 + $0x10] sm:$0xff] %v365_v61 }
 0x253   :  { %v348_v56 = vsel %vm347_vm12, %v396_v51, %v344_v62 }
 0x254   :  { %v352_v63 = vmul.f32 %v348_v56, %v544_v9 }
 0x256   :  { %v359_v0 = vmul.f32 %v385_v28, %v352_v63 }
 0x258   :  { %v366_v1 = vadd.f32 %v386_v31, %v359_v0 }
 0x25a   :  { %370 = vst [vmem:[%s575_s7 + $0x18] sm:$0xff] %v366_v1 }
 0x25b   :  { %375 = vsyncpa [#allocation3], 1 }
 0x25c   :  { %376 = vsyncpa [#allocation5], 1 }

// kernel: decoder_forward.10
= control target key start
LH: loop header
LB: loop body
LE: loop exit
PB: predicated region body
PF: predicated region fallthrough
CT: control target
= control target key end

     0   :  { %13 = vsyncpa [#allocation3], 0  ;;  %s1618_s0 = inlined_call_operand.vmem [shape: f32[2,16,128], index: 0, kind: input, shape index: {}]   ;;  %s1619_s1 = inlined_call_operand.vmem [shape: f32[2,16,256], index: 1, kind: input, shape index: {}]   ;;  %s1620_s2 = inlined_call_operand.vmem [shape: f32[2,1,16], index: 2, kind: input, shape index: {}]   ;;  %s1621_s3 = inlined_call_operand.hbm [shape: f32[128,128], index: 3, kind: input, shape index: {}]   ;;  %s1622_s4 = inlined_call_operand.hbm [shape: f32[128,128], index: 4, kind: input, shape index: {}]   ;;  %s1623_s5 = inlined_call_operand.vmem [shape: f32[1,128], index: 5, kind: input, shape index: {}]   ;;  %s1624_s6 = inlined_call_operand.vmem [shape: f32[1,128], index: 6, kind: input, shape index: {}]   ;;  %s1625_s7 = inlined_call_operand.vmem [shape: f32[1,128], index: 7, kind: input, shape index: {}]   ;;  %s1626_s8 = inlined_call_operand.vmem [shape: f32[2,16,128], index: 8, kind: output, shape index: {}]  }
   0x1   :  { %14 = vsyncpa [#allocation5], 0  ;;  %s1415_s27 = smov 0  }
   0x2 LB: > { %s245_s30 = sshll.u32 %s1621_s3, 4  ;;  %s1146_s9 = sadd.s32 4294967295, %s1359_s27   ;;  %s1359_s27 = sphi %s1415_s27, %s20_s27   ;;  %s246_s30 = int_to_ptr.hbm [resolvable:$true] %s245_s30 }
   0x3   : > { %p1148_p0 = scmp.ge.s32.totalorder %s1359_s27, 1  ;;  %p234_p1 = scmp.lt.s32.totalorder %s1359_s27, 3 }
   0x4   : > { %p1208_p2 = scmp.eq.s32.totalorder %s1146_s9, 0  ;;  %s1361_s11 = smov [#allocation2]  }
   0x5   : > { %p1426_p3 = pnand %p1148_p0, %p234_p1  ;;  %s247_s12 = sshll.u32 %s1361_s11, 4  ;;  %s248_s12 = int_to_ptr.vmem [resolvable:$true] %s247_s12 }
   0x6   : > { %s259_s15 = sshll.u32 %s1622_s4, 4  ;;  %s1362_s16 = smov [#allocation4]   ;;  %s260_s15 = int_to_ptr.hbm [resolvable:$true] %s259_s15 }
   0x7   : > { %p1201_p4 = pneg %p1426_p3  ;;  %s261_s17 = sshll.u32 %s1362_s16, 4  ;;  %s262_s17 = int_to_ptr.vmem [resolvable:$true] %s261_s17 }
   0x8   : > { %s1363_s18 = smov 128   ;;  %s1364_s19 = smov 8  }
   0x9   : > { %p1202_p5 = pnand %p1208_p2, %p1201_p4  ;;  %308 = sbr.rel (%p1426_p3) target bundleno = 2057 (0x809), region = 52 }
   0xb   : > { %1204 = dma.hbm_to_vmem [thread:$0]  (!%p1202_p5), %s246_s30, 2048, %s248_s12, [#allocation3], %s1363_s18, %s1363_s18, %s1364_s19  }
   0xc   : > { %1207 = dma.hbm_to_vmem [thread:$0]  (!%p1202_p5), %s260_s15, 2048, %s262_s17, [#allocation5], %s1363_s18, %s1363_s18, %s1364_s19  }
   0xe   : > { %1350 = dma.done.wait (%p1208_p2), [#allocation3], 2048  }
   0xf   : > { %1352 = vsyncadd (%p1208_p2), [#allocation3], 4294965248 }
  0x10   : > { %1354 = dma.done.wait (%p1208_p2), [#allocation5], 2048  }
  0x11   : > { %1356 = vsyncadd (%p1208_p2), [#allocation5], 4294965248  ;;  %p356_p6 = scmp.lt.s32.totalorder %s1146_s9, 1  ;;  %v395_v0 = vld [vmem:[#allocation2 + $0x78] sm:$0xff]  ;;  %v394_v1 = vld [vmem:[#allocation2 + $0x70] sm:$0xff]  ;;  %vm428_vm0 = vcmask 261120  }
  0x12   : > { %396 = vmatpush.msra.mxu0 %v395_v0  ;;  %v393_v2 = vld [vmem:[#allocation2 + $0x68] sm:$0xff]  ;;  %v392_v3 = vld [vmem:[#allocation2 + $0x60] sm:$0xff]  ;;  %v391_v4 = vld [vmem:[#allocation2 + $0x58] sm:$0xff]  ;;  %s1365_s29 = smov 96   ;;  %v1366_v23 = vmov 0.0   ;;  %vm464_vm2 = vcmask 130048  }
  0x13   : > { %s1629_s9 = smov (!%p356_p6, %s1146_s9), 1  ;;  %v390_v5 = vld [vmem:[#allocation2 + $0x50] sm:$0xff]  ;;  %v389_v7 = vld [vmem:[#allocation2 + $0x48] sm:$0xff]  ;;  %v388_v9 = vld [vmem:[#allocation2 + $0x40] sm:$0xff]  ;;  %s1367_s12 = smov 64  }
  0x14   : > { %s1189_s20 = sshll.u32 %s1629_s9, 5  ;;  %397 = vmatpush.msra.mxu0 %v394_v1  ;;  %v387_v10 = vld [vmem:[#allocation2 + $0x38] sm:$0xff]  ;;  %v386_v11 = vld [vmem:[#allocation2 + $0x30] sm:$0xff]  ;;  %v385_v12 = vld [vmem:[#allocation2 + $0x28] sm:$0xff]  ;;  %s1188_s24 = sshll.u32 %s1629_s9, 4 }
  0x15   : > { %s1448_s23 = scalar_lea.vmem %s1619_s1, %s1189_s20  ;;  %v384_v13 = vld [vmem:[#allocation2 + $0x20] sm:$0xff]  ;;  %v383_v14 = vld [vmem:[#allocation2 + $0x18] sm:$0xff]  ;;  %v382_v15 = vld [vmem:[#allocation2 + $0x10] sm:$0xff]  ;;  %s360_s28 = scalar_lea.vmem %s1618_s0, %s1188_s24 }
  0x16   : > { %398 = vmatpush.msra.mxu0 %v393_v2  ;;  %v1451_v6 = vld [vmem:[%s1448_s23 + $0x10] sm:$0xff]  ;;  %v1456_v8 = vld [vmem:[%s1448_s23] sm:$0xff]  ;;  %v381_v16 = vld [vmem:[#allocation2 + $0x8] sm:$0xff]  ;;  %s368_s11 = scalar_lea.vmem %s1620_s2, %s1629_s9  ;;  %s1368_s13 = smov 32  }
  0x17   : > { %1162 = vmatpush.xpose.msk.msra.mxu1 %vm428_vm0, %v1451_v6  ;;  %v380_v17 = vld [vmem:[#allocation2] sm:$0xff]  ;;  %v1469_v19 = vld [vmem:[%s360_s28 + $0x8] sm:$0xff]  ;;  %548 = vrot.lane.b32.xlu2 %v1451_v6, %s1365_s29  ;;  %v379_v47 = vld [vmem:[%s1448_s23 + $0x18] sm:$0xff]  ;;  %s373_s22 = scalar_lea.vmem %s1626_s8, %s1188_s24 }
  0x18   : > { %399 = vmatpush.msra.mxu0 %v392_v3  ;;  %v1466_v18 = vld [vmem:[%s360_s28] sm:$0xff]  ;;  %533 = vmatpush.msra.mxu2 %v379_v47  ;;  %v377_v48 = vld [vmem:[%s1448_s23 + $0x8] sm:$0xff] }
  0x19   : > { %v419_v22 = vld [vmem:[%s368_s11] sm:$0x1] }
  0x1a   : > { %400 = vmatpush.msra.mxu0 %v391_v4  ;;  %vm420_vm1 = vcmp.gt.f32.partialorder %v419_v22, 0.5  ;;  %534 = vmatpush.msra.mxu2 %v377_v48 }
  0x1b   : > { %1163 = vmatpush.xpose.msk.msra.mxu1 %vm428_vm0, %v1456_v8  ;;  %v1161_v24 = vsel %vm420_vm1, 1.0, %v1366_v23 }
  0x1c   : > { %401 = vmatpush.msra.mxu0 %v390_v5  ;;  %v423_v25 = vsub.f32 1.0, %v1161_v24 }
  0x1e   : > { %402 = vmatpush.msra.mxu0 %v389_v7  ;;  %v424_v26 = vmul.f32 -3.4028235e+38, %v423_v25 }
  0x1f   : > { %546 = vrot.lane.b32.xlu2 %v1456_v8, %s1365_s29 }
  0x20   : > { %403 = vmatpush.msra.mxu0 %v388_v9  ;;  %v1488_v27 = vperm.slane %v424_v26, 0  ;;  %v1517_v26 = vpack.i.bf16 %v377_v48, %v379_v47 }
  0x22   : > { %404 = vmatpush.msra.mxu0 %v387_v10 }
  0x24   : > { %405 = vmatpush.msra.mxu0 %v386_v11 }
  0x26   : > { %406 = vmatpush.msra.mxu0 %v385_v12 }
  0x28   : > { %407 = vmatpush.msra.mxu0 %v384_v13 }
  0x2a   : > { %408 = vmatpush.msra.mxu0 %v383_v14 }
  0x2c   : > { %409 = vmatpush.msra.mxu0 %v382_v15 }
  0x2e   : > { %410 = vmatpush.msra.mxu0 %v381_v16 }
  0x30   : > { %411 = vmatpush.msra.mxu0 %v380_v17 }
  0x31   : > { %412 = vmatmul.f32.vlgmr.msra.gmra.mxu0 %v1466_v18 }
  0x39   : > { %415 = vmatmul.f32.gmra.mxu0 %v1469_v19 }
  0x71   : > { %v549_v34 = vpop.permute.xlu2 %548 }
  0x72   : > { %1168 = vmatpush.xpose.msk.msrb.mxu0 %vm428_vm0, %v549_v34  ;;  %1191 = vmatpush.xpose.msk.msrb.mxu2 %vm428_vm0, %v549_v34 }
  0x79   : > { %v547_v35 = vpop.permute.xlu2 %546 }
  0x7a   : > { %1169 = vmatpush.xpose.msk.msrb.mxu0 %vm428_vm0, %v547_v35  ;;  %1192 = vmatpush.xpose.msk.msrb.mxu2 %vm428_vm0, %v547_v35 }
  0xae   : > { %v1472_v20 = vpop.f32.mrf.mxu0 }
  0xaf   : > { %1164 = vmatmul.msk.f32.vlgmr.msra.gmra.mxu1 %vm428_vm0, %v1472_v20 }
  0xb6   : > { %v1476_v21 = vpop.f32.mrf.mxu0 }
  0xb7   : > { %1165 = vmatmul.msk.f32.gmra.mxu1 %vm428_vm0, %v1476_v21 }
 0x12c   : > { %v458_v28 = vpop.f32.mrf.mxu1 }
 0x12d   : > { %v459_v29 = vadd.f32 %v458_v28, %v1488_v27 }
 0x12f   : > { %v465_v30 = vsel %vm464_vm2, %v459_v29, -inf }
 0x130   : > { %466 = vmax.xlane.f32.xlu0 %v465_v30 }
 0x134   : > { %v461_v31 = vpop.f32.mrf.mxu1 }
 0x135   : > { %v462_v32 = vadd.f32 %v461_v31, %v1488_v27 }
 0x137   : > { %v468_v33 = vsel %vm464_vm2, %v462_v32, -inf }
 0x138   : > { %469 = vmax.xlane.f32.xlu0 %v468_v33 }
 0x14c   : > { %542 = vrot.lane.b32.xlu0 %v1472_v20, %s1365_s29 }
 0x1a3   : > { %v467_v36 = vpop.xlane.xlu0 %466 }
 0x1a4   : > { %v471_v37 = vsub.f32 %v459_v29, %v467_v36 }
 0x1a6   : > { %v473_v38 = vmul.f32 1.442695, %v471_v37 }
 0x1a8   : > { %1247 = vpow2.f32 %v473_v38 }
 0x1ab   : > { %v470_v39 = vpop.xlane.xlu0 %469 }
 0x1ac   : > { %v472_v40 = vsub.f32 %v462_v32, %v470_v39 }
 0x1ae   : > { %v1248_v41 = vpop.eup %1247  ;;  %v475_v42 = vmul.f32 1.442695, %v472_v40 }
 0x1af   : > { %v477_v43 = vsel %vm464_vm2, %v1248_v41, 0.0 }
 0x1b0   : > { %1249 = vpow2.f32 %v475_v42  ;;  %478 = vadd.xlane.f32.xlu1 %v477_v43 }
 0x1b6   : > { %v1250_v44 = vpop.eup %1249 }
 0x1b7   : > { %v480_v45 = vsel %vm464_vm2, %v1250_v44, 0.0 }
 0x1b8   : > { %481 = vadd.xlane.f32.xlu1 %v480_v45 }
 0x1be   : > { %v543_v46 = vpop.permute.xlu0 %542 }
 0x1bf   : > { %1170 = vmatmul.msk.f32.vlgmr.msrb.gmra.mxu0 %vm428_vm0, %v543_v46 }
 0x1d1   : > { %544 = vrot.lane.b32.xlu1 %v1476_v21, %s1365_s29 }
 0x223   : > { %v479_v49 = vpop.xlane.xlu1 %478 }
 0x224   : > { %1251 = vrcp.f32 %v479_v49  ;;  %v494_v54 = vand.u32 2147483648, %v479_v49  ;;  %v492_v56 = vand.u32 2147483647, %v479_v49  ;;  %vm488_vm4 = vweird.f32 %v479_v49 }
 0x226   : > { %v495_v59 = vor.u32 1.1754944e-38, %v494_v54  ;;  %vm493_vm6 = vcmp.eq.f32.partialorder %v492_v56, 8.507059e+37 }
 0x22a   : > { %v1252_v50 = vpop.eup %1251 }
 0x22b   : > { %v484_v51 = vmul.f32 %v1252_v50, %v479_v49  ;;  %v482_v52 = vpop.xlane.xlu1 %481  ;;  %vm489_vm3 = vweird.f32 %v1252_v50 }
 0x22c   : > { %1253 = vrcp.f32 %v482_v52  ;;  %vm490_vm5 = vmor %vm488_vm4, %vm489_vm3  ;;  %v509_v1 = vand.u32 2147483648, %v482_v52  ;;  %v507_v3 = vand.u32 2147483647, %v482_v52  ;;  %vm503_vm8 = vweird.f32 %v482_v52 }
 0x22d   : > { %v485_v53 = vsub.f32 1.0, %v484_v51 }
 0x22e   : > { %v510_v5 = vor.u32 1.1754944e-38, %v509_v1  ;;  %vm508_vm10 = vcmp.eq.f32.partialorder %v507_v3, 8.507059e+37 }
 0x22f   : > { %v486_v55 = vmul.f32 %v1252_v50, %v485_v53 }
 0x231   : > { %v487_v57 = vadd.f32 %v1252_v50, %v486_v55 }
 0x232   : > { %v1254_v58 = vpop.eup %1253 }
 0x233   : > { %v499_v60 = vmul.f32 %v1254_v58, %v482_v52  ;;  %v491_v61 = vsel %vm490_vm5, %v1252_v50, %v487_v57  ;;  %vm504_vm7 = vweird.f32 %v1254_v58 }
 0x234   : > { %v496_v62 = vsel %vm493_vm6, %v495_v59, %v491_v61  ;;  %vm505_vm9 = vmor %vm503_vm8, %vm504_vm7 }
 0x235   : > { %v500_v63 = vsub.f32 1.0, %v499_v60  ;;  %v497_v0 = vmul.f32 %v1248_v41, %v496_v62 }
 0x237   : > { %v501_v2 = vmul.f32 %v1254_v58, %v500_v63  ;;  %1166 = vmatmul.msk.f32.vlgmr.msra.gmra.mxu2 %vm464_vm2, %v497_v0 }
 0x239   : > { %v502_v4 = vadd.f32 %v1254_v58, %v501_v2 }
 0x23b   : > { %v506_v7 = vsel %vm505_vm9, %v1254_v58, %v502_v4 }
 0x23c   : > { %v575_v9 = vpop.f32.mrf.mxu0  ;;  %v511_v10 = vsel %vm508_vm10, %v510_v5, %v506_v7 }
 0x23d   : > { %v576_v11 = vadd.f32 %v575_v9, %v1488_v27  ;;  %v512_v12 = vmul.f32 %v1250_v44, %v511_v10 }
 0x23f   : > { %1167 = vmatmul.msk.f32.gmra.mxu2 %vm464_vm2, %v512_v12  ;;  %v581_v13 = vsel %vm464_vm2, %v576_v11, -inf }
 0x240   : > { %582 = vmax.xlane.f32.xlu2 %v581_v13 }
 0x243   : > { %v545_v14 = vpop.permute.xlu1 %544 }
 0x247   : > { %1171 = vmatmul.msk.f32.vlgmr.msrb.gmra.mxu2 %vm428_vm0, %v545_v14 }
 0x258   : > { %1230 = vrot.lane.b32.xlu2 %v1517_v26, %s1365_s29 }
 0x260   : > { %670 = vrot.lane.b32.xlu2 %v1456_v8, %s1367_s12 }
 0x268   : > { %792 = vrot.lane.b32.xlu2 %v1456_v8, %s1368_s13 }
 0x2b3   : > { %v583_v15 = vpop.xlane.xlu2 %582 }
 0x2b4   : > { %v587_v16 = vsub.f32 %v576_v11, %v583_v15 }
 0x2b6   : > { %v589_v17 = vmul.f32 1.442695, %v587_v16 }
 0x2b8   : > { %1255 = vpow2.f32 %v589_v17 }
 0x2ba   : > { %v1512_v22 = vpop.f32.mrf.mxu2 }
 0x2bb   : > { %v1231_v31 = vpop.permute.xlu2 %1230 }
 0x2bc   : > { %v1232_v32 = vunpack.i.l.bf16 %v1231_v31  ;;  %v1233_v33 = vunpack.i.h.bf16 %v1231_v31 }
 0x2be   : > { %v1256_v23 = vpop.eup %1255  ;;  %657 = vmatpush.msra.mxu2 %v1232_v32 }
 0x2bf   : > { %v593_v24 = vsel %vm464_vm2, %v1256_v23, 0.0 }
 0x2c0   : > { %594 = vadd.xlane.f32.xlu1 %v593_v24  ;;  %658 = vmatpush.msra.mxu2 %v1233_v33 }
 0x2c2   : > { %v1515_v25 = vpop.f32.mrf.mxu2 }
 0x2c3   : > { %v671_v46 = vpop.permute.xlu2 %670 }
 0x2ca   : > { %v578_v28 = vpop.f32.mrf.mxu2 }
 0x2cb   : > { %v579_v29 = vadd.f32 %v578_v28, %v1488_v27  ;;  %v793_v50 = vpop.permute.xlu2 %792 }
 0x2cd   : > { %v584_v30 = vsel %vm464_vm2, %v579_v29, -inf }
 0x2ce   : > { %585 = vmax.xlane.f32.xlu0 %v584_v30 }
 0x2d9   : > { %794 = vrot.lane.b32.xlu1 %v1451_v6, %s1368_s13 }
 0x2e1   : > { %790 = vrot.lane.b32.xlu1 %v1476_v21, %s1368_s13 }
 0x2e2   : > { %672 = vrot.lane.b32.xlu0 %v1451_v6, %s1367_s12 }
 0x2ea   : > { %666 = vrot.lane.b32.xlu0 %v1472_v20, %s1367_s12 }
 0x2f2   : > { %668 = vrot.lane.b32.xlu0 %v1476_v21, %s1367_s12 }
 0x333   : > { %v595_v8 = vpop.xlane.xlu1 %594 }
 0x334   : > { %1257 = vrcp.f32 %v595_v8  ;;  %v610_v37 = vand.u32 2147483648, %v595_v8  ;;  %v608_v6 = vand.u32 2147483647, %v595_v8  ;;  %vm604_vm12 = vweird.f32 %v595_v8 }
 0x336   : > { %v611_v41 = vor.u32 1.1754944e-38, %v610_v37  ;;  %vm609_vm14 = vcmp.eq.f32.partialorder %v608_v6, 8.507059e+37 }
 0x33a   : > { %v1258_v34 = vpop.eup %1257 }
 0x33b   : > { %v600_v35 = vmul.f32 %v1258_v34, %v595_v8  ;;  %vm605_vm11 = vweird.f32 %v1258_v34 }
 0x33c   : > { %vm606_vm13 = vmor %vm604_vm12, %vm605_vm11 }
 0x33d   : > { %v601_v36 = vsub.f32 1.0, %v600_v35 }
 0x33f   : > { %v602_v38 = vmul.f32 %v1258_v34, %v601_v36 }
 0x341   : > { %v603_v39 = vadd.f32 %v1258_v34, %v602_v38  ;;  %v586_v40 = vpop.xlane.xlu0 %585 }
 0x342   : > { %v588_v21 = vsub.f32 %v579_v29, %v586_v40 }
 0x343   : > { %v607_v42 = vsel %vm606_vm13, %v1258_v34, %v603_v39 }
 0x344   : > { %v612_v43 = vsel %vm609_vm14, %v611_v41, %v607_v42  ;;  %v591_v44 = vmul.f32 1.442695, %v588_v21 }
 0x345   : > { %v613_v45 = vmul.f32 %v1256_v23, %v612_v43 }
 0x346   : > { %1259 = vpow2.f32 %v591_v44 }
 0x347   : > { %1172 = vmatmul.msk.f32.vlgmr.msra.gmra.mxu2 %vm464_vm2, %v613_v45 }
 0x34b   : > { %v795_v47 = vpop.permute.xlu1 %794 }
 0x34c   : > { %v1260_v48 = vpop.eup %1259  ;;  %1180 = vmatpush.xpose.msk.msrb.mxu2 %vm428_vm0, %v795_v47 }
 0x34d   : > { %v596_v49 = vsel %vm464_vm2, %v1260_v48, 0.0 }
 0x34e   : > { %597 = vadd.xlane.f32.xlu2 %v596_v49 }
 0x350   : > { %1181 = vmatpush.xpose.msk.msrb.mxu2 %vm428_vm0, %v793_v50 }
 0x353   : > { %v791_v9 = vpop.permute.xlu1 %790 }
 0x354   : > { %v673_v51 = vpop.permute.xlu0 %672 }
 0x355   : > { %1174 = vmatpush.xpose.msk.msrb.mxu1 %vm428_vm0, %v673_v51 }
 0x359   : > { %1175 = vmatpush.xpose.msk.msrb.mxu1 %vm428_vm0, %v671_v46 }
 0x35c   : > { %v667_v52 = vpop.permute.xlu0 %666 }
 0x35d   : > { %1176 = vmatmul.msk.f32.vlgmr.msrb.gmra.mxu1 %vm428_vm0, %v667_v52 }
 0x364   : > { %v669_v53 = vpop.permute.xlu0 %668 }
 0x365   : > { %1177 = vmatmul.msk.f32.gmra.mxu1 %vm428_vm0, %v669_v53 }
 0x366   : > { %788 = vrot.lane.b32.xlu2 %v1472_v20, %s1368_s13 }
 0x3c1   : > { %v598_v54 = vpop.xlane.xlu2 %597 }
 0x3c2   : > { %1261 = vrcp.f32 %v598_v54  ;;  %v625_v58 = vand.u32 2147483648, %v598_v54  ;;  %v623_v60 = vand.u32 2147483647, %v598_v54  ;;  %vm619_vm1 = vweird.f32 %v598_v54 }
 0x3c4   : > { %v626_v62 = vor.u32 1.1754944e-38, %v625_v58  ;;  %vm624_vm4 = vcmp.eq.f32.partialorder %v623_v60, 8.507059e+37 }
 0x3c8   : > { %v1262_v55 = vpop.eup %1261 }
 0x3c9   : > { %v615_v56 = vmul.f32 %v1262_v55, %v598_v54  ;;  %vm620_vm15 = vweird.f32 %v1262_v55  ;;  %v789_v3 = vpop.permute.xlu2 %788 }
 0x3ca   : > { %vm621_vm3 = vmor %vm619_vm1, %vm620_vm15  ;;  %v660_v11 = vpop.f32.mrf.mxu2 }
 0x3cb   : > { %v616_v57 = vsub.f32 1.0, %v615_v56 }
 0x3cd   : > { %v617_v59 = vmul.f32 %v1262_v55, %v616_v57 }
 0x3cf   : > { %v618_v61 = vadd.f32 %v1262_v55, %v617_v59 }
 0x3d1   : > { %v622_v63 = vsel %vm621_vm3, %v1262_v55, %v618_v61 }
 0x3d2   : > { %v627_v0 = vsel %vm624_vm4, %v626_v62, %v622_v63 }
 0x3d3   : > { %v628_v1 = vmul.f32 %v1260_v48, %v627_v0 }
 0x3d5   : > { %1173 = vmatmul.msk.f32.gmra.mxu2 %vm464_vm2, %v628_v1 }
 0x3da   : > { %v699_v20 = vpop.f32.mrf.mxu1 }
 0x3db   : > { %v700_v2 = vadd.f32 %v699_v20, %v1488_v27 }
 0x3dd   : > { %1182 = vmatmul.msk.f32.vlgmr.msrb.gmra.mxu2 %vm428_vm0, %v789_v3  ;;  %v705_v4 = vsel %vm464_vm2, %v700_v2, -inf }
 0x3de   : > { %706 = vmax.xlane.f32.xlu2 %v705_v4 }
 0x3e2   : > { %v702_v5 = vpop.f32.mrf.mxu1 }
 0x3e3   : > { %v703_v7 = vadd.f32 %v702_v5, %v1488_v27 }
 0x3e5   : > { %1183 = vmatmul.msk.f32.gmra.mxu2 %vm428_vm0, %v791_v9  ;;  %v708_v10 = vsel %vm464_vm2, %v703_v7, -inf }
 0x3e6   : > { %709 = vmax.xlane.f32.xlu1 %v708_v10 }
 0x451   : > { %v707_v12 = vpop.xlane.xlu2 %706 }
 0x452   : > { %v711_v14 = vsub.f32 %v700_v2, %v707_v12 }
 0x454   : > { %v713_v15 = vmul.f32 1.442695, %v711_v14 }
 0x456   : > { %1263 = vpow2.f32 %v713_v15 }
 0x458   : > { %v663_v13 = vpop.f32.mrf.mxu2 }
 0x459   : > { %v710_v16 = vpop.xlane.xlu1 %709 }
 0x45a   : > { %v712_v24 = vsub.f32 %v703_v7, %v710_v16 }
 0x45c   : > { %v715_v29 = vmul.f32 1.442695, %v712_v24  ;;  %v1556_v30 = vpop.eup %1263 }
 0x45d   : > { %v717_v8 = vsel %vm464_vm2, %v1556_v30, 0.0 }
 0x45e   : > { %1265 = vpow2.f32 %v715_v29 }
 0x460   : > { %v821_v17 = vpop.f32.mrf.mxu2 }
 0x461   : > { %v822_v23 = vadd.f32 %v821_v17, %v1488_v27 }
 0x463   : > { %v827_v28 = vsel %vm464_vm2, %v822_v23, -inf }
 0x464   : > { %828 = vmax.xlane.f32.xlu0 %v827_v28  ;;  %v1562_v34 = vpop.eup %1265 }
 0x465   : > { %v720_v35 = vsel %vm464_vm2, %v1562_v34, 0.0 }
 0x468   : > { %v824_v31 = vpop.f32.mrf.mxu2 }
 0x469   : > { %v825_v32 = vadd.f32 %v824_v31, %v1488_v27 }
 0x46b   : > { %v830_v33 = vsel %vm464_vm2, %v825_v32, -inf }
 0x46c   : > { %831 = vmax.xlane.f32.xlu2 %v830_v33  ;;  %718 = vadd.xlane.f32.xlu0 %v717_v8 }
 0x474   : > { %721 = vadd.xlane.f32.xlu2 %v720_v35 }
 0x48c   : > { %1240 = vrot.lane.b32.xlu2 %v1517_v26, %s1368_s13 }
 0x494   : > { %914 = vrot.lane.b32.xlu2 %v663_v13, %s1368_s13 }
 0x4d7   : > { %v829_v27 = vpop.xlane.xlu0 %828 }
 0x4d8   : > { %v833_v36 = vsub.f32 %v822_v23, %v829_v27 }
 0x4da   : > { %v835_v37 = vmul.f32 1.442695, %v833_v36 }
 0x4dc   : > { %1267 = vpow2.f32 %v835_v37 }
 0x4df   : > { %v832_v38 = vpop.xlane.xlu2 %831  ;;  %v719_v47 = vpop.xlane.xlu0 %718 }
 0x4e0   : > { %v834_v6 = vsub.f32 %v825_v32, %v832_v38  ;;  %vm728_vm10 = vweird.f32 %v719_v47  ;;  %v734_v7 = vand.u32 2147483648, %v719_v47  ;;  %v732_v12 = vand.u32 2147483647, %v719_v47 }
 0x4e2   : > { %v1268_v39 = vpop.eup %1267  ;;  %v837_v40 = vmul.f32 1.442695, %v834_v6  ;;  %v735_v16 = vor.u32 1.1754944e-38, %v734_v7  ;;  %vm733_vm1 = vcmp.eq.f32.partialorder %v732_v12, 8.507059e+37 }
 0x4e3   : > { %v839_v41 = vsel %vm464_vm2, %v1268_v39, 0.0 }
 0x4e4   : > { %1269 = vpow2.f32 %v837_v40  ;;  %840 = vadd.xlane.f32.xlu1 %v839_v41  ;;  %v957_v40 = vld [vmem:[#allocation4 + $0x78] sm:$0xff]  ;;  %v956_v41 = vld [vmem:[#allocation4 + $0x70] sm:$0xff] }
 0x4e5   : > { %1271 = vrcp.f32 %v719_v47 }
 0x4e7   : > { %v1570_v21 = vpop.xlane.xlu2 %721 }
 0x4e8   : > { %v749_v8 = vand.u32 2147483648, %v1570_v21  ;;  %vm743_vm4 = vweird.f32 %v1570_v21  ;;  %v747_v36 = vand.u32 2147483647, %v1570_v21 }
 0x4ea   : > { %v1572_v42 = vpop.eup %1269  ;;  %v750_v38 = vor.u32 1.1754944e-38, %v749_v8 }
 0x4eb   : > { %v842_v43 = vsel %vm464_vm2, %v1572_v42, 0.0  ;;  %v1272_v49 = vpop.eup %1271 }
 0x4ec   : > { %843 = vadd.xlane.f32.xlu0 %v842_v43  ;;  %v724_v50 = vmul.f32 %v1272_v49, %v719_v47  ;;  %vm729_vm9 = vweird.f32 %v1272_v49 }
 0x4ed   : > { %vm730_vm12 = vmor %vm728_vm10, %vm729_vm9 }
 0x4ee   : > { %v725_v54 = vsub.f32 1.0, %v724_v50  ;;  %v948_v50 = vld [vmem:[#allocation4 + $0x30] sm:$0xff] }
 0x4ef   : > { %v1241_v44 = vpop.permute.xlu2 %1240 }
 0x4f0   : > { %v1243_v45 = vunpack.i.h.bf16 %v1241_v44  ;;  %v1242_v46 = vunpack.i.l.bf16 %v1241_v44  ;;  %v726_v59 = vmul.f32 %v1272_v49, %v725_v54  ;;  %v952_v44 = vld [vmem:[#allocation4 + $0x50] sm:$0xff] }
 0x4f1   : > { %v944_v54 = vld [vmem:[#allocation4 + $0x10] sm:$0xff] }
 0x4f2   : > { %901 = vmatpush.msra.mxu1 %v1242_v46  ;;  %v727_v5 = vadd.f32 %v1272_v49, %v726_v59 }
 0x4f4   : > { %902 = vmatpush.msra.mxu1 %v1243_v45  ;;  %v731_v15 = vsel %vm730_vm12, %v1272_v49, %v727_v5  ;;  %v951_v45 = vld [vmem:[#allocation4 + $0x48] sm:$0xff]  ;;  %v949_v49 = vld [vmem:[#allocation4 + $0x38] sm:$0xff] }
 0x4f5   : > { %v736_v31 = vsel %vm733_vm1, %v735_v16, %v731_v15 }
 0x4f6   : > { %v737_v27 = vmul.f32 %v1556_v30, %v736_v31  ;;  %v954_v30 = vld [vmem:[#allocation4 + $0x60] sm:$0xff] }
 0x4fd   : > { %1235 = vrot.lane.b32.xlu1 %v1517_v26, %s1367_s12 }
 0x500   : > { %912 = vrot.lane.b32.xlu0 %v660_v11, %s1368_s13 }
 0x557   : > { %v841_v48 = vpop.xlane.xlu1 %840 }
 0x558   : > { %1273 = vrcp.f32 %v841_v48  ;;  %v856_v57 = vand.u32 2147483648, %v841_v48  ;;  %v854_v26 = vand.u32 2147483647, %v841_v48  ;;  %vm850_vm6 = vweird.f32 %v841_v48 }
 0x559   : > { %1275 = vrcp.f32 %v1570_v21 }
 0x55a   : > { %v857_v63 = vor.u32 1.1754944e-38, %v856_v57  ;;  %vm855_vm8 = vcmp.eq.f32.partialorder %v854_v26, 8.507059e+37 }
 0x55e   : > { %v1274_v51 = vpop.eup %1273 }
 0x55f   : > { %v846_v52 = vmul.f32 %v1274_v51, %v841_v48  ;;  %v844_v53 = vpop.xlane.xlu0 %843  ;;  %v1276_v56 = vpop.eup %1275  ;;  %vm851_vm5 = vweird.f32 %v1274_v51  ;;  %v950_v48 = vld [vmem:[#allocation4 + $0x40] sm:$0xff] }
 0x560   : > { %1277 = vrcp.f32 %v844_v53  ;;  %v739_v60 = vmul.f32 %v1276_v56, %v1570_v21  ;;  %vm852_vm7 = vmor %vm850_vm6, %vm851_vm5  ;;  %v871_v9 = vand.u32 2147483648, %v844_v53  ;;  %v869_v11 = vand.u32 2147483647, %v844_v53  ;;  %v953_v21 = vld [vmem:[#allocation4 + $0x58] sm:$0xff] }
 0x561   : > { %v847_v55 = vsub.f32 1.0, %v846_v52  ;;  %vm865_vm13 = vweird.f32 %v844_v53  ;;  %vm744_vm3 = vweird.f32 %v1276_v56  ;;  %vm748_vm6 = vcmp.eq.f32.partialorder %v747_v36, 8.507059e+37  ;;  %v946_v52 = vld [vmem:[#allocation4 + $0x20] sm:$0xff] }
 0x562   : > { %v740_v2 = vsub.f32 1.0, %v739_v60  ;;  %v872_v17 = vor.u32 1.1754944e-38, %v871_v9  ;;  %vm870_vm15 = vcmp.eq.f32.partialorder %v869_v11, 8.507059e+37  ;;  %vm745_vm5 = vmor %vm743_vm4, %vm744_vm3 }
 0x563   : > { %v848_v58 = vmul.f32 %v1274_v51, %v847_v55  ;;  %v943_v55 = vld [vmem:[#allocation4 + $0x8] sm:$0xff] }
 0x564   : > { %v741_v13 = vmul.f32 %v1276_v56, %v740_v2 }
 0x565   : > { %v849_v61 = vadd.f32 %v1274_v51, %v848_v58 }
 0x566   : > { %v1278_v62 = vpop.eup %1277  ;;  %v742_v33 = vadd.f32 %v1276_v56, %v741_v13 }
 0x567   : > { %v853_v0 = vsel %vm852_vm7, %v1274_v51, %v849_v61  ;;  %v861_v1 = vmul.f32 %v1278_v62, %v844_v53  ;;  %vm866_vm11 = vweird.f32 %v1278_v62  ;;  %v947_v51 = vld [vmem:[#allocation4 + $0x28] sm:$0xff]  ;;  %v945_v53 = vld [vmem:[#allocation4 + $0x18] sm:$0xff]  ;;  %vm939_vm7 = vcmask 785408  }
 0x568   : > { %v858_v20 = vsel %vm855_vm8, %v857_v63, %v853_v0  ;;  %vm867_vm14 = vmor %vm865_vm13, %vm866_vm11  ;;  %v746_v37 = vsel %vm745_vm5, %v1276_v56, %v742_v33  ;;  %v942_v56 = vld [vmem:[#allocation4] sm:$0xff] }
 0x569   : > { %v862_v3 = vsub.f32 1.0, %v861_v1  ;;  %v859_v4 = vmul.f32 %v1268_v39, %v858_v20  ;;  %v751_v6 = vsel %vm748_vm6, %v750_v38, %v746_v37 }
 0x56a   : > { %v752_v39 = vmul.f32 %v1562_v34, %v751_v6 }
 0x56b   : > { %v863_v10 = vmul.f32 %v1278_v62, %v862_v3  ;;  %1184 = vmatmul.msk.f32.vlgmr.msra.gmra.mxu1 %vm464_vm2, %v859_v4  ;;  %v1244_v3 = vld [vmem:[%s1623_s5] ss:$0 sm:$0xff] }
 0x56d   : > { %v864_v14 = vadd.f32 %v1278_v62, %v863_v10 }
 0x56f   : > { %v1236_v23 = vpop.permute.xlu1 %1235  ;;  %v868_v24 = vsel %vm867_vm14, %v1278_v62, %v864_v14  ;;  %v915_v62 = vpop.permute.xlu2 %914 }
 0x570   : > { %v1237_v28 = vunpack.i.l.bf16 %v1236_v23  ;;  %v873_v29 = vsel %vm870_vm15, %v872_v17, %v868_v24  ;;  %v1238_v35 = vunpack.i.h.bf16 %v1236_v23  ;;  %v935_v63 = vsel %vm428_vm0, %v1515_v25, %v915_v62 }
 0x571   : > { %v874_v32 = vmul.f32 %v1572_v42, %v873_v29  ;;  %v955_v42 = vld [vmem:[#allocation4 + $0x68] sm:$0xff]  ;;  %v1369_v25 = vmov 128.0  }
 0x572   : > { %779 = vmatpush.msra.mxu3 %v1237_v28  ;;  %v913_v57 = vpop.permute.xlu0 %912  ;;  %1279 = vrcp.f32 %v1369_v25 }
 0x573   : > { %1185 = vmatmul.msk.f32.gmra.mxu1 %vm464_vm2, %v874_v32  ;;  %v934_v26 = vsel %vm428_vm0, %v1512_v22, %v913_v57 }
 0x574   : > { %780 = vmatpush.msra.mxu3 %v1238_v35 }
 0x575   : > { %1178 = vmatmul.msk.f32.vlgmr.msra.gmra.mxu3 %vm464_vm2, %v737_v27 }
 0x576   : > { %962 = vmatpush.msrb.mxu3 %v957_v40 }
 0x578   : > { %963 = vmatpush.msrb.mxu3 %v956_v41  ;;  %v1280_v11 = vpop.eup %1279 }
 0x579   : > { %v994_v12 = vmul.f32 128.0, %v1280_v11  ;;  %vm998_vm0 = vweird.f32 %v1280_v11 }
 0x57a   : > { %964 = vmatpush.msrb.mxu3 %v955_v42 }
 0x57b   : > { %v995_v13 = vsub.f32 1.0, %v994_v12 }
 0x57c   : > { %965 = vmatpush.msrb.mxu3 %v954_v30 }
 0x57d   : > { %1179 = vmatmul.msk.f32.gmra.mxu3 %vm464_vm2, %v752_v39  ;;  %vm936_vm2 = vcmask 523264   ;;  %v996_v14 = vmul.f32 %v1280_v11, %v995_v13 }
 0x57e   : > { %966 = vmatpush.msrb.mxu3 %v953_v21  ;;  %v1245_v21 = vld [vmem:[%s1624_s6] ss:$0 sm:$0xff] }
 0x57f   : > { %v997_v15 = vadd.f32 %v1280_v11, %v996_v14 }
 0x580   : > { %967 = vmatpush.msrb.mxu3 %v952_v44 }
 0x581   : > { %v999_v16 = vsel %vm998_vm0, %v1280_v11, %v997_v15 }
 0x582   : > { %968 = vmatpush.msrb.mxu3 %v951_v45  ;;  %v1246_v45 = vld [vmem:[%s1625_s7] ss:$0 sm:$0xff] }
 0x584   : > { %969 = vmatpush.msrb.mxu3 %v950_v48 }
 0x586   : > { %970 = vmatpush.msrb.mxu3 %v949_v49 }
 0x588   : > { %971 = vmatpush.msrb.mxu3 %v948_v50 }
 0x58a   : > { %972 = vmatpush.msrb.mxu3 %v947_v51 }
 0x58c   : > { %973 = vmatpush.msrb.mxu3 %v946_v52 }
 0x58e   : > { %974 = vmatpush.msrb.mxu3 %v945_v53 }
 0x590   : > { %975 = vmatpush.msrb.mxu3 %v944_v54 }
 0x592   : > { %976 = vmatpush.msrb.mxu3 %v943_v55 }
 0x594   : > { %977 = vmatpush.msrb.mxu3 %v942_v56 }
 0x5e8   : > { %v904_v43 = vpop.f32.mrf.mxu1 }
 0x5e9   : > { %928 = vrot.lane.b32.xlu0 %v904_v43, %s1365_s29 }
 0x5f0   : > { %v907_v34 = vpop.f32.mrf.mxu1 }
 0x5f1   : > { %930 = vrot.lane.b32.xlu0 %v907_v34, %s1365_s29 }
 0x5f8   : > { %v782_v46 = vpop.f32.mrf.mxu3 }
 0x5f9   : > { %920 = vrot.lane.b32.xlu1 %v782_v46, %s1367_s12 }
 0x600   : > { %v785_v47 = vpop.f32.mrf.mxu3 }
 0x601   : > { %922 = vrot.lane.b32.xlu1 %v785_v47, %s1367_s12 }
 0x65b   : > { %v929_v58 = vpop.permute.xlu0 %928 }
 0x663   : > { %v931_v1 = vpop.permute.xlu0 %930 }
 0x66b   : > { %v921_v59 = vpop.permute.xlu1 %920 }
 0x66c   : > { %v937_v60 = vsel %vm936_vm2, %v934_v26, %v921_v59 }
 0x66d   : > { %v940_v61 = vsel %vm939_vm7, %v937_v60, %v929_v58 }
 0x66e   : > { %978 = vmatmul.f32.vlgmr.msrb.gmra.mxu3 %v940_v61 }
 0x673   : > { %v923_v0 = vpop.permute.xlu1 %922 }
 0x674   : > { %v938_v20 = vsel %vm936_vm2, %v935_v63, %v923_v0 }
 0x675   : > { %v941_v2 = vsel %vm939_vm7, %v938_v20, %v931_v1 }
 0x676   : > { %981 = vmatmul.f32.gmra.mxu3 %v941_v2 }
 0x6f1   : > { %v979_v4 = vpop.f32.mrf.mxu3 }
 0x6f2   : > { %v980_v5 = vadd.f32 %v1244_v3, %v979_v4 }
 0x6f4   : > { %v985_v22 = vadd.f32 %v980_v5, %v1466_v18 }
 0x6f6   : > { %989 = vadd.xlane.f32.xlu2 %v985_v22 }
 0x6f9   : > { %v982_v7 = vpop.f32.mrf.mxu3 }
 0x6fa   : > { %v983_v9 = vadd.f32 %v1244_v3, %v982_v7 }
 0x6fc   : > { %v986_v10 = vadd.f32 %v983_v9, %v1469_v19 }
 0x6fe   : > { %991 = vadd.xlane.f32.xlu1 %v986_v10 }
 0x769   : > { %v990_v17 = vpop.xlane.xlu2 %989 }
 0x76a   : > { %v1000_v23 = vmul.f32 %v999_v16, %v990_v17 }
 0x76c   : > { %v1002_v24 = vsub.f32 %v985_v22, %v1000_v23 }
 0x76e   : > { %v1004_v28 = vmul.f32 %v1002_v24, %v1002_v24 }
 0x770   : > { %1006 = vadd.xlane.f32.xlu0 %v1004_v28 }
 0x771   : > { %v992_v18 = vpop.xlane.xlu1 %991 }
 0x772   : > { %v1001_v29 = vmul.f32 %v999_v16, %v992_v18 }
 0x774   : > { %v1003_v31 = vsub.f32 %v986_v10, %v1001_v29 }
 0x776   : > { %v1005_v32 = vmul.f32 %v1003_v31, %v1003_v31 }
 0x778   : > { %1008 = vadd.xlane.f32.xlu2 %v1005_v32 }
 0x7e3   : > { %v1007_v19 = vpop.xlane.xlu0 %1006 }
 0x7e4   : > { %v1010_v33 = vmul.f32 %v1007_v19, %v999_v16 }
 0x7e6   : > { %v1012_v8 = vadd.f32 1e-08, %v1010_v33 }
 0x7e8   : > { %1281 = vrsqrt.f32 %v1012_v8  ;;  %vm1020_vm9 = vweird.f32 %v1012_v8 }
 0x7eb   : > { %v1009_v35 = vpop.xlane.xlu2 %1008 }
 0x7ec   : > { %v1011_v27 = vmul.f32 %v1009_v35, %v999_v16 }
 0x7ee   : > { %v1282_v36 = vpop.eup %1281  ;;  %v1013_v37 = vadd.f32 1e-08, %v1011_v27 }
 0x7ef   : > { %v1015_v38 = vmul.f32 %v1282_v36, %v1012_v8  ;;  %vm1021_vm8 = vweird.f32 %v1282_v36 }
 0x7f0   : > { %1283 = vrsqrt.f32 %v1013_v37  ;;  %vm1022_vm10 = vmor %vm1020_vm9, %vm1021_vm8  ;;  %vm1030_vm12 = vweird.f32 %v1013_v37 }
 0x7f1   : > { %v1016_v6 = vmul.f32 %v1282_v36, %v1015_v38 }
 0x7f3   : > { %v1017_v39 = vmul.f32 0.5, %v1016_v6 }
 0x7f5   : > { %v1018_v40 = vsub.f32 1.5, %v1017_v39 }
 0x7f6   : > { %v1284_v41 = vpop.eup %1283 }
 0x7f7   : > { %v1019_v42 = vmul.f32 %v1282_v36, %v1018_v40  ;;  %v1025_v30 = vmul.f32 %v1284_v41, %v1013_v37  ;;  %vm1031_vm11 = vweird.f32 %v1284_v41 }
 0x7f8   : > { %vm1032_vm13 = vmor %vm1030_vm12, %vm1031_vm11 }
 0x7f9   : > { %v1023_v43 = vsel %vm1022_vm10, %v1282_v36, %v1019_v42  ;;  %v1026_v44 = vmul.f32 %v1284_v41, %v1025_v30 }
 0x7fa   : > { %v1034_v34 = vmul.f32 %v1023_v43, %v1002_v24 }
 0x7fb   : > { %v1027_v46 = vmul.f32 0.5, %v1026_v44 }
 0x7fc   : > { %v1039_v47 = vmul.f32 %v1245_v21, %v1034_v34 }
 0x7fd   : > { %v1028_v48 = vsub.f32 1.5, %v1027_v46 }
 0x7fe   : > { %v1044_v49 = vadd.f32 %v1246_v45, %v1039_v47 }
 0x7ff   : > { %v1029_v50 = vmul.f32 %v1284_v41, %v1028_v48 }
 0x800   : > { %1046 = vst [vmem:[%s373_s22] sm:$0xff] %v1044_v49 }
 0x801   : > { %v1033_v51 = vsel %vm1032_vm13, %v1284_v41, %v1029_v50 }
 0x802   : > { %v1035_v52 = vmul.f32 %v1033_v51, %v1003_v31 }
 0x804   : > { %v1040_v53 = vmul.f32 %v1245_v21, %v1035_v52 }
 0x806   : > { %v1045_v54 = vadd.f32 %v1246_v45, %v1040_v53 }
 0x808   : > { %1047 = vst [vmem:[%s373_s22 + $0x8] sm:$0xff] %v1045_v54 }
 0x809 PF: > { %s20_s27 = sadd.s32 1, %s1359_s27  }
 0x80a   : > { %p17_p7 = scmp.ge.s32.totalorder %s20_s27, 4  }
 0x80c   :  { %19 = sbr.rel (!%p17_p7) target bundleno = 2 (0x2), region = 97 }
 0x811   :  { %1069 = vsyncpa [#allocation3], 1 }
 0x812   :  { %1071 = vsyncpa [#allocation3 + $0x1], 1 }
 0x813   :  { %1072 = vsyncpa [#allocation5], 1 }

// kernel: decoder_forward.8
= control target key start
LH: loop header
LB: loop body
LE: loop exit
PB: predicated region body
PF: predicated region fallthrough
CT: control target
= control target key end

     0   :  { %13 = vsyncpa [#allocation3], 0  ;;  %s1976_s0 = inlined_call_operand.hbm [shape: f32[2,16,128], index: 0, kind: input, shape index: {}]   ;;  %s1977_s1 = inlined_call_operand.vmem [shape: f32[2,16,1], index: 1, kind: input, shape index: {}]   ;;  %s1978_s2 = inlined_call_operand.vmem [shape: f32[2,1,16], index: 2, kind: input, shape index: {}]   ;;  %s1979_s3 = inlined_call_operand.hbm [shape: f32[128,384], index: 3, kind: input, shape index: {}]   ;;  %s1980_s4 = inlined_call_operand.hbm [shape: f32[128,128], index: 4, kind: input, shape index: {}]   ;;  %s1981_s5 = inlined_call_operand.vmem [shape: f32[1,128], index: 5, kind: input, shape index: {}]   ;;  %s1982_s6 = inlined_call_operand.vmem [shape: f32[1,128], index: 6, kind: input, shape index: {}]   ;;  %s1983_s7 = inlined_call_operand.vmem [shape: f32[1,128], index: 7, kind: input, shape index: {}]   ;;  %s1984_s8 = inlined_call_operand.vmem [shape: f32[2,16,128], index: 8, kind: output, shape index: {}]  }
   0x1   :  { %15 = vsyncpa [#allocation3 + $0x1], 0 }
   0x2   :  { %16 = vsyncpa [#allocation5], 0  ;;  %s1640_s27 = smov 0   ;;  %s1642_s28 = smov 0  }
   0x3   :  { %s1644_s29 = smov 0   ;;  %s1646_s30 = smov 0  }
   0x4 LB: > { %s1659_s9 = sadd.s32 4294967295, %s1581_s30   ;;  %p42_p0 = scmp.ne.s32.totalorder %s1573_s28, %s1569_s27  ;;  %s1581_s30 = sphi %s1646_s30, %s1997_s30   ;;  %s1577_s29 = sphi %s1644_s29, %s1996_s29   ;;  %s1573_s28 = sphi %s1642_s28, %s1995_s28   ;;  %s1569_s27 = sphi %s1640_s27, %s1994_s27  }
   0x5   : > { %p43_p1 = scmp.eq.s32.totalorder %s1659_s9, 0  ;;  %p1280_p2 = scmp.ge.s32.totalorder %s1581_s30, 1 }
   0x6   : > { %p236_p3 = scmp.lt.s32.totalorder %s1581_s30, 3  ;;  %s247_s13 = sshll.u32 %s1979_s3, 4  ;;  %s248_s13 = int_to_ptr.hbm [resolvable:$true] %s247_s13 }
   0x7   : > { %p1667_p4 = por %p43_p1, %p42_p0  ;;  %s1583_s15 = smov [#allocation4]  }
   0x8   : > { %p1674_p5 = pnand %p1280_p2, %p236_p3  ;;  %s249_s16 = sshll.u32 %s1583_s15, 4  ;;  %s250_s16 = int_to_ptr.vmem [resolvable:$true] %s249_s16 }
   0x9   : > { %s261_s19 = sshll.u32 %s1980_s4, 4  ;;  %s1584_s20 = smov 384   ;;  %s262_s19 = int_to_ptr.hbm [resolvable:$true] %s261_s19 }
   0xa   : > { %p1336_p6 = pneg %p1674_p5  ;;  %s1585_s21 = smov 24  }
   0xb   : > { %s1586_s22 = smov [#allocation6]   ;;  %s1985_s24 = smov 128  }
   0xc   : > { %p1337_p7 = pnand %p1336_p6, %p43_p1  ;;  %s263_s23 = sshll.u32 %s1586_s22, 4  ;;  %s264_s23 = int_to_ptr.vmem [resolvable:$true] %s263_s23 }
   0xd   : > { %s1588_s25 = smov 8   ;;  %s1689_s26 = sadd.s32 1, %s1581_s30  }
   0xe   : > { %1339 = dma.hbm_to_vmem [thread:$0]  (!%p1337_p7), %s248_s13, 6144, %s250_s16, [#allocation5], %s1584_s20, %s1584_s20, %s1585_s21  }
   0xf   : > { %1342 = dma.hbm_to_vmem [thread:$0]  (!%p1337_p7), %s262_s19, 2048, %s264_s23, [#allocation5], %s1985_s24, %s1985_s24, %s1588_s25  }
  0x10   : > { %s26_s27 = ssub.s32 %s1581_s30, %s1689_s26  ;;  %s29_s11 = sadd.s32 1, %s1577_s29 }
  0x11   : > { %p27_p8 = scmp.eq.s32.totalorder %s26_s27, 0  ;;  %p36_p9 = scmp.ne.s32.totalorder %s1577_s29, %s1573_s28 }
  0x12   : > { %p37_p10 = scmp.eq.s32.totalorder %s1581_s30, 0  ;;  %s286_s13 = sand.u32 1, %s1577_s29  }
  0x13   : > { %s1698_s12 = scalar_select %p27_p8, %s1577_s29, %s29_s11  }
  0x14   : > { %p38_p11 = por %p37_p10, %p36_p9  ;;  %s1323_s15 = sshll.u32 %s1581_s30, 4 }
  0x15   : > { %p1349_p12 = scmp.lt.s32.totalorder %s1581_s30, 2  ;;  %s1284_s16 = sshll.u32 %s286_s13, 4 }
  0x16   : > { %s295_s20 = scalar_lea.hbm %s1976_s0, %s1323_s15  ;;  %s290_s21 = scalar_lea.vmem [#allocation2], %s1284_s16 }
  0x17   : > { %s296_s19 = sshll.u32 %s295_s20, 4  ;;  %s298_s22 = sshll.u32 %s290_s21, 4  ;;  %s297_s19 = int_to_ptr.hbm [resolvable:$true] %s296_s19  ;;  %s299_s22 = int_to_ptr.vmem [resolvable:$true] %s298_s22 }
  0x18   : > { %p1706_p13 = pnand %p1349_p12, %p38_p11  ;;  %s287_s27 = scalar_lea.sflag [#allocation3], %s286_s13 }
  0x19   : > { %s1513_s11 = sshra.s32 %s297_s19, 4  ;;  %s1520_s16 = scalar_lea.hbm %s1976_s0, 32  ;;  %s1514_s11 = int_to_ptr.hbm [resolvable:$true] %s1513_s11 }
  0x1a   : > { %s1515_s24 = scalar_lea.hbm %s1514_s11, 16  ;;  %p1517_p2 = pneg %p1706_p13 }
  0x1b   : > { %p1516_p0 = scmp.ne.s32.totalorder %s1514_s11, %s1515_s24  ;;  %p1521_p7 = scmp.lt.s32.totalorder %s1514_s11, %s1976_s0 }
  0x1c   : > { %p1522_p8 = scmp.lt.s32.totalorder %s1520_s16, %s1515_s24 }
  0x1d   : > { %p1518_p3 = pnand %p1517_p2, %p1516_p0 }
  0x1e   : > { %p1523_p9 = por %p1522_p8, %p1521_p7 }
  0x1f   : > { %p1519_p6 = pneg %p1518_p3 }
  0x21   : > { %p1524_p10 = pnand %p1523_p9, %p1519_p6 }
  0x23   : > { %1527 = shalt.err (!%p1524_p10)
}
  0x24   : > { %s1989_s13 = smov 128   ;;  %324 = sbr.rel (%p1674_p5) target bundleno = 1710 (0x6ae), region = 52 }
  0x25   : > { %1346 = dma.hbm_to_vmem [thread:$0]  (!%p1706_p13), %s297_s19, 256, %s299_s22, %s287_s27, %s1989_s13, %s1989_s13, %s1588_s25  }
  0x26   : > { %s326_s20 = sand.u32 (!%p1674_p5), 1, %s1573_s28  }
  0x27   : > { %s1726_s21 = sshll.u32 (!%p1674_p5), %s326_s20, 4  ;;  %s327_s11 = scalar_lea.sflag (!%p1674_p5), [#allocation3], %s326_s20 }
  0x28   : > { %s330_s24 = scalar_lea.vmem (!%p1674_p5), [#allocation2], %s1726_s21 }
  0x29   : > { %1560 = dma.done.wait (%p1667_p4), %s327_s11, 256  }
  0x2a   : > { %1562 = vsyncadd (%p1667_p4), %s327_s11, 4294967040 }
  0x2b   : > { %1564 = dma.done.wait (%p43_p1), [#allocation5], 8192  }
  0x2c   : > { %1566 = vsyncadd (%p43_p1), [#allocation5], 4294959104  ;;  %v443_v0 = vld [vmem:[#allocation4 + $0x170] sm:$0xff]  ;;  %v440_v1 = vld [vmem:[#allocation4 + $0x158] sm:$0xff]  ;;  %p382_p4 = scmp.lt.s32.totalorder %s1659_s9, 1  ;;  %v1589_v30 = vmov 0  }
  0x2d   : > { %468 = vmatpush.msra.mxu1 %v443_v0  ;;  %v437_v2 = vld [vmem:[#allocation4 + $0x140] sm:$0xff]  ;;  %v442_v3 = vld [vmem:[#allocation4 + $0x168] sm:$0xff]  ;;  %v439_v4 = vld [vmem:[#allocation4 + $0x150] sm:$0xff]  ;;  %1396 = vset.pattern.permute.xlu0 %v1589_v30  ;;  %s1590_s22 = smov 96   ;;  %vm552_vm2 = vcmask 261120   ;;  %s1591_s23 = smov 64  }
  0x2e   : > { %445 = vmatpush.msra.mxu0 %v442_v3  ;;  %v434_v5 = vld [vmem:[#allocation4 + $0x128] sm:$0xff]  ;;  %v436_v6 = vld [vmem:[#allocation4 + $0x138] sm:$0xff]  ;;  %v431_v7 = vld [vmem:[#allocation4 + $0x110] sm:$0xff]  ;;  %s1999_s9 = smov (!%p382_p4, %s1659_s9), 1  ;;  %s1592_s27 = smov 32   ;;  %v517_v3 = vlaneseq  ;;  %vm588_vm13 = vcmask 130048  }
  0x2f   : > { %469 = vmatpush.msra.mxu1 %v440_v1  ;;  %v433_v8 = vld [vmem:[#allocation4 + $0x120] sm:$0xff]  ;;  %v428_v9 = vld [vmem:[#allocation4 + $0xf8] sm:$0xff]  ;;  %v430_v10 = vld [vmem:[#allocation4 + $0x108] sm:$0xff]  ;;  %s1324_s10 = sshll.u32 %s1999_s9, 4  ;;  %s389_s16 = scalar_lea.vmem %s1978_s2, %s1999_s9 }
  0x30   : > { %446 = vmatpush.msra.mxu0 %v439_v4  ;;  %v425_v11 = vld [vmem:[#allocation4 + $0xe0] sm:$0xff]  ;;  %v427_v12 = vld [vmem:[#allocation4 + $0xf0] sm:$0xff]  ;;  %v444_v13 = vld [vmem:[#allocation4 + $0x178] sm:$0xff]  ;;  %s1747_s19 = scalar_lea.vmem %s1977_s1, %s1324_s10  ;;  %v521_v4 = vand.u32 127, %v517_v3  ;;  %s394_s25 = scalar_lea.vmem %s1984_s8, %s1324_s10 }
  0x31   : > { %470 = vmatpush.msra.mxu1 %v437_v2  ;;  %v441_v14 = vld [vmem:[#allocation4 + $0x160] sm:$0xff]  ;;  %v422_v15 = vld [vmem:[#allocation4 + $0xc8] sm:$0xff]  ;;  %v424_v16 = vld [vmem:[#allocation4 + $0xd8] sm:$0xff]  ;;  %491 = vmatpush.msra.mxu2 %v444_v13 }
  0x32   : > { %447 = vmatpush.msra.mxu0 %v436_v6  ;;  %v438_v17 = vld [vmem:[#allocation4 + $0x148] sm:$0xff]  ;;  %v419_v18 = vld [vmem:[#allocation4 + $0xb0] sm:$0xff]  ;;  %v421_v19 = vld [vmem:[#allocation4 + $0xc0] sm:$0xff]  ;;  %v518_v6 = vshrl.u32 %v517_v3, 7 }
  0x33   : > { %471 = vmatpush.msra.mxu1 %v434_v5  ;;  %492 = vmatpush.msra.mxu2 %v441_v14  ;;  %v435_v20 = vld [vmem:[#allocation4 + $0x130] sm:$0xff]  ;;  %v416_v21 = vld [vmem:[#allocation4 + $0x98] sm:$0xff]  ;;  %v418_v22 = vld [vmem:[#allocation4 + $0xa8] sm:$0xff] }
  0x34   : > { %448 = vmatpush.msra.mxu0 %v433_v8  ;;  %v432_v23 = vld [vmem:[#allocation4 + $0x118] sm:$0xff]  ;;  %v413_v24 = vld [vmem:[#allocation4 + $0x80] sm:$0xff]  ;;  %v415_v25 = vld [vmem:[#allocation4 + $0x90] sm:$0xff]  ;;  %vm540_vm6 = vcmp.le.s32.totalorder %v521_v4, %v518_v6  ;;  %v1593_v8 = vmov 0.0  }
  0x35   : > { %472 = vmatpush.msra.mxu1 %v431_v7  ;;  %493 = vmatpush.msra.mxu2 %v438_v17  ;;  %v429_v26 = vld [vmem:[#allocation4 + $0x100] sm:$0xff]  ;;  %v410_v28 = vld [vmem:[#allocation4 + $0x68] sm:$0xff]  ;;  %v412_v29 = vld [vmem:[#allocation4 + $0x78] sm:$0xff] }
  0x36   : > { %449 = vmatpush.msra.mxu0 %v430_v10  ;;  %v515_v27 = vld [vmem:[%s1747_s19] sm:$0xff]  ;;  %v426_v31 = vld [vmem:[#allocation4 + $0xe8] sm:$0xff]  ;;  %v407_v33 = vld [vmem:[#allocation4 + $0x50] sm:$0xff]  ;;  %v519_v10 = vadd.s32 8, %v518_v6 }
  0x37   : > { %473 = vmatpush.msra.mxu1 %v428_v9  ;;  %494 = vmatpush.msra.mxu2 %v435_v20  ;;  %vm523_vm0 = vcmp.gt.f32.partialorder %v515_v27, 0.5  ;;  %v409_v34 = vld [vmem:[#allocation4 + $0x60] sm:$0xff]  ;;  %v423_v35 = vld [vmem:[#allocation4 + $0xd0] sm:$0xff]  ;;  %v404_v36 = vld [vmem:[#allocation4 + $0x38] sm:$0xff] }
  0x38   : > { %450 = vmatpush.msra.mxu0 %v427_v12  ;;  %v528_v32 = vsel %vm523_vm0, 1, %v1589_v30  ;;  %v406_v37 = vld [vmem:[#allocation4 + $0x48] sm:$0xff]  ;;  %v420_v38 = vld [vmem:[#allocation4 + $0xb8] sm:$0xff]  ;;  %v401_v39 = vld [vmem:[#allocation4 + $0x20] sm:$0xff]  ;;  %vm541_vm10 = vcmp.le.s32.totalorder %v521_v4, %v519_v10 }
  0x39   : > { %474 = vmatpush.msra.mxu1 %v425_v11  ;;  %495 = vmatpush.msra.mxu2 %v432_v23  ;;  %v403_v40 = vld [vmem:[#allocation4 + $0x30] sm:$0xff]  ;;  %v417_v41 = vld [vmem:[#allocation4 + $0xa0] sm:$0xff]  ;;  %v398_v42 = vld [vmem:[#allocation4 + $0x8] sm:$0xff] }
  0x3a   : > { %451 = vmatpush.msra.mxu0 %v424_v16  ;;  %531 = vperm.xlu0 %1396, %v528_v32   ;;  %v400_v43 = vld [vmem:[#allocation4 + $0x18] sm:$0xff]  ;;  %v1754_v44 = vld [vmem:[%s330_s24] sm:$0xff]  ;;  %v414_v45 = vld [vmem:[#allocation4 + $0x88] sm:$0xff] }
  0x3b   : > { %475 = vmatpush.msra.mxu1 %v422_v15  ;;  %496 = vmatpush.msra.mxu2 %v429_v26  ;;  %v397_v46 = vld [vmem:[#allocation4] sm:$0xff]  ;;  %v411_v47 = vld [vmem:[#allocation4 + $0x70] sm:$0xff]  ;;  %v408_v48 = vld [vmem:[#allocation4 + $0x58] sm:$0xff] }
  0x3c   : > { %452 = vmatpush.msra.mxu0 %v421_v19  ;;  %v405_v49 = vld [vmem:[#allocation4 + $0x40] sm:$0xff]  ;;  %v1760_v50 = vld [vmem:[%s330_s24 + $0x8] sm:$0xff]  ;;  %v399_v52 = vld [vmem:[#allocation4 + $0x10] sm:$0xff] }
  0x3d   : > { %476 = vmatpush.msra.mxu1 %v419_v18  ;;  %497 = vmatpush.msra.mxu2 %v426_v31  ;;  %v402_v51 = vld [vmem:[#allocation4 + $0x28] sm:$0xff]  ;;  %v514_v63 = vld [vmem:[%s389_s16] sm:$0x1] }
  0x3e   : > { %453 = vmatpush.msra.mxu0 %v418_v22  ;;  %v516_v53 = vld [vmem:[%s1747_s19 + $0x8] sm:$0xff]  ;;  %vm522_vm3 = vcmp.gt.f32.partialorder %v514_v63, 0.5 }
  0x3f   : > { %477 = vmatpush.msra.mxu1 %v416_v21  ;;  %498 = vmatpush.msra.mxu2 %v423_v35  ;;  %vm524_vm1 = vcmp.gt.f32.partialorder %v516_v53, 0.5  ;;  %v525_v0 = vsel %vm522_vm3, 1, %v1589_v30 }
  0x40   : > { %454 = vmatpush.msra.mxu0 %v415_v25  ;;  %v529_v54 = vsel %vm524_vm1, 1, %v1589_v30  ;;  %v526_v2 = vperm.slane %v525_v0, 0 }
  0x41   : > { %478 = vmatpush.msra.mxu1 %v413_v24  ;;  %499 = vmatpush.msra.mxu2 %v420_v38 }
  0x42   : > { %455 = vmatpush.msra.mxu0 %v412_v29  ;;  %534 = vperm.xlu0 %1396, %v529_v54   ;;  %vm1800_vm4 = vcmp.eq.s32.totalorder %v526_v2, 1 }
  0x43   : > { %479 = vmatpush.msra.mxu1 %v410_v28  ;;  %500 = vmatpush.msra.mxu2 %v417_v41 }
  0x44   : > { %456 = vmatpush.msra.mxu0 %v409_v34 }
  0x45   : > { %480 = vmatpush.msra.mxu1 %v407_v33  ;;  %501 = vmatpush.msra.mxu2 %v414_v45 }
  0x46   : > { %457 = vmatpush.msra.mxu0 %v406_v37 }
  0x47   : > { %481 = vmatpush.msra.mxu1 %v404_v36  ;;  %502 = vmatpush.msra.mxu2 %v411_v47 }
  0x48   : > { %458 = vmatpush.msra.mxu0 %v403_v40 }
  0x49   : > { %482 = vmatpush.msra.mxu1 %v401_v39  ;;  %503 = vmatpush.msra.mxu2 %v408_v48 }
  0x4a   : > { %459 = vmatpush.msra.mxu0 %v400_v43 }
  0x4b   : > { %483 = vmatpush.msra.mxu1 %v398_v42  ;;  %504 = vmatpush.msra.mxu2 %v405_v49 }
  0x4c   : > { %484 = vmatmul.f32.vlgmr.msra.gmra.mxu1 %v1754_v44  ;;  %460 = vmatpush.msra.mxu0 %v397_v46 }
  0x4d   : > { %461 = vmatmul.f32.vlgmr.msra.gmra.mxu0 %v1754_v44  ;;  %505 = vmatpush.msra.mxu2 %v402_v51 }
  0x4f   : > { %506 = vmatpush.msra.mxu2 %v399_v52 }
  0x50   : > { %507 = vmatmul.f32.vlgmr.msra.gmra.mxu2 %v1754_v44 }
  0x54   : > { %487 = vmatmul.f32.gmra.mxu1 %v1760_v50 }
  0x55   : > { %464 = vmatmul.f32.gmra.mxu0 %v1760_v50 }
  0x58   : > { %510 = vmatmul.f32.gmra.mxu2 %v1760_v50 }
  0xac   : > { %v532_v61 = vpop.permute.xlu0 %531 }
  0xad   : > { %vm536_vm5 = vcmp.eq.s32.totalorder %v532_v61, 1 }
  0xae   : > { %vm538_vm7 = vmand %vm1800_vm4, %vm536_vm5 }
  0xaf   : > { %vm542_vm8 = vmand %vm538_vm7, %vm540_vm6 }
  0xb0   : > { %v1295_v9 = vsel %vm542_vm8, 1.0, %v1593_v8 }
  0xb1   : > { %v548_v12 = vsub.f32 1.0, %v1295_v9 }
  0xb3   : > { %v1810_v13 = vmul.f32 -3.4028235e+38, %v548_v12 }
  0xb4   : > { %v535_v62 = vpop.permute.xlu0 %534 }
  0xb5   : > { %vm537_vm9 = vcmp.eq.s32.totalorder %v535_v62, 1 }
  0xb6   : > { %vm539_vm11 = vmand %vm1800_vm4, %vm537_vm9 }
  0xb7   : > { %vm543_vm12 = vmand %vm539_vm11, %vm541_vm10 }
  0xb8   : > { %v1296_v14 = vsel %vm543_vm12, 1.0, %v1593_v8 }
  0xb9   : > { %v549_v17 = vsub.f32 1.0, %v1296_v14 }
  0xbb   : > { %v1814_v19 = vmul.f32 -3.4028235e+38, %v549_v17 }
  0xc9   : > { %v1768_v55 = vpop.f32.mrf.mxu1 }
  0xca   : > { %v1770_v56 = vpop.f32.mrf.mxu0 }
  0xcb   : > { %666 = vrot.lane.b32.xlu2 %v1770_v56, %s1590_s22 }
  0xd1   : > { %v488_v57 = vpop.f32.mrf.mxu1 }
  0xd2   : > { %672 = vrot.lane.b32.xlu0 %v488_v57, %s1590_s22  ;;  %1297 = vmatpush.xpose.msk.msra.mxu3 %vm552_vm2, %v488_v57  ;;  %v465_v58 = vpop.f32.mrf.mxu0 }
  0xd3   : > { %v1788_v59 = vpop.f32.mrf.mxu2 }
  0xd6   : > { %1298 = vmatpush.xpose.msk.msra.mxu3 %vm552_vm2, %v1768_v55 }
  0xd9   : > { %1299 = vmatmul.msk.f32.vlgmr.msra.gmra.mxu3 %vm552_vm2, %v1770_v56 }
  0xda   : > { %796 = vrot.lane.b32.xlu0 %v488_v57, %s1591_s23 }
  0xdb   : > { %v1790_v60 = vpop.f32.mrf.mxu2 }
  0xdc   : > { %657 = vmatpush.msrb.mxu3 %v1790_v60 }
  0xde   : > { %658 = vmatpush.msrb.mxu3 %v1788_v59 }
  0xe1   : > { %1300 = vmatmul.msk.f32.gmra.mxu3 %vm552_vm2, %v465_v58 }
  0xe2   : > { %794 = vrot.lane.b32.xlu0 %v1768_v55, %s1591_s23 }
  0xea   : > { %668 = vrot.lane.b32.xlu0 %v465_v58, %s1590_s22 }
  0xf2   : > { %916 = vrot.lane.b32.xlu0 %v1768_v55, %s1592_s27 }
  0xfa   : > { %914 = vrot.lane.b32.xlu0 %v465_v58, %s1592_s27 }
 0x125   : > { %v667_v34 = vpop.permute.xlu2 %666 }
 0x144   : > { %v673_v1 = vpop.permute.xlu0 %672 }
 0x145   : > { %1303 = vmatpush.xpose.msk.msra.mxu3 %vm552_vm2, %v673_v1 }
 0x14c   : > { %v797_v7 = vpop.permute.xlu0 %796 }
 0x14d   : > { %1309 = vmatpush.xpose.msk.msrb.mxu2 %vm552_vm2, %v797_v7 }
 0x154   : > { %v795_v11 = vpop.permute.xlu0 %794 }
 0x155   : > { %1310 = vmatpush.xpose.msk.msrb.mxu2 %vm552_vm2, %v795_v11 }
 0x15c   : > { %v582_v15 = vpop.f32.mrf.mxu3  ;;  %v669_v43 = vpop.permute.xlu0 %668 }
 0x15d   : > { %v583_v16 = vadd.f32 %v582_v15, %v1810_v13 }
 0x15f   : > { %v589_v18 = vsel %vm588_vm13, %v583_v16, -inf }
 0x160   : > { %590 = vmax.xlane.f32.xlu1 %v589_v18 }
 0x164   : > { %v585_v20 = vpop.f32.mrf.mxu3  ;;  %v917_v63 = vpop.permute.xlu0 %916 }
 0x165   : > { %v586_v21 = vadd.f32 %v585_v20, %v1814_v19 }
 0x167   : > { %v592_v22 = vsel %vm588_vm13, %v586_v21, -inf }
 0x168   : > { %593 = vmax.xlane.f32.xlu1 %v592_v22 }
 0x16c   : > { %v915_v5 = vpop.permute.xlu0 %914 }
 0x181   : > { %670 = vrot.lane.b32.xlu1 %v1768_v55, %s1590_s22 }
 0x189   : > { %918 = vrot.lane.b32.xlu1 %v488_v57, %s1592_s27 }
 0x191   : > { %792 = vrot.lane.b32.xlu1 %v465_v58, %s1591_s23 }
 0x1d3   : > { %v591_v23 = vpop.xlane.xlu1 %590 }
 0x1d4   : > { %v595_v24 = vsub.f32 %v583_v16, %v591_v23 }
 0x1d6   : > { %v597_v25 = vmul.f32 1.442695, %v595_v24 }
 0x1d8   : > { %1415 = vpow2.f32 %v597_v25 }
 0x1db   : > { %v594_v26 = vpop.xlane.xlu1 %593 }
 0x1dc   : > { %v596_v27 = vsub.f32 %v586_v21, %v594_v26 }
 0x1de   : > { %v1416_v28 = vpop.eup %1415  ;;  %v599_v29 = vmul.f32 1.442695, %v596_v27 }
 0x1df   : > { %v601_v30 = vsel %vm588_vm13, %v1416_v28, 0.0 }
 0x1e0   : > { %1417 = vpow2.f32 %v599_v29  ;;  %602 = vadd.xlane.f32.xlu2 %v601_v30 }
 0x1e6   : > { %v1418_v31 = vpop.eup %1417 }
 0x1e7   : > { %v604_v32 = vsel %vm588_vm13, %v1418_v31, 0.0 }
 0x1e8   : > { %605 = vadd.xlane.f32.xlu2 %v604_v32 }
 0x1f3   : > { %v671_v33 = vpop.permute.xlu1 %670 }
 0x1f4   : > { %1304 = vmatpush.xpose.msk.msra.mxu3 %vm552_vm2, %v671_v33 }
 0x1fb   : > { %v919_v45 = vpop.permute.xlu1 %918 }
 0x200   : > { %790 = vrot.lane.b32.xlu2 %v1770_v56, %s1591_s23 }
 0x203   : > { %v793_v0 = vpop.permute.xlu1 %792 }
 0x208   : > { %912 = vrot.lane.b32.xlu2 %v1770_v56, %s1592_s27 }
 0x253   : > { %v603_v35 = vpop.xlane.xlu2 %602 }
 0x254   : > { %1419 = vrcp.f32 %v603_v35  ;;  %v618_v40 = vand.u32 2147483648, %v603_v35  ;;  %v616_v42 = vand.u32 2147483647, %v603_v35  ;;  %vm612_vm15 = vweird.f32 %v603_v35 }
 0x256   : > { %v619_v48 = vor.u32 1.1754944e-38, %v618_v40  ;;  %vm617_vm1 = vcmp.eq.f32.partialorder %v616_v42, 8.507059e+37 }
 0x25a   : > { %v1420_v36 = vpop.eup %1419 }
 0x25b   : > { %v608_v37 = vmul.f32 %v1420_v36, %v603_v35  ;;  %v606_v38 = vpop.xlane.xlu2 %605  ;;  %vm613_vm14 = vweird.f32 %v1420_v36 }
 0x25c   : > { %1421 = vrcp.f32 %v606_v38  ;;  %vm614_vm0 = vmor %vm612_vm15, %vm613_vm14  ;;  %v633_v56 = vand.u32 2147483648, %v606_v38  ;;  %v631_v58 = vand.u32 2147483647, %v606_v38  ;;  %vm627_vm4 = vweird.f32 %v606_v38 }
 0x25d   : > { %v609_v39 = vsub.f32 1.0, %v608_v37 }
 0x25e   : > { %v634_v62 = vor.u32 1.1754944e-38, %v633_v56  ;;  %vm632_vm6 = vcmp.eq.f32.partialorder %v631_v58, 8.507059e+37  ;;  %v1397_v58 = vpack.i.bf16 %v1788_v59, %v1790_v60 }
 0x25f   : > { %v610_v41 = vmul.f32 %v1420_v36, %v609_v39 }
 0x261   : > { %v611_v46 = vadd.f32 %v1420_v36, %v610_v41 }
 0x262   : > { %v1422_v47 = vpop.eup %1421 }
 0x263   : > { %v623_v49 = vmul.f32 %v1422_v47, %v606_v38  ;;  %v791_v51 = vpop.permute.xlu2 %790  ;;  %v615_v52 = vsel %vm614_vm0, %v1420_v36, %v611_v46  ;;  %vm628_vm3 = vweird.f32 %v1422_v47 }
 0x264   : > { %1311 = vmatmul.msk.f32.vlgmr.msrb.gmra.mxu2 %vm552_vm2, %v791_v51  ;;  %v620_v53 = vsel %vm617_vm1, %v619_v48, %v615_v52  ;;  %vm629_vm5 = vmor %vm627_vm4, %vm628_vm3 }
 0x265   : > { %v624_v54 = vsub.f32 1.0, %v623_v49  ;;  %v621_v55 = vmul.f32 %v1416_v28, %v620_v53 }
 0x267   : > { %v625_v57 = vmul.f32 %v1422_v47, %v624_v54  ;;  %1301 = vmatmul.msk.f32.vlgmr.msrb.gmra.mxu3 %vm588_vm13, %v621_v55 }
 0x268   : > { %1315 = vmatpush.xpose.msk.msrb.mxu3 %vm552_vm2, %v919_v45 }
 0x269   : > { %v626_v61 = vadd.f32 %v1422_v47, %v625_v57 }
 0x26b   : > { %v630_v1 = vsel %vm629_vm5, %v1422_v47, %v626_v61  ;;  %v913_v4 = vpop.permute.xlu2 %912 }
 0x26c   : > { %1316 = vmatpush.xpose.msk.msrb.mxu3 %vm552_vm2, %v917_v63  ;;  %1312 = vmatmul.msk.f32.gmra.mxu2 %vm552_vm2, %v793_v0  ;;  %v635_v2 = vsel %vm632_vm6, %v634_v62, %v630_v1 }
 0x26d   : > { %v636_v3 = vmul.f32 %v1418_v31, %v635_v2 }
 0x26f   : > { %1302 = vmatmul.msk.f32.gmra.mxu3 %vm588_vm13, %v636_v3 }
 0x277   : > { %1305 = vmatmul.msk.f32.vlgmr.msra.gmra.mxu3 %vm552_vm2, %v667_v34 }
 0x27f   : > { %1306 = vmatmul.msk.f32.gmra.mxu3 %vm552_vm2, %v669_v43 }
 0x287   : > { %1317 = vmatmul.msk.f32.vlgmr.msrb.gmra.mxu3 %vm552_vm2, %v913_v4 }
 0x28f   : > { %1318 = vmatmul.msk.f32.gmra.mxu3 %vm552_vm2, %v915_v5 }
 0x2e7   : > { %v823_v6 = vpop.f32.mrf.mxu2 }
 0x2e8   : > { %v824_v7 = vadd.f32 %v823_v6, %v1810_v13 }
 0x2ea   : > { %v1840_v8 = vpop.f32.mrf.mxu3  ;;  %v829_v9 = vsel %vm588_vm13, %v824_v7, -inf }
 0x2eb   : > { %830 = vmax.xlane.f32.xlu0 %v829_v9 }
 0x2ef   : > { %v826_v18 = vpop.f32.mrf.mxu2 }
 0x2f0   : > { %v827_v20 = vadd.f32 %v826_v18, %v1814_v19 }
 0x2f2   : > { %v1843_v10 = vpop.f32.mrf.mxu3  ;;  %v832_v24 = vsel %vm588_vm13, %v827_v20, -inf }
 0x2fa   : > { %v699_v11 = vpop.f32.mrf.mxu3 }
 0x2fb   : > { %v700_v12 = vadd.f32 %v699_v11, %v1810_v13 }
 0x2fd   : > { %v705_v14 = vsel %vm588_vm13, %v700_v12, -inf }
 0x2fe   : > { %706 = vmax.xlane.f32.xlu2 %v705_v14 }
 0x302   : > { %v702_v15 = vpop.f32.mrf.mxu3 }
 0x303   : > { %v703_v16 = vadd.f32 %v702_v15, %v1814_v19 }
 0x305   : > { %v708_v17 = vsel %vm588_vm13, %v703_v16, -inf }
 0x306   : > { %709 = vmax.xlane.f32.xlu1 %v708_v17 }
 0x30a   : > { %v945_v21 = vpop.f32.mrf.mxu3 }
 0x30b   : > { %v946_v22 = vadd.f32 %v945_v21, %v1810_v13 }
 0x30d   : > { %v951_v23 = vsel %vm588_vm13, %v946_v22, -inf }
 0x30e   : > { %952 = vmax.xlane.f32.xlu2 %v951_v23  ;;  %833 = vmax.xlane.f32.xlu1 %v832_v24 }
 0x312   : > { %v948_v25 = vpop.f32.mrf.mxu3 }
 0x313   : > { %v949_v26 = vadd.f32 %v948_v25, %v1814_v19 }
 0x315   : > { %v954_v27 = vsel %vm588_vm13, %v949_v26, -inf }
 0x316   : > { %955 = vmax.xlane.f32.xlu2 %v954_v27 }
 0x35e   : > { %v831_v28 = vpop.xlane.xlu0 %830 }
 0x35f   : > { %v835_v29 = vsub.f32 %v824_v7, %v831_v28 }
 0x361   : > { %v837_v30 = vmul.f32 1.442695, %v835_v29 }
 0x363   : > { %1423 = vpow2.f32 %v837_v30 }
 0x369   : > { %v1855_v31 = vpop.eup %1423 }
 0x36a   : > { %v841_v13 = vsel %vm588_vm13, %v1855_v31, 0.0 }
 0x36b   : > { %842 = vadd.xlane.f32.xlu2 %v841_v13 }
 0x371   : > { %v707_v32 = vpop.xlane.xlu2 %706 }
 0x372   : > { %v711_v33 = vsub.f32 %v700_v12, %v707_v32 }
 0x374   : > { %v713_v34 = vmul.f32 1.442695, %v711_v33 }
 0x376   : > { %1425 = vpow2.f32 %v713_v34  ;;  %v1074_v34 = vld [vmem:[#allocation6 + $0x40] sm:$0xff] }
 0x379   : > { %v710_v35 = vpop.xlane.xlu1 %709 }
 0x37a   : > { %v712_v36 = vsub.f32 %v703_v16, %v710_v35 }
 0x37c   : > { %v1859_v19 = vpop.eup %1425  ;;  %v715_v37 = vmul.f32 1.442695, %v712_v36 }
 0x37d   : > { %v717_v38 = vsel %vm588_vm13, %v1859_v19, 0.0 }
 0x37e   : > { %1427 = vpow2.f32 %v715_v37  ;;  %718 = vadd.xlane.f32.xlu0 %v717_v38 }
 0x381   : > { %v953_v39 = vpop.xlane.xlu2 %952  ;;  %v834_v40 = vpop.xlane.xlu1 %833 }
 0x382   : > { %v957_v41 = vsub.f32 %v946_v22, %v953_v39  ;;  %v836_v42 = vsub.f32 %v827_v20, %v834_v40 }
 0x384   : > { %v1863_v43 = vpop.eup %1427  ;;  %v959_v45 = vmul.f32 1.442695, %v957_v41  ;;  %v839_v46 = vmul.f32 1.442695, %v836_v42 }
 0x385   : > { %v720_v47 = vsel %vm588_vm13, %v1863_v43, 0.0 }
 0x386   : > { %1429 = vpow2.f32 %v959_v45  ;;  %721 = vadd.xlane.f32.xlu1 %v720_v47 }
 0x387   : > { %1431 = vpow2.f32 %v839_v46 }
 0x389   : > { %v956_v48 = vpop.xlane.xlu2 %955 }
 0x38a   : > { %v958_v49 = vsub.f32 %v949_v26, %v956_v48 }
 0x38c   : > { %v1867_v51 = vpop.eup %1429  ;;  %v961_v52 = vmul.f32 1.442695, %v958_v49 }
 0x38d   : > { %v1869_v53 = vpop.eup %1431  ;;  %v963_v54 = vsel %vm588_vm13, %v1867_v51, 0.0 }
 0x38e   : > { %1433 = vpow2.f32 %v961_v52  ;;  %964 = vadd.xlane.f32.xlu0 %v963_v54  ;;  %v844_v55 = vsel %vm588_vm13, %v1869_v53, 0.0 }
 0x38f   : > { %845 = vadd.xlane.f32.xlu2 %v844_v55 }
 0x394   : > { %v1875_v56 = vpop.eup %1433 }
 0x395   : > { %v966_v57 = vsel %vm588_vm13, %v1875_v56, 0.0 }
 0x396   : > { %967 = vadd.xlane.f32.xlu0 %v966_v57 }
 0x39f   : > { %1398 = vrot.lane.b32.xlu1 %v1397_v58, %s1590_s22 }
 0x3a7   : > { %1403 = vrot.lane.b32.xlu2 %v1397_v58, %s1591_s23 }
 0x3aa   : > { %1408 = vrot.lane.b32.xlu0 %v1397_v58, %s1592_s27 }
 0x3de   : > { %v843_v61 = vpop.xlane.xlu2 %842 }
 0x3df   : > { %1435 = vrcp.f32 %v843_v61  ;;  %v858_v7 = vand.u32 2147483648, %v843_v61  ;;  %vm852_vm8 = vweird.f32 %v843_v61  ;;  %v856_v12 = vand.u32 2147483647, %v843_v61 }
 0x3e1   : > { %v859_v15 = vor.u32 1.1754944e-38, %v858_v7  ;;  %vm857_vm10 = vcmp.eq.f32.partialorder %v856_v12, 8.507059e+37 }
 0x3e5   : > { %v1436_v62 = vpop.eup %1435 }
 0x3e6   : > { %v848_v0 = vmul.f32 %v1436_v62, %v843_v61  ;;  %vm853_vm7 = vweird.f32 %v1436_v62 }
 0x3e7   : > { %vm854_vm9 = vmor %vm852_vm8, %vm853_vm7 }
 0x3e8   : > { %v849_v1 = vsub.f32 1.0, %v848_v0 }
 0x3ea   : > { %v850_v4 = vmul.f32 %v1436_v62, %v849_v1 }
 0x3ec   : > { %v851_v5 = vadd.f32 %v1436_v62, %v850_v4 }
 0x3ee   : > { %v855_v14 = vsel %vm854_vm9, %v1436_v62, %v851_v5 }
 0x3ef   : > { %v860_v20 = vsel %vm857_vm10, %v859_v15, %v855_v14 }
 0x3f0   : > { %v861_v30 = vmul.f32 %v1855_v31, %v860_v20 }
 0x3f1   : > { %v719_v63 = vpop.xlane.xlu0 %718 }
 0x3f2   : > { %1437 = vrcp.f32 %v719_v63  ;;  %v734_v28 = vand.u32 2147483648, %v719_v63  ;;  %vm728_vm12 = vweird.f32 %v719_v63  ;;  %v732_v13 = vand.u32 2147483647, %v719_v63 }
 0x3f4   : > { %v735_v39 = vor.u32 1.1754944e-38, %v734_v28  ;;  %vm733_vm1 = vcmp.eq.f32.partialorder %v732_v13, 8.507059e+37  ;;  %v1080_v28 = vld [vmem:[#allocation6 + $0x70] sm:$0xff]  ;;  %v1077_v13 = vld [vmem:[#allocation6 + $0x58] sm:$0xff] }
 0x3f8   : > { %v1438_v3 = vpop.eup %1437 }
 0x3f9   : > { %v1884_v2 = vpop.xlane.xlu1 %721  ;;  %v724_v59 = vmul.f32 %v1438_v3, %v719_v63  ;;  %vm729_vm11 = vweird.f32 %v1438_v3 }
 0x3fa   : > { %1439 = vrcp.f32 %v1884_v2  ;;  %vm1899_vm14 = vmor %vm728_vm12, %vm729_vm11  ;;  %v749_v55 = vand.u32 2147483648, %v1884_v2  ;;  %vm743_vm6 = vweird.f32 %v1884_v2  ;;  %v747_v61 = vand.u32 2147483647, %v1884_v2 }
 0x3fb   : > { %v725_v9 = vsub.f32 1.0, %v724_v59 }
 0x3fc   : > { %vm748_vm8 = vcmp.eq.f32.partialorder %v747_v61, 8.507059e+37 }
 0x3fd   : > { %v726_v16 = vmul.f32 %v1438_v3, %v725_v9 }
 0x3ff   : > { %v727_v23 = vadd.f32 %v1438_v3, %v726_v16 }
 0x400   : > { %v1889_v11 = vpop.eup %1439 }
 0x401   : > { %v1887_v60 = vpop.xlane.xlu0 %964  ;;  %v739_v17 = vmul.f32 %v1889_v11, %v1884_v2  ;;  %v731_v31 = vsel %vm1899_vm14, %v1438_v3, %v727_v23  ;;  %vm744_vm5 = vweird.f32 %v1889_v11  ;;  %v750_v3 = vor.u32 1.1754944e-38, %v749_v55 }
 0x402   : > { %v846_v6 = vpop.xlane.xlu2 %845  ;;  %v736_v46 = vsel %vm733_vm1, %v735_v39, %v731_v31  ;;  %vm745_vm7 = vmor %vm743_vm6, %vm744_vm5  ;;  %vm974_vm10 = vweird.f32 %v1887_v60  ;;  %v978_v5 = vand.u32 2147483647, %v1887_v60  ;;  %v1069_v31 = vld [vmem:[#allocation6 + $0x18] sm:$0xff]  ;;  %v1068_v39 = vld [vmem:[#allocation6 + $0x10] sm:$0xff] }
 0x403   : > { %1441 = vrcp.f32 %v846_v6  ;;  %v740_v24 = vsub.f32 1.0, %v739_v17  ;;  %v873_v32 = vand.u32 2147483648, %v846_v6  ;;  %v871_v36 = vand.u32 2147483647, %v846_v6 }
 0x404   : > { %1443 = vrcp.f32 %v1887_v60  ;;  %vm867_vm0 = vweird.f32 %v846_v6  ;;  %v737_v58 = vmul.f32 %v1859_v19, %v736_v46  ;;  %vm979_vm12 = vcmp.eq.f32.partialorder %v978_v5, 8.507059e+37 }
 0x405   : > { %v741_v37 = vmul.f32 %v1889_v11, %v740_v24  ;;  %v874_v41 = vor.u32 1.1754944e-38, %v873_v32  ;;  %vm872_vm4 = vcmp.eq.f32.partialorder %v871_v36, 8.507059e+37  ;;  %v1076_v32 = vld [vmem:[#allocation6 + $0x50] sm:$0xff] }
 0x406   : > { %v1072_v36 = vld [vmem:[#allocation6 + $0x30] sm:$0xff] }
 0x407   : > { %v742_v52 = vadd.f32 %v1889_v11, %v741_v37  ;;  %v1071_v37 = vld [vmem:[#allocation6 + $0x28] sm:$0xff] }
 0x409   : > { %v1442_v18 = vpop.eup %1441  ;;  %v1894_v25 = vpop.xlane.xlu0 %967  ;;  %v746_v1 = vsel %vm745_vm7, %v1889_v11, %v742_v52 }
 0x40a   : > { %v863_v21 = vmul.f32 %v1442_v18, %v846_v6  ;;  %v1404_v22 = vpop.permute.xlu2 %1403  ;;  %v1896_v27 = vpop.eup %1443  ;;  %1445 = vrcp.f32 %v1894_v25  ;;  %vm868_vm15 = vweird.f32 %v1442_v18  ;;  %v751_v4 = vsel %vm748_vm8, %v750_v3, %v746_v1 }
 0x40b   : > { %v1405_v26 = vunpack.i.l.bf16 %v1404_v22  ;;  %v1406_v33 = vunpack.i.h.bf16 %v1404_v22  ;;  %v970_v38 = vmul.f32 %v1896_v27, %v1887_v60  ;;  %vm869_vm3 = vmor %vm867_vm0, %vm868_vm15  ;;  %vm975_vm9 = vweird.f32 %v1896_v27 }
 0x40c   : > { %v864_v29 = vsub.f32 1.0, %v863_v21  ;;  %v752_v7 = vmul.f32 %v1863_v43, %v751_v4  ;;  %vm976_vm11 = vmor %vm974_vm10, %vm975_vm9  ;;  %v995_v17 = vand.u32 2147483648, %v1894_v25  ;;  %vm989_vm15 = vweird.f32 %v1894_v25 }
 0x40d   : > { %903 = vmatpush.msra.mxu2 %v1405_v26  ;;  %v971_v48 = vsub.f32 1.0, %v970_v38  ;;  %v1070_v38 = vld [vmem:[#allocation6 + $0x20] sm:$0xff] }
 0x40e   : > { %v865_v35 = vmul.f32 %v1442_v18, %v864_v29  ;;  %v996_v20 = vor.u32 1.1754944e-38, %v995_v17  ;;  %v1079_v29 = vld [vmem:[#allocation6 + $0x68] sm:$0xff] }
 0x40f   : > { %904 = vmatpush.msra.mxu2 %v1406_v33  ;;  %v972_v63 = vmul.f32 %v1896_v27, %v971_v48  ;;  %v1075_v33 = vld [vmem:[#allocation6 + $0x48] sm:$0xff] }
 0x410   : > { %1313 = vmatmul.msk.f32.vlgmr.msra.gmra.mxu2 %vm588_vm13, %v861_v30  ;;  %v866_v40 = vadd.f32 %v1442_v18, %v865_v35  ;;  %v1446_v54 = vpop.eup %1445  ;;  %v1078_v30 = vld [vmem:[#allocation6 + $0x60] sm:$0xff]  ;;  %v1073_v35 = vld [vmem:[#allocation6 + $0x38] sm:$0xff] }
 0x411   : > { %v1399_v42 = vpop.permute.xlu1 %1398  ;;  %v985_v0 = vmul.f32 %v1446_v54, %v1894_v25  ;;  %v973_v19 = vadd.f32 %v1896_v27, %v972_v63  ;;  %vm990_vm14 = vweird.f32 %v1446_v54 }
 0x412   : > { %v1400_v45 = vunpack.i.l.bf16 %v1399_v42  ;;  %v870_v47 = vsel %vm869_vm3, %v1442_v18, %v866_v40  ;;  %v1401_v57 = vunpack.i.h.bf16 %v1399_v42  ;;  %vm991_vm0 = vmor %vm989_vm15, %vm990_vm14  ;;  %v1067_v40 = vld [vmem:[#allocation6 + $0x8] sm:$0xff]  ;;  %vm1063_vm3 = vcmask 785408  }
 0x413   : > { %v875_v49 = vsel %vm872_vm4, %v874_v41, %v870_v47  ;;  %v986_v2 = vsub.f32 1.0, %v985_v0  ;;  %v977_v9 = vsel %vm976_vm11, %v1896_v27, %v973_v19  ;;  %v1066_v41 = vld [vmem:[#allocation6] sm:$0xff]  ;;  %v1594_v19 = vmov 128.0  }
 0x414   : > { %781 = vmatpush.msrb.mxu0 %v1400_v45  ;;  %v876_v62 = vmul.f32 %v1869_v53, %v875_v49  ;;  %v980_v53 = vand.u32 2147483648, %v1887_v60  ;;  %v993_v60 = vand.u32 2147483647, %v1894_v25  ;;  %1447 = vrcp.f32 %v1594_v19 }
 0x415   : > { %v987_v11 = vmul.f32 %v1446_v54, %v986_v2 }
 0x416   : > { %782 = vmatpush.msrb.mxu0 %v1401_v57  ;;  %v981_v12 = vor.u32 1.1754944e-38, %v980_v53  ;;  %vm994_vm1 = vcmp.eq.f32.partialorder %v993_v60, 8.507059e+37 }
 0x417   : > { %1307 = vmatmul.msk.f32.vlgmr.msrb.gmra.mxu0 %vm588_vm13, %v737_v58  ;;  %v988_v16 = vadd.f32 %v1446_v54, %v987_v11 }
 0x418   : > { %1314 = vmatmul.msk.f32.gmra.mxu2 %vm588_vm13, %v876_v62  ;;  %v982_v15 = vsel %vm979_vm12, %v981_v12, %v977_v9  ;;  %v1412_v62 = vld [vmem:[%s1981_s5] ss:$0 sm:$0xff] }
 0x419   : > { %v983_v43 = vmul.f32 %v1867_v51, %v982_v15  ;;  %v992_v18 = vsel %vm991_vm0, %v1446_v54, %v988_v16 }
 0x41a   : > { %v997_v21 = vsel %vm994_vm1, %v996_v20, %v992_v18 }
 0x41b   : > { %v998_v22 = vmul.f32 %v1875_v56, %v997_v21  ;;  %v1081_v56 = vld [vmem:[#allocation6 + $0x78] sm:$0xff] }
 0x41c   : > { %v1409_v59 = vpop.permute.xlu0 %1408  ;;  %1086 = vmatpush.msrb.mxu1 %v1081_v56  ;;  %v1413_v56 = vld [vmem:[%s1982_s6] ss:$0 sm:$0xff] }
 0x41d   : > { %v1410_v6 = vunpack.i.l.bf16 %v1409_v59  ;;  %v1411_v14 = vunpack.i.h.bf16 %v1409_v59 }
 0x41e   : > { %1087 = vmatpush.msrb.mxu1 %v1080_v28 }
 0x41f   : > { %1308 = vmatmul.msk.f32.gmra.mxu0 %vm588_vm13, %v752_v7 }
 0x420   : > { %1025 = vmatpush.msra.mxu0 %v1410_v6  ;;  %1088 = vmatpush.msrb.mxu1 %v1079_v29 }
 0x422   : > { %1026 = vmatpush.msra.mxu0 %v1411_v14  ;;  %1089 = vmatpush.msrb.mxu1 %v1078_v30  ;;  %v1414_v30 = vld [vmem:[%s1983_s7] ss:$0 sm:$0xff] }
 0x424   : > { %1090 = vmatpush.msrb.mxu1 %v1077_v13 }
 0x426   : > { %1091 = vmatpush.msrb.mxu1 %v1076_v32 }
 0x427   : > { %1319 = vmatmul.msk.f32.vlgmr.msra.gmra.mxu0 %vm588_vm13, %v983_v43 }
 0x428   : > { %1092 = vmatpush.msrb.mxu1 %v1075_v33 }
 0x42a   : > { %1093 = vmatpush.msrb.mxu1 %v1074_v34 }
 0x42c   : > { %1094 = vmatpush.msrb.mxu1 %v1073_v35 }
 0x42e   : > { %1095 = vmatpush.msrb.mxu1 %v1072_v36 }
 0x42f   : > { %1320 = vmatmul.msk.f32.gmra.mxu0 %vm588_vm13, %v998_v22  ;;  %vm1060_vm13 = vcmask 523264  }
 0x430   : > { %1096 = vmatpush.msrb.mxu1 %v1071_v37 }
 0x432   : > { %1097 = vmatpush.msrb.mxu1 %v1070_v38 }
 0x434   : > { %1098 = vmatpush.msrb.mxu1 %v1069_v31 }
 0x436   : > { %1099 = vmatpush.msrb.mxu1 %v1068_v39 }
 0x438   : > { %1100 = vmatpush.msrb.mxu1 %v1067_v40 }
 0x43a   : > { %1101 = vmatpush.msrb.mxu1 %v1066_v41 }
 0x493   : > { %v906_v24 = vpop.f32.mrf.mxu2 }
 0x494   : > { %v784_v23 = vpop.f32.mrf.mxu0 }
 0x495   : > { %1036 = vrot.lane.b32.xlu1 %v784_v23, %s1592_s27 }
 0x49b   : > { %v909_v51 = vpop.f32.mrf.mxu2 }
 0x49c   : > { %v787_v26 = vpop.f32.mrf.mxu0 }
 0x49d   : > { %1044 = vrot.lane.b32.xlu1 %v906_v24, %s1591_s23  ;;  %1038 = vrot.lane.b32.xlu2 %v787_v26, %s1592_s27 }
 0x4a4   : > { %v1028_v25 = vpop.f32.mrf.mxu0 }
 0x4a5   : > { %1046 = vrot.lane.b32.xlu1 %v909_v51, %s1591_s23  ;;  %1052 = vrot.lane.b32.xlu0 %v1028_v25, %s1590_s22 }
 0x4ac   : > { %v1031_v27 = vpop.f32.mrf.mxu0 }
 0x4ad   : > { %1054 = vrot.lane.b32.xlu0 %v1031_v27, %s1590_s22 }
 0x4f7   : > { %v1039_v52 = vpop.permute.xlu2 %1038 }
 0x4f8   : > { %v1059_v55 = vsel %vm552_vm2, %v1843_v10, %v1039_v52  ;;  %v1448_v10 = vpop.eup %1447 }
 0x4f9   : > { %v1118_v2 = vmul.f32 128.0, %v1448_v10 }
 0x4fb   : > { %v1119_v53 = vsub.f32 1.0, %v1118_v2 }
 0x4fd   : > { %v1120_v59 = vmul.f32 %v1448_v10, %v1119_v53 }
 0x4ff   : > { %v1121_v5 = vadd.f32 %v1448_v10, %v1120_v59 }
 0x507   : > { %v1037_v42 = vpop.permute.xlu1 %1036 }
 0x508   : > { %v1058_v46 = vsel %vm552_vm2, %v1840_v8, %v1037_v42  ;;  %vm1122_vm2 = vweird.f32 %v1448_v10 }
 0x509   : > { %v1123_v6 = vsel %vm1122_vm2, %v1448_v10, %v1121_v5 }
 0x50f   : > { %v1045_v45 = vpop.permute.xlu1 %1044 }
 0x510   : > { %v1061_v47 = vsel %vm1060_vm13, %v1058_v46, %v1045_v45 }
 0x517   : > { %v1053_v48 = vpop.permute.xlu0 %1052  ;;  %v1047_v54 = vpop.permute.xlu1 %1046 }
 0x518   : > { %v1064_v49 = vsel %vm1063_vm3, %v1061_v47, %v1053_v48  ;;  %v1062_v57 = vsel %vm1060_vm13, %v1059_v55, %v1047_v54 }
 0x519   : > { %1102 = vmatmul.f32.vlgmr.msrb.gmra.mxu1 %v1064_v49 }
 0x51f   : > { %v1055_v58 = vpop.permute.xlu0 %1054 }
 0x520   : > { %v1065_v61 = vsel %vm1063_vm3, %v1062_v57, %v1055_v58 }
 0x521   : > { %1105 = vmatmul.f32.gmra.mxu1 %v1065_v61 }
 0x596   : > { %v1103_v63 = vpop.f32.mrf.mxu1 }
 0x597   : > { %v1104_v0 = vadd.f32 %v1412_v62, %v1103_v63 }
 0x599   : > { %v1109_v8 = vadd.f32 %v1104_v0, %v1754_v44 }
 0x59b   : > { %1113 = vadd.xlane.f32.xlu2 %v1109_v8 }
 0x59e   : > { %v1106_v1 = vpop.f32.mrf.mxu1 }
 0x59f   : > { %v1107_v3 = vadd.f32 %v1412_v62, %v1106_v1 }
 0x5a1   : > { %v1110_v4 = vadd.f32 %v1107_v3, %v1760_v50 }
 0x5a3   : > { %1115 = vadd.xlane.f32.xlu1 %v1110_v4 }
 0x60e   : > { %v1114_v7 = vpop.xlane.xlu2 %1113 }
 0x60f   : > { %v1124_v9 = vmul.f32 %v1123_v6, %v1114_v7 }
 0x611   : > { %v1126_v11 = vsub.f32 %v1109_v8, %v1124_v9 }
 0x613   : > { %v1128_v12 = vmul.f32 %v1126_v11, %v1126_v11 }
 0x615   : > { %1130 = vadd.xlane.f32.xlu0 %v1128_v12 }
 0x616   : > { %v1116_v44 = vpop.xlane.xlu1 %1115 }
 0x617   : > { %v1125_v14 = vmul.f32 %v1123_v6, %v1116_v44 }
 0x619   : > { %v1127_v15 = vsub.f32 %v1110_v4, %v1125_v14 }
 0x61b   : > { %v1129_v16 = vmul.f32 %v1127_v15, %v1127_v15 }
 0x61d   : > { %1132 = vadd.xlane.f32.xlu2 %v1129_v16 }
 0x688   : > { %v1131_v50 = vpop.xlane.xlu0 %1130 }
 0x689   : > { %v1134_v17 = vmul.f32 %v1131_v50, %v1123_v6 }
 0x68b   : > { %v1136_v43 = vadd.f32 1e-08, %v1134_v17 }
 0x68d   : > { %1449 = vrsqrt.f32 %v1136_v43  ;;  %vm1144_vm5 = vweird.f32 %v1136_v43 }
 0x690   : > { %v1133_v60 = vpop.xlane.xlu2 %1132 }
 0x691   : > { %v1135_v18 = vmul.f32 %v1133_v60, %v1123_v6 }
 0x693   : > { %v1450_v20 = vpop.eup %1449  ;;  %v1137_v21 = vadd.f32 1e-08, %v1135_v18 }
 0x694   : > { %v1139_v22 = vmul.f32 %v1450_v20, %v1136_v43  ;;  %vm1145_vm4 = vweird.f32 %v1450_v20 }
 0x695   : > { %1451 = vrsqrt.f32 %v1137_v21  ;;  %vm1146_vm6 = vmor %vm1144_vm5, %vm1145_vm4  ;;  %vm1154_vm8 = vweird.f32 %v1137_v21 }
 0x696   : > { %v1140_v23 = vmul.f32 %v1450_v20, %v1139_v22 }
 0x698   : > { %v1141_v24 = vmul.f32 0.5, %v1140_v23 }
 0x69a   : > { %v1142_v26 = vsub.f32 1.5, %v1141_v24 }
 0x69b   : > { %v1452_v51 = vpop.eup %1451 }
 0x69c   : > { %v1143_v25 = vmul.f32 %v1450_v20, %v1142_v26  ;;  %v1149_v27 = vmul.f32 %v1452_v51, %v1137_v21  ;;  %vm1155_vm7 = vweird.f32 %v1452_v51 }
 0x69d   : > { %vm1156_vm9 = vmor %vm1154_vm8, %vm1155_vm7 }
 0x69e   : > { %v1147_v28 = vsel %vm1146_vm6, %v1450_v20, %v1143_v25  ;;  %v1150_v29 = vmul.f32 %v1452_v51, %v1149_v27 }
 0x69f   : > { %v1158_v13 = vmul.f32 %v1147_v28, %v1126_v11 }
 0x6a0   : > { %v1151_v32 = vmul.f32 0.5, %v1150_v29 }
 0x6a1   : > { %v1163_v33 = vmul.f32 %v1413_v56, %v1158_v13 }
 0x6a2   : > { %v1152_v34 = vsub.f32 1.5, %v1151_v32 }
 0x6a3   : > { %v1168_v35 = vadd.f32 %v1414_v30, %v1163_v33 }
 0x6a4   : > { %v1153_v36 = vmul.f32 %v1452_v51, %v1152_v34 }
 0x6a5   : > { %1170 = vst [vmem:[%s394_s25] sm:$0xff] %v1168_v35 }
 0x6a6   : > { %v1157_v37 = vsel %vm1156_vm9, %v1452_v51, %v1153_v36 }
 0x6a7   : > { %v1159_v38 = vmul.f32 %v1157_v37, %v1127_v15 }
 0x6a9   : > { %v1164_v31 = vmul.f32 %v1413_v56, %v1159_v38 }
 0x6ab   : > { %v1169_v39 = vadd.f32 %v1414_v30, %v1164_v31 }
 0x6ad   : > { %1171 = vst [vmem:[%s394_s25 + $0x8] sm:$0xff] %v1169_v39 }
 0x6ae PF: > { %p19_p1 = scmp.ge.s32.totalorder %s1689_s26, 4   ;;  %s1994_s27 = smov %s1573_s28 }
 0x6af   : > { %s1995_s28 = smov %s1577_s29  ;;  %s1996_s29 = smov %s1698_s12 }
 0x6b0   : > { %s1997_s30 = smov %s1689_s26  ;;  %21 = sbr.rel (!%p19_p1) target bundleno = 4 (0x4), region = 106 }
 0x6b5   :  { %1193 = vsyncpa [#allocation3], 1 }
 0x6b6   :  { %1195 = vsyncpa [#allocation3 + $0x1], 1 }
 0x6b7   :  { %1196 = vsyncpa [#allocation5], 1 }

// kernel: decoder_forward.13
= control target key start
LH: loop header
LB: loop body
LE: loop exit
PB: predicated region body
PF: predicated region fallthrough
CT: control target
= control target key end

     0   :  { %7 = vsyncpa [#allocation3], 0  ;;  %s184_s12 = smov [#allocation2]   ;;  %s185_s14 = smov 256   ;;  %s249_s0 = inlined_call_operand.vmem [shape: f32[32,64], index: 0, kind: input, shape index: {}]   ;;  %s250_s1 = inlined_call_operand.hbm [shape: f32[64,256], index: 1, kind: input, shape index: {}]   ;;  %s251_s2 = inlined_call_operand.vmem [shape: f32[32,256], index: 2, kind: output, shape index: {}]  }
   0x1   :  { %s14_s11 = sshll.u32 %s250_s1, 4  ;;  %s16_s13 = sshll.u32 %s184_s12, 4  ;;  %s15_s11 = int_to_ptr.hbm [resolvable:$true] %s14_s11  ;;  %s17_s13 = int_to_ptr.vmem [resolvable:$true] %s16_s13 }
   0x2   :  { %s186_s15 = smov 16  }
   0x3   :  { %22 = dma.hbm_to_vmem [thread:$0]  %s15_s11, 2048, %s17_s13, [#allocation3], %s185_s14, %s185_s14, %s186_s15  }
   0x4   :  { %182 = dma.done.wait [#allocation3], 2048  }
   0x5   :  { %183 = vsyncadd [#allocation3], 4294965248  ;;  %v45_v0 = vld [vmem:[#allocation2 + $0x70] sm:$0xff]  ;;  %v46_v1 = vld [vmem:[#allocation2 + $0x78] sm:$0xff]  ;;  %vm47_vm0 = vcmask 523264  }
   0x6   :  { %v43_v2 = vld [vmem:[#allocation2 + $0x60] sm:$0xff]  ;;  %139 = vmatpush.msra.mxu2 %v45_v0  ;;  %147 = vmatpush.msra.mxu3 %v46_v1  ;;  %v44_v3 = vld [vmem:[#allocation2 + $0x68] sm:$0xff]  ;;  %v41_v4 = vld [vmem:[#allocation2 + $0x50] sm:$0xff] }
   0x7   :  { %v42_v5 = vld [vmem:[#allocation2 + $0x58] sm:$0xff]  ;;  %68 = vmatpush.msra.mxu0 %v45_v0  ;;  %97 = vmatpush.msra.mxu1 %v46_v1  ;;  %v39_v6 = vld [vmem:[#allocation2 + $0x40] sm:$0xff]  ;;  %v40_v7 = vld [vmem:[#allocation2 + $0x48] sm:$0xff] }
   0x8   :  { %140 = vmatpush.msra.mxu2 %v43_v2  ;;  %148 = vmatpush.msra.mxu3 %v44_v3  ;;  %v37_v8 = vld [vmem:[#allocation2 + $0x30] sm:$0xff]  ;;  %v38_v9 = vld [vmem:[#allocation2 + $0x38] sm:$0xff]  ;;  %v35_v10 = vld [vmem:[#allocation2 + $0x20] sm:$0xff] }
   0x9   :  { %69 = vmatpush.msra.mxu0 %v43_v2  ;;  %98 = vmatpush.msra.mxu1 %v44_v3  ;;  %v36_v11 = vld [vmem:[#allocation2 + $0x28] sm:$0xff]  ;;  %v33_v12 = vld [vmem:[#allocation2 + $0x10] sm:$0xff]  ;;  %v34_v13 = vld [vmem:[#allocation2 + $0x18] sm:$0xff] }
   0xa   :  { %141 = vmatpush.msra.mxu2 %v41_v4  ;;  %149 = vmatpush.msra.mxu3 %v42_v5  ;;  %v31_v14 = vld [vmem:[#allocation2] sm:$0xff]  ;;  %v32_v15 = vld [vmem:[#allocation2 + $0x8] sm:$0xff]  ;;  %v29_v16 = vld [vmem:[%s249_s0 + $0x10] sm:$0xff] }
   0xb   :  { %70 = vmatpush.msra.mxu0 %v41_v4  ;;  %99 = vmatpush.msra.mxu1 %v42_v5  ;;  %v27_v17 = vld [vmem:[%s249_s0] sm:$0xff]  ;;  %v30_v18 = vld [vmem:[%s249_s0 + $0x18] sm:$0xff]  ;;  %v28_v19 = vld [vmem:[%s249_s0 + $0x8] sm:$0xff] }
   0xc   :  { %142 = vmatpush.msra.mxu2 %v39_v6  ;;  %150 = vmatpush.msra.mxu3 %v40_v7 }
   0xd   :  { %71 = vmatpush.msra.mxu0 %v39_v6  ;;  %100 = vmatpush.msra.mxu1 %v40_v7 }
   0xe   :  { %143 = vmatpush.msra.mxu2 %v37_v8  ;;  %151 = vmatpush.msra.mxu3 %v38_v9 }
   0xf   :  { %72 = vmatpush.msra.mxu0 %v37_v8  ;;  %101 = vmatpush.msra.mxu1 %v38_v9 }
  0x10   :  { %144 = vmatpush.msra.mxu2 %v35_v10  ;;  %152 = vmatpush.msra.mxu3 %v36_v11 }
  0x11   :  { %73 = vmatpush.msra.mxu0 %v35_v10  ;;  %102 = vmatpush.msra.mxu1 %v36_v11 }
  0x12   :  { %145 = vmatpush.msra.mxu2 %v33_v12  ;;  %153 = vmatpush.msra.mxu3 %v34_v13 }
  0x13   :  { %74 = vmatpush.msra.mxu0 %v33_v12  ;;  %103 = vmatpush.msra.mxu1 %v34_v13 }
  0x14   :  { %146 = vmatpush.msra.mxu2 %v31_v14  ;;  %154 = vmatpush.msra.mxu3 %v32_v15 }
  0x15   :  { %133 = vmatmul.msk.f32.vlgmr.msra.gmra.mxu2 %vm47_vm0, %v29_v16  ;;  %137 = vmatmul.msk.f32.vlgmr.msra.gmra.mxu3 %vm47_vm0, %v29_v16 }
  0x16   :  { %75 = vmatpush.msra.mxu0 %v31_v14  ;;  %104 = vmatpush.msra.mxu1 %v32_v15 }
  0x17   :  { %131 = vmatmul.msk.f32.vlgmr.msra.gmra.mxu0 %vm47_vm0, %v27_v17  ;;  %135 = vmatmul.msk.f32.vlgmr.msra.gmra.mxu1 %vm47_vm0, %v27_v17 }
  0x1d   :  { %134 = vmatmul.msk.f32.gmra.mxu2 %vm47_vm0, %v30_v18  ;;  %138 = vmatmul.msk.f32.gmra.mxu3 %vm47_vm0, %v30_v18 }
  0x1f   :  { %132 = vmatmul.msk.f32.gmra.mxu0 %vm47_vm0, %v28_v19  ;;  %136 = vmatmul.msk.f32.gmra.mxu1 %vm47_vm0, %v28_v19 }
  0x94   :  { %v77_v20 = vpop.f32.mrf.mxu0  ;;  %v106_v21 = vpop.f32.mrf.mxu1 }
  0x95   :  { %118 = vst [vmem:[%s251_s2] sm:$0xff] %v77_v20 }
  0x96   :  { %119 = vst [vmem:[%s251_s2 + $0x8] sm:$0xff] %v106_v21 }
  0x98   :  { %v83_v22 = vpop.f32.mrf.mxu2  ;;  %v112_v23 = vpop.f32.mrf.mxu3 }
  0x99   :  { %122 = vst [vmem:[%s251_s2 + $0x20] sm:$0xff] %v83_v22 }
  0x9a   :  { %123 = vst [vmem:[%s251_s2 + $0x28] sm:$0xff] %v112_v23 }
  0x9c   :  { %v80_v24 = vpop.f32.mrf.mxu0  ;;  %v109_v25 = vpop.f32.mrf.mxu1 }
  0x9d   :  { %120 = vst [vmem:[%s251_s2 + $0x10] sm:$0xff] %v80_v24 }
  0x9e   :  { %121 = vst [vmem:[%s251_s2 + $0x18] sm:$0xff] %v109_v25 }
  0xa0   :  { %v86_v26 = vpop.f32.mrf.mxu2  ;;  %v115_v27 = vpop.f32.mrf.mxu3 }
  0xa1   :  { %124 = vst [vmem:[%s251_s2 + $0x30] sm:$0xff] %v86_v26 }
  0xa2   :  { %125 = vst [vmem:[%s251_s2 + $0x38] sm:$0xff] %v115_v27 }
  0xa3   :  { %130 = vsyncpa [#allocation3], 1 }

// kernel: decoder_forward.15
= control target key start
LH: loop header
LB: loop body
LE: loop exit
PB: predicated region body
PF: predicated region fallthrough
CT: control target
= control target key end

     0   :  { %12 = vsyncpa [#allocation3], 0  ;;  %s608_s0 = inlined_call_operand.vmem [shape: f32[32,128], index: 0, kind: input, shape index: {}]   ;;  %s609_s1 = inlined_call_operand.hbm [shape: f32[128,256], index: 1, kind: input, shape index: {}]   ;;  %s610_s2 = inlined_call_operand.vmem [shape: f32[1,256], index: 2, kind: input, shape index: {}]   ;;  %s611_s3 = inlined_call_operand.hbm [shape: f32[256,128], index: 3, kind: input, shape index: {}]   ;;  %s612_s4 = inlined_call_operand.vmem [shape: f32[1,128], index: 4, kind: input, shape index: {}]   ;;  %s613_s5 = inlined_call_operand.vmem [shape: f32[1,128], index: 5, kind: input, shape index: {}]   ;;  %s614_s6 = inlined_call_operand.vmem [shape: f32[1,128], index: 6, kind: input, shape index: {}]   ;;  %s615_s7 = inlined_call_operand.hbm [shape: f32[32,128], index: 7, kind: output, shape index: {}]  }
   0x1   :  { %13 = vsyncpa [#allocation6], 0 }
   0x2   :  { %14 = vsyncpa [#allocation4], 0  ;;  %s21_s26 = sshll.u32 %s609_s1, 4  ;;  %s491_s27 = smov [#allocation2]   ;;  %s22_s26 = int_to_ptr.hbm [resolvable:$true] %s21_s26 }
   0x3   :  { %s23_s28 = sshll.u32 %s491_s27, 4  ;;  %s36_s8 = sshll.u32 %s611_s3, 4  ;;  %s24_s28 = int_to_ptr.vmem [resolvable:$true] %s23_s28  ;;  %s37_s8 = int_to_ptr.hbm [resolvable:$true] %s36_s8 }
   0x4   :  { %s492_s9 = smov 256   ;;  %s493_s10 = smov 16  }
   0x5   :  { %29 = dma.hbm_to_vmem [thread:$0]  %s22_s26, 4096, %s24_s28, [#allocation3], %s492_s9, %s492_s9, %s493_s10  }
   0x6   :  { %s494_s11 = smov [#allocation5]   ;;  %s495_s13 = smov 128  }
   0x7   :  { %s38_s12 = sshll.u32 %s494_s11, 4  ;;  %s496_s14 = smov 8   ;;  %s39_s12 = int_to_ptr.vmem [resolvable:$true] %s38_s12 }
   0x8   :  { %44 = dma.hbm_to_vmem [thread:$0]  %s37_s8, 4096, %s39_s12, [#allocation6], %s495_s13, %s495_s13, %s496_s14  }
   0x9   :  { %485 = dma.done.wait [#allocation3], 4096  }
   0xa   :  { %486 = vsyncadd [#allocation3], 4294963200 }
   0xb   :  { %487 = dma.done.wait [#allocation6], 4096  }
   0xc   :  { %488 = vsyncadd [#allocation6], 4294963200  ;;  %v93_v0 = vld [vmem:[#allocation2 + $0xf0] sm:$0xff]  ;;  %v91_v1 = vld [vmem:[#allocation2 + $0xe0] sm:$0xff]  ;;  %s378_s28 = sshll.u32 %s615_s7, 4  ;;  %s379_s28 = int_to_ptr.hbm [resolvable:$true] %s378_s28 }
   0xd   :  { %v94_v2 = vld [vmem:[#allocation2 + $0xf8] sm:$0xff]  ;;  %101 = vmatpush.msra.mxu0 %v93_v0  ;;  %v92_v3 = vld [vmem:[#allocation2 + $0xe8] sm:$0xff]  ;;  %v89_v4 = vld [vmem:[#allocation2 + $0xd0] sm:$0xff] }
   0xe   :  { %130 = vmatpush.msra.mxu1 %v94_v2  ;;  %v90_v5 = vld [vmem:[#allocation2 + $0xd8] sm:$0xff]  ;;  %v87_v6 = vld [vmem:[#allocation2 + $0xc0] sm:$0xff]  ;;  %v88_v7 = vld [vmem:[#allocation2 + $0xc8] sm:$0xff] }
   0xf   :  { %102 = vmatpush.msra.mxu0 %v91_v1  ;;  %v85_v8 = vld [vmem:[#allocation2 + $0xb0] sm:$0xff]  ;;  %v86_v9 = vld [vmem:[#allocation2 + $0xb8] sm:$0xff]  ;;  %v83_v10 = vld [vmem:[#allocation2 + $0xa0] sm:$0xff] }
  0x10   :  { %131 = vmatpush.msra.mxu1 %v92_v3  ;;  %v84_v11 = vld [vmem:[#allocation2 + $0xa8] sm:$0xff]  ;;  %v81_v12 = vld [vmem:[#allocation2 + $0x90] sm:$0xff]  ;;  %v82_v13 = vld [vmem:[#allocation2 + $0x98] sm:$0xff] }
  0x11   :  { %103 = vmatpush.msra.mxu0 %v89_v4  ;;  %v79_v14 = vld [vmem:[#allocation2 + $0x80] sm:$0xff]  ;;  %v80_v15 = vld [vmem:[#allocation2 + $0x88] sm:$0xff]  ;;  %v77_v16 = vld [vmem:[#allocation2 + $0x70] sm:$0xff] }
  0x12   :  { %132 = vmatpush.msra.mxu1 %v90_v5  ;;  %v78_v17 = vld [vmem:[#allocation2 + $0x78] sm:$0xff]  ;;  %v75_v18 = vld [vmem:[#allocation2 + $0x60] sm:$0xff]  ;;  %v76_v19 = vld [vmem:[#allocation2 + $0x68] sm:$0xff] }
  0x13   :  { %104 = vmatpush.msra.mxu0 %v87_v6  ;;  %v73_v20 = vld [vmem:[#allocation2 + $0x50] sm:$0xff]  ;;  %v74_v21 = vld [vmem:[#allocation2 + $0x58] sm:$0xff]  ;;  %v71_v22 = vld [vmem:[#allocation2 + $0x40] sm:$0xff] }
  0x14   :  { %133 = vmatpush.msra.mxu1 %v88_v7  ;;  %v72_v23 = vld [vmem:[#allocation2 + $0x48] sm:$0xff]  ;;  %v69_v24 = vld [vmem:[#allocation2 + $0x30] sm:$0xff]  ;;  %v70_v25 = vld [vmem:[#allocation2 + $0x38] sm:$0xff] }
  0x15   :  { %105 = vmatpush.msra.mxu0 %v85_v8  ;;  %v67_v26 = vld [vmem:[#allocation2 + $0x20] sm:$0xff]  ;;  %v68_v27 = vld [vmem:[#allocation2 + $0x28] sm:$0xff]  ;;  %v182_v28 = vld [vmem:[#allocation5 + $0x78] sm:$0xff] }
  0x16   :  { %134 = vmatpush.msra.mxu1 %v86_v9  ;;  %v198_v29 = vld [vmem:[#allocation5 + $0xf8] sm:$0xff]  ;;  %v181_v30 = vld [vmem:[#allocation5 + $0x70] sm:$0xff]  ;;  %203 = vmatpush.msra.mxu2 %v182_v28  ;;  %v180_v34 = vld [vmem:[#allocation5 + $0x68] sm:$0xff] }
  0x17   :  { %106 = vmatpush.msra.mxu0 %v83_v10  ;;  %v197_v31 = vld [vmem:[#allocation5 + $0xf0] sm:$0xff]  ;;  %v66_v33 = vld [vmem:[#allocation2 + $0x18] sm:$0xff]  ;;  %232 = vmatpush.msra.mxu3 %v198_v29  ;;  %v196_v35 = vld [vmem:[#allocation5 + $0xe8] sm:$0xff] }
  0x18   :  { %135 = vmatpush.msra.mxu1 %v84_v11  ;;  %v65_v32 = vld [vmem:[#allocation2 + $0x10] sm:$0xff]  ;;  %v63_v36 = vld [vmem:[#allocation2] sm:$0xff]  ;;  %v64_v37 = vld [vmem:[#allocation2 + $0x8] sm:$0xff]  ;;  %204 = vmatpush.msra.mxu2 %v181_v30 }
  0x19   :  { %107 = vmatpush.msra.mxu0 %v81_v12  ;;  %233 = vmatpush.msra.mxu3 %v197_v31  ;;  %v551_v38 = vld [vmem:[%s608_s0] sm:$0xff]  ;;  %v178_v41 = vld [vmem:[#allocation5 + $0x58] sm:$0xff]  ;;  %v177_v43 = vld [vmem:[#allocation5 + $0x50] sm:$0xff] }
  0x1a   :  { %136 = vmatpush.msra.mxu1 %v82_v13  ;;  %205 = vmatpush.msra.mxu2 %v180_v34  ;;  %v179_v39 = vld [vmem:[#allocation5 + $0x60] sm:$0xff]  ;;  %v194_v42 = vld [vmem:[#allocation5 + $0xd8] sm:$0xff]  ;;  %v193_v44 = vld [vmem:[#allocation5 + $0xd0] sm:$0xff] }
  0x1b   :  { %108 = vmatpush.msra.mxu0 %v79_v14  ;;  %234 = vmatpush.msra.mxu3 %v196_v35  ;;  %v195_v40 = vld [vmem:[#allocation5 + $0xe0] sm:$0xff]  ;;  %v176_v45 = vld [vmem:[#allocation5 + $0x48] sm:$0xff]  ;;  %v174_v50 = vld [vmem:[#allocation5 + $0x38] sm:$0xff] }
  0x1c   :  { %137 = vmatpush.msra.mxu1 %v80_v15  ;;  %206 = vmatpush.msra.mxu2 %v179_v39  ;;  %v192_v46 = vld [vmem:[#allocation5 + $0xc8] sm:$0xff]  ;;  %v175_v48 = vld [vmem:[#allocation5 + $0x40] sm:$0xff]  ;;  %v190_v51 = vld [vmem:[#allocation5 + $0xb8] sm:$0xff] }
  0x1d   :  { %109 = vmatpush.msra.mxu0 %v77_v16  ;;  %235 = vmatpush.msra.mxu3 %v195_v40  ;;  %v558_v47 = vld [vmem:[%s608_s0 + $0x8] sm:$0xff]  ;;  %v191_v49 = vld [vmem:[#allocation5 + $0xc0] sm:$0xff]  ;;  %v173_v52 = vld [vmem:[#allocation5 + $0x30] sm:$0xff] }
  0x1e   :  { %138 = vmatpush.msra.mxu1 %v78_v17  ;;  %207 = vmatpush.msra.mxu2 %v178_v41  ;;  %v189_v53 = vld [vmem:[#allocation5 + $0xb0] sm:$0xff]  ;;  %v172_v54 = vld [vmem:[#allocation5 + $0x28] sm:$0xff]  ;;  %v171_v57 = vld [vmem:[#allocation5 + $0x20] sm:$0xff] }
  0x1f   :  { %110 = vmatpush.msra.mxu0 %v75_v18  ;;  %236 = vmatpush.msra.mxu3 %v194_v42  ;;  %v188_v55 = vld [vmem:[#allocation5 + $0xa8] sm:$0xff]  ;;  %v565_v56 = vld [vmem:[%s608_s0 + $0x10] sm:$0xff]  ;;  %v187_v58 = vld [vmem:[#allocation5 + $0xa0] sm:$0xff] }
  0x20   :  { %139 = vmatpush.msra.mxu1 %v76_v19  ;;  %208 = vmatpush.msra.mxu2 %v177_v43  ;;  %v170_v59 = vld [vmem:[#allocation5 + $0x18] sm:$0xff]  ;;  %v169_v61 = vld [vmem:[#allocation5 + $0x10] sm:$0xff]  ;;  %v168_v63 = vld [vmem:[#allocation5 + $0x8] sm:$0xff] }
  0x21   :  { %111 = vmatpush.msra.mxu0 %v73_v20  ;;  %237 = vmatpush.msra.mxu3 %v193_v44  ;;  %v572_v60 = vld [vmem:[%s608_s0 + $0x18] sm:$0xff]  ;;  %v185_v0 = vld [vmem:[#allocation5 + $0x90] sm:$0xff]  ;;  %v167_v1 = vld [vmem:[#allocation5] sm:$0xff] }
  0x22   :  { %140 = vmatpush.msra.mxu1 %v74_v21  ;;  %209 = vmatpush.msra.mxu2 %v176_v45  ;;  %v186_v62 = vld [vmem:[#allocation5 + $0x98] sm:$0xff]  ;;  %v184_v2 = vld [vmem:[#allocation5 + $0x88] sm:$0xff]  ;;  %v183_v3 = vld [vmem:[#allocation5 + $0x80] sm:$0xff] }
  0x23   :  { %112 = vmatpush.msra.mxu0 %v71_v22  ;;  %238 = vmatpush.msra.mxu3 %v192_v46  ;;  %v95_v4 = vld [vmem:[%s610_s2] sm:$0x3] }
  0x24   :  { %141 = vmatpush.msra.mxu1 %v72_v23  ;;  %210 = vmatpush.msra.mxu2 %v175_v48  ;;  %v97_v5 = vperm.slane %v95_v4, 0  ;;  %v98_v6 = vperm.slane %v95_v4, 1  ;;  %v400_v31 = vld [vmem:[%s612_s4] ss:$0 sm:$0xff] }
  0x25   :  { %113 = vmatpush.msra.mxu0 %v69_v24  ;;  %239 = vmatpush.msra.mxu3 %v191_v49 }
  0x26   :  { %142 = vmatpush.msra.mxu1 %v70_v25  ;;  %211 = vmatpush.msra.mxu2 %v174_v50 }
  0x27   :  { %114 = vmatpush.msra.mxu0 %v67_v26  ;;  %240 = vmatpush.msra.mxu3 %v190_v51 }
  0x28   :  { %143 = vmatpush.msra.mxu1 %v68_v27  ;;  %212 = vmatpush.msra.mxu2 %v173_v52 }
  0x29   :  { %115 = vmatpush.msra.mxu0 %v65_v32  ;;  %241 = vmatpush.msra.mxu3 %v189_v53  ;;  %v497_v53 = vmov 128.0  }
  0x2a   :  { %144 = vmatpush.msra.mxu1 %v66_v33  ;;  %213 = vmatpush.msra.mxu2 %v172_v54  ;;  %403 = vrcp.f32 %v497_v53 }
  0x2b   :  { %116 = vmatpush.msra.mxu0 %v63_v36  ;;  %242 = vmatpush.msra.mxu3 %v188_v55 }
  0x2c   :  { %145 = vmatpush.msra.mxu1 %v64_v37  ;;  %117 = vmatmul.f32.vlgmr.msra.gmra.mxu0 %v551_v38 }
  0x2d   :  { %146 = vmatmul.f32.vlgmr.msra.gmra.mxu1 %v551_v38  ;;  %214 = vmatpush.msra.mxu2 %v171_v57 }
  0x2e   :  { %243 = vmatpush.msra.mxu3 %v187_v58 }
  0x2f   :  { %215 = vmatpush.msra.mxu2 %v170_v59 }
  0x30   :  { %244 = vmatpush.msra.mxu3 %v186_v62  ;;  %v404_v54 = vpop.eup %403 }
  0x31   :  { %216 = vmatpush.msra.mxu2 %v169_v61  ;;  %v276_v55 = vmul.f32 128.0, %v404_v54  ;;  %vm280_vm0 = vweird.f32 %v404_v54 }
  0x32   :  { %245 = vmatpush.msra.mxu3 %v185_v0 }
  0x33   :  { %217 = vmatpush.msra.mxu2 %v168_v63 }
  0x34   :  { %120 = vmatmul.f32.gmra.mxu0 %v558_v47  ;;  %246 = vmatpush.msra.mxu3 %v184_v2 }
  0x35   :  { %149 = vmatmul.f32.gmra.mxu1 %v558_v47  ;;  %218 = vmatpush.msra.mxu2 %v167_v1 }
  0x36   :  { %247 = vmatpush.msra.mxu3 %v183_v3 }
  0x3c   :  { %123 = vmatmul.f32.gmra.mxu0 %v565_v56 }
  0x3d   :  { %152 = vmatmul.f32.gmra.mxu1 %v565_v56 }
  0x44   :  { %126 = vmatmul.f32.gmra.mxu0 %v572_v60 }
  0x45   :  { %155 = vmatmul.f32.gmra.mxu1 %v572_v60 }
  0xa9   :  { %v118_v7 = vpop.f32.mrf.mxu0 }
  0xaa   :  { %v147_v8 = vpop.f32.mrf.mxu1  ;;  %v119_v9 = vadd.f32 %v118_v7, %v97_v5 }
  0xab   :  { %v148_v10 = vadd.f32 %v147_v8, %v98_v6 }
  0xac   :  { %v159_v11 = vmax.f32 %v119_v9, 0.0 }
  0xad   :  { %v160_v12 = vmax.f32 %v148_v10, 0.0 }
  0xae   :  { %219 = vmatmul.f32.vlgmr.msra.gmra.mxu2 %v159_v11 }
  0xaf   :  { %248 = vmatmul.f32.vlgmr.msra.gmra.mxu3 %v160_v12 }
  0xb1   :  { %v121_v13 = vpop.f32.mrf.mxu0 }
  0xb2   :  { %v150_v14 = vpop.f32.mrf.mxu1  ;;  %v122_v15 = vadd.f32 %v121_v13, %v97_v5 }
  0xb3   :  { %v151_v16 = vadd.f32 %v150_v14, %v98_v6 }
  0xb4   :  { %v161_v17 = vmax.f32 %v122_v15, 0.0 }
  0xb5   :  { %v162_v18 = vmax.f32 %v151_v16, 0.0 }
  0xb6   :  { %222 = vmatmul.f32.gmra.mxu2 %v161_v17 }
  0xb7   :  { %251 = vmatmul.f32.gmra.mxu3 %v162_v18 }
  0xb9   :  { %v124_v19 = vpop.f32.mrf.mxu0 }
  0xba   :  { %v153_v20 = vpop.f32.mrf.mxu1  ;;  %v125_v21 = vadd.f32 %v124_v19, %v97_v5 }
  0xbb   :  { %v154_v22 = vadd.f32 %v153_v20, %v98_v6 }
  0xbc   :  { %v163_v23 = vmax.f32 %v125_v21, 0.0 }
  0xbd   :  { %v164_v24 = vmax.f32 %v154_v22, 0.0 }
  0xbe   :  { %225 = vmatmul.f32.gmra.mxu2 %v163_v23 }
  0xbf   :  { %254 = vmatmul.f32.gmra.mxu3 %v164_v24 }
  0xc1   :  { %v127_v25 = vpop.f32.mrf.mxu0 }
  0xc2   :  { %v156_v26 = vpop.f32.mrf.mxu1  ;;  %v128_v27 = vadd.f32 %v127_v25, %v97_v5 }
  0xc3   :  { %v157_v28 = vadd.f32 %v156_v26, %v98_v6 }
  0xc4   :  { %v165_v29 = vmax.f32 %v128_v27, 0.0 }
  0xc5   :  { %v166_v30 = vmax.f32 %v157_v28, 0.0  ;;  %v401_v28 = vld [vmem:[%s613_s5] ss:$0 sm:$0xff]  ;;  %s498_s5 = smov [#allocation7]  }
  0xc6   :  { %228 = vmatmul.f32.gmra.mxu2 %v165_v29 }
  0xc7   :  { %257 = vmatmul.f32.gmra.mxu3 %v166_v30 }
 0x131   :  { %v220_v32 = vpop.f32.mrf.mxu2 }
 0x132   :  { %v249_v33 = vpop.f32.mrf.mxu3  ;;  %v221_v34 = vadd.f32 %v400_v31, %v220_v32  ;;  %v402_v32 = vld [vmem:[%s614_s6] ss:$0 sm:$0xff]  ;;  %s376_s6 = sshll.u32 %s498_s5, 4  ;;  %s377_s6 = int_to_ptr.vmem [resolvable:$true] %s376_s6 }
 0x134   :  { %v250_v35 = vadd.f32 %v249_v33, %v221_v34 }
 0x136   :  { %v261_v36 = vadd.f32 %v250_v35, %v551_v38 }
 0x138   :  { %267 = vadd.xlane.f32.xlu0 %v261_v36 }
 0x139   :  { %v223_v37 = vpop.f32.mrf.mxu2 }
 0x13a   :  { %v252_v39 = vpop.f32.mrf.mxu3  ;;  %v224_v40 = vadd.f32 %v400_v31, %v223_v37 }
 0x13c   :  { %v253_v41 = vadd.f32 %v252_v39, %v224_v40 }
 0x13e   :  { %v262_v42 = vadd.f32 %v253_v41, %v558_v47  ;;  %v277_v47 = vsub.f32 1.0, %v276_v55 }
 0x140   :  { %269 = vadd.xlane.f32.xlu0 %v262_v42  ;;  %v278_v57 = vmul.f32 %v404_v54, %v277_v47 }
 0x141   :  { %v226_v43 = vpop.f32.mrf.mxu2 }
 0x142   :  { %v255_v44 = vpop.f32.mrf.mxu3  ;;  %v227_v45 = vadd.f32 %v400_v31, %v226_v43  ;;  %v279_v58 = vadd.f32 %v404_v54, %v278_v57 }
 0x144   :  { %v256_v46 = vadd.f32 %v255_v44, %v227_v45  ;;  %v281_v59 = vsel %vm280_vm0, %v404_v54, %v279_v58 }
 0x146   :  { %v263_v48 = vadd.f32 %v256_v46, %v565_v56 }
 0x148   :  { %271 = vadd.xlane.f32.xlu1 %v263_v48 }
 0x149   :  { %v229_v49 = vpop.f32.mrf.mxu2 }
 0x14a   :  { %v258_v50 = vpop.f32.mrf.mxu3  ;;  %v230_v51 = vadd.f32 %v400_v31, %v229_v49 }
 0x14c   :  { %v259_v52 = vadd.f32 %v258_v50, %v230_v51 }
 0x14e   :  { %v264_v38 = vadd.f32 %v259_v52, %v572_v60 }
 0x150   :  { %273 = vadd.xlane.f32.xlu1 %v264_v38 }
 0x1ab   :  { %v268_v61 = vpop.xlane.xlu0 %267 }
 0x1ac   :  { %v282_v62 = vmul.f32 %v281_v59, %v268_v61 }
 0x1ae   :  { %v286_v56 = vsub.f32 %v261_v36, %v282_v62 }
 0x1b0   :  { %v290_v63 = vmul.f32 %v286_v56, %v286_v56 }
 0x1b2   :  { %294 = vadd.xlane.f32.xlu2 %v290_v63 }
 0x1b3   :  { %v270_v0 = vpop.xlane.xlu0 %269 }
 0x1b4   :  { %v283_v1 = vmul.f32 %v281_v59, %v270_v0 }
 0x1b6   :  { %v287_v2 = vsub.f32 %v262_v42, %v283_v1 }
 0x1b8   :  { %v291_v3 = vmul.f32 %v287_v2, %v287_v2 }
 0x1ba   :  { %296 = vadd.xlane.f32.xlu2 %v291_v3 }
 0x1bb   :  { %v272_v60 = vpop.xlane.xlu1 %271 }
 0x1bc   :  { %v284_v4 = vmul.f32 %v281_v59, %v272_v60 }
 0x1be   :  { %v586_v5 = vsub.f32 %v263_v48, %v284_v4 }
 0x1c0   :  { %v292_v6 = vmul.f32 %v586_v5, %v586_v5 }
 0x1c2   :  { %298 = vadd.xlane.f32.xlu0 %v292_v6 }
 0x1c3   :  { %v274_v7 = vpop.xlane.xlu1 %273 }
 0x1c4   :  { %v285_v8 = vmul.f32 %v281_v59, %v274_v7 }
 0x1c6   :  { %v590_v9 = vsub.f32 %v264_v38, %v285_v8 }
 0x1c8   :  { %v293_v10 = vmul.f32 %v590_v9, %v590_v9 }
 0x1ca   :  { %300 = vadd.xlane.f32.xlu1 %v293_v10 }
 0x225   :  { %v295_v11 = vpop.xlane.xlu2 %294 }
 0x226   :  { %v302_v12 = vmul.f32 %v295_v11, %v281_v59 }
 0x228   :  { %v306_v13 = vadd.f32 1e-08, %v302_v12 }
 0x22a   :  { %405 = vrsqrt.f32 %v306_v13  ;;  %vm316_vm2 = vweird.f32 %v306_v13 }
 0x22d   :  { %v297_v14 = vpop.xlane.xlu2 %296 }
 0x22e   :  { %v303_v15 = vmul.f32 %v297_v14, %v281_v59 }
 0x230   :  { %v406_v16 = vpop.eup %405  ;;  %v307_v17 = vadd.f32 1e-08, %v303_v15 }
 0x231   :  { %v311_v18 = vmul.f32 %v406_v16, %v306_v13  ;;  %vm317_vm1 = vweird.f32 %v406_v16 }
 0x232   :  { %407 = vrsqrt.f32 %v307_v17  ;;  %vm318_vm3 = vmor %vm316_vm2, %vm317_vm1  ;;  %vm326_vm5 = vweird.f32 %v307_v17 }
 0x233   :  { %v312_v19 = vmul.f32 %v406_v16, %v311_v18 }
 0x235   :  { %v313_v20 = vmul.f32 0.5, %v312_v19  ;;  %v299_v21 = vpop.xlane.xlu0 %298 }
 0x236   :  { %v304_v22 = vmul.f32 %v299_v21, %v281_v59 }
 0x237   :  { %v314_v23 = vsub.f32 1.5, %v313_v20 }
 0x238   :  { %v408_v24 = vpop.eup %407  ;;  %v308_v25 = vadd.f32 1e-08, %v304_v22 }
 0x239   :  { %v315_v26 = vmul.f32 %v406_v16, %v314_v23  ;;  %v321_v27 = vmul.f32 %v408_v24, %v307_v17  ;;  %vm327_vm4 = vweird.f32 %v408_v24 }
 0x23a   :  { %409 = vrsqrt.f32 %v308_v25  ;;  %vm328_vm6 = vmor %vm326_vm5, %vm327_vm4  ;;  %vm336_vm8 = vweird.f32 %v308_v25 }
 0x23b   :  { %v319_v29 = vsel %vm318_vm3, %v406_v16, %v315_v26  ;;  %v322_v30 = vmul.f32 %v408_v24, %v321_v27 }
 0x23c   :  { %v350_v31 = vmul.f32 %v319_v29, %v286_v56 }
 0x23d   :  { %v323_v33 = vmul.f32 0.5, %v322_v30  ;;  %v301_v34 = vpop.xlane.xlu1 %300 }
 0x23e   :  { %v357_v35 = vmul.f32 %v401_v28, %v350_v31  ;;  %v305_v36 = vmul.f32 %v301_v34, %v281_v59 }
 0x23f   :  { %v324_v37 = vsub.f32 1.5, %v323_v33 }
 0x240   :  { %v410_v39 = vpop.eup %409  ;;  %v309_v40 = vadd.f32 1e-08, %v305_v36  ;;  %v364_v41 = vadd.f32 %v402_v32, %v357_v35 }
 0x241   :  { %v325_v42 = vmul.f32 %v408_v24, %v324_v37  ;;  %v331_v43 = vmul.f32 %v410_v39, %v308_v25  ;;  %vm337_vm7 = vweird.f32 %v410_v39 }
 0x242   :  { %411 = vrsqrt.f32 %v309_v40  ;;  %368 = vst [vmem:[#allocation7] sm:$0xff] %v364_v41  ;;  %vm338_vm9 = vmor %vm336_vm8, %vm337_vm7  ;;  %vm346_vm11 = vweird.f32 %v309_v40 }
 0x243   :  { %v329_v44 = vsel %vm328_vm6, %v408_v24, %v325_v42  ;;  %v332_v45 = vmul.f32 %v410_v39, %v331_v43 }
 0x244   :  { %v351_v46 = vmul.f32 %v329_v44, %v287_v2 }
 0x245   :  { %v333_v48 = vmul.f32 0.5, %v332_v45 }
 0x246   :  { %v358_v49 = vmul.f32 %v401_v28, %v351_v46 }
 0x247   :  { %v334_v50 = vsub.f32 1.5, %v333_v48 }
 0x248   :  { %v412_v51 = vpop.eup %411  ;;  %v365_v52 = vadd.f32 %v402_v32, %v358_v49 }
 0x249   :  { %v335_v38 = vmul.f32 %v410_v39, %v334_v50  ;;  %v341_v53 = vmul.f32 %v412_v51, %v309_v40  ;;  %vm347_vm10 = vweird.f32 %v412_v51 }
 0x24a   :  { %369 = vst [vmem:[#allocation7 + $0x8] sm:$0xff] %v365_v52  ;;  %vm348_vm12 = vmor %vm346_vm11, %vm347_vm10 }
 0x24b   :  { %v339_v54 = vsel %vm338_vm9, %v410_v39, %v335_v38  ;;  %v342_v55 = vmul.f32 %v412_v51, %v341_v53 }
 0x24c   :  { %v352_v47 = vmul.f32 %v339_v54, %v586_v5 }
 0x24d   :  { %v343_v57 = vmul.f32 0.5, %v342_v55 }
 0x24e   :  { %v359_v58 = vmul.f32 %v401_v28, %v352_v47 }
 0x24f   :  { %v344_v59 = vsub.f32 1.5, %v343_v57 }
 0x250   :  { %v366_v61 = vadd.f32 %v402_v32, %v359_v58 }
 0x251   :  { %v345_v62 = vmul.f32 %v412_v51, %v344_v59 }
 0x252   :  { %370 = vst [vmem:[#allocation7 + $0x10] sm:$0xff] %v366_v61 }
 0x253   :  { %v349_v56 = vsel %vm348_vm12, %v412_v51, %v345_v62 }
 0x254   :  { %v353_v63 = vmul.f32 %v349_v56, %v590_v9 }
 0x256   :  { %v360_v0 = vmul.f32 %v401_v28, %v353_v63 }
 0x258   :  { %v367_v1 = vadd.f32 %v402_v32, %v360_v0 }
 0x25a   :  { %371 = vst [vmem:[#allocation7 + $0x18] sm:$0xff] %v367_v1 }
 0x25b   :  { %384 = dma.vmem_to_hbm [thread:$0]  %s377_s6, 512, %s379_s28, [#allocation4], %s495_s13, %s495_s13, %s496_s14  }
 0x25c   :  { %489 = dma.done.wait [#allocation4], 512  }
 0x25d   :  { %490 = vsyncadd [#allocation4], 4294966784 }
 0x25e   :  { %389 = vsyncpa [#allocation3], 1 }
 0x25f   :  { %390 = vsyncpa [#allocation6], 1 }
 0x260   :  { %391 = vsyncpa [#allocation4], 1 }

// kernel: decoder_forward.12
= control target key start
LH: loop header
LB: loop body
LE: loop exit
PB: predicated region body
PF: predicated region fallthrough
CT: control target
= control target key end

     0   :  { %13 = vsyncpa [#allocation3], 0  ;;  %s1788_s0 = inlined_call_operand.vmem [shape: f32[2,16,128], index: 0, kind: input, shape index: {}]   ;;  %s1789_s1 = inlined_call_operand.vmem [shape: f32[2,16,1], index: 1, kind: input, shape index: {}]   ;;  %s1790_s2 = inlined_call_operand.vmem [shape: f32[2,1,16], index: 2, kind: input, shape index: {}]   ;;  %s1791_s3 = inlined_call_operand.hbm [shape: f32[128,384], index: 3, kind: input, shape index: {}]   ;;  %s1792_s4 = inlined_call_operand.hbm [shape: f32[128,128], index: 4, kind: input, shape index: {}]   ;;  %s1793_s5 = inlined_call_operand.vmem [shape: f32[1,128], index: 5, kind: input, shape index: {}]   ;;  %s1794_s6 = inlined_call_operand.vmem [shape: f32[1,128], index: 6, kind: input, shape index: {}]   ;;  %s1795_s7 = inlined_call_operand.vmem [shape: f32[1,128], index: 7, kind: input, shape index: {}]   ;;  %s1796_s8 = inlined_call_operand.vmem [shape: f32[2,16,128], index: 8, kind: output, shape index: {}]  }
   0x1   :  { %14 = vsyncpa [#allocation5], 0  ;;  %s1524_s27 = smov 0  }
   0x2 LB: > { %s245_s30 = sshll.u32 %s1791_s3, 4  ;;  %s1533_s9 = sadd.s32 4294967295, %s1465_s27   ;;  %s1465_s27 = sphi %s1524_s27, %s20_s27   ;;  %s246_s30 = int_to_ptr.hbm [resolvable:$true] %s245_s30 }
   0x3   : > { %p1251_p0 = scmp.ge.s32.totalorder %s1465_s27, 1  ;;  %p234_p1 = scmp.lt.s32.totalorder %s1465_s27, 3 }
   0x4   : > { %p1310_p2 = scmp.eq.s32.totalorder %s1533_s9, 0  ;;  %s1467_s11 = smov [#allocation2]  }
   0x5   : > { %p1538_p3 = pnand %p1251_p0, %p234_p1  ;;  %s247_s12 = sshll.u32 %s1467_s11, 4  ;;  %s248_s12 = int_to_ptr.vmem [resolvable:$true] %s247_s12 }
   0x6   : > { %s259_s15 = sshll.u32 %s1792_s4, 4  ;;  %s1468_s16 = smov [#allocation4]   ;;  %s260_s15 = int_to_ptr.hbm [resolvable:$true] %s259_s15 }
   0x7   : > { %p1303_p4 = pneg %p1538_p3  ;;  %s261_s17 = sshll.u32 %s1468_s16, 4  ;;  %s262_s17 = int_to_ptr.vmem [resolvable:$true] %s261_s17 }
   0x8   : > { %s1469_s18 = smov 384   ;;  %s1470_s19 = smov 24  }
   0x9   : > { %p1304_p5 = pnand %p1310_p2, %p1303_p4  ;;  %s1471_s20 = smov 128  }
   0xa   : > { %s1472_s21 = smov 8   ;;  %308 = sbr.rel (%p1538_p3) target bundleno = 1684 (0x694), region = 52 }
   0xb   : > { %1306 = dma.hbm_to_vmem [thread:$0]  (!%p1304_p5), %s246_s30, 6144, %s248_s12, [#allocation3], %s1469_s18, %s1469_s18, %s1470_s19  }
   0xc   : > { %1309 = dma.hbm_to_vmem [thread:$0]  (!%p1304_p5), %s260_s15, 2048, %s262_s17, [#allocation5], %s1471_s20, %s1471_s20, %s1472_s21  }
   0xf   : > { %1456 = dma.done.wait (%p1310_p2), [#allocation3], 6144  }
  0x10   : > { %1458 = vsyncadd (%p1310_p2), [#allocation3], 4294961152 }
  0x11   : > { %1460 = dma.done.wait (%p1310_p2), [#allocation5], 2048  }
  0x12   : > { %1462 = vsyncadd (%p1310_p2), [#allocation5], 4294965248  ;;  %v422_v0 = vld [vmem:[#allocation2 + $0x170] sm:$0xff]  ;;  %v419_v1 = vld [vmem:[#allocation2 + $0x158] sm:$0xff]  ;;  %p356_p6 = scmp.lt.s32.totalorder %s1533_s9, 1  ;;  %v1473_v30 = vmov 0  }
  0x13   : > { %447 = vmatpush.msra.mxu1 %v422_v0  ;;  %v416_v2 = vld [vmem:[#allocation2 + $0x140] sm:$0xff]  ;;  %v421_v3 = vld [vmem:[#allocation2 + $0x168] sm:$0xff]  ;;  %v418_v4 = vld [vmem:[#allocation2 + $0x150] sm:$0xff]  ;;  %1334 = vset.pattern.permute.xlu0 %v1473_v30  ;;  %s1474_s30 = smov 96   ;;  %vm531_vm2 = vcmask 261120   ;;  %s1475_s10 = smov 64  }
  0x14   : > { %424 = vmatpush.msra.mxu0 %v421_v3  ;;  %v413_v5 = vld [vmem:[#allocation2 + $0x128] sm:$0xff]  ;;  %v415_v6 = vld [vmem:[#allocation2 + $0x138] sm:$0xff]  ;;  %v410_v7 = vld [vmem:[#allocation2 + $0x110] sm:$0xff]  ;;  %s1803_s9 = smov (!%p356_p6, %s1533_s9), 1  ;;  %s1476_s11 = smov 32   ;;  %v496_v3 = vlaneseq  ;;  %vm567_vm13 = vcmask 130048  }
  0x15   : > { %448 = vmatpush.msra.mxu1 %v419_v1  ;;  %v412_v8 = vld [vmem:[#allocation2 + $0x120] sm:$0xff]  ;;  %v407_v9 = vld [vmem:[#allocation2 + $0xf8] sm:$0xff]  ;;  %v409_v10 = vld [vmem:[#allocation2 + $0x108] sm:$0xff]  ;;  %s1564_s22 = sshll.u32 %s1803_s9, 4  ;;  %s368_s14 = scalar_lea.vmem %s1790_s2, %s1803_s9 }
  0x16   : > { %425 = vmatpush.msra.mxu0 %v418_v4  ;;  %v404_v11 = vld [vmem:[#allocation2 + $0xe0] sm:$0xff]  ;;  %v406_v12 = vld [vmem:[#allocation2 + $0xf0] sm:$0xff]  ;;  %v423_v13 = vld [vmem:[#allocation2 + $0x178] sm:$0xff]  ;;  %s1570_s25 = scalar_lea.vmem %s1789_s1, %s1564_s22  ;;  %s360_s29 = scalar_lea.vmem %s1788_s0, %s1564_s22  ;;  %v500_v4 = vand.u32 127, %v496_v3 }
  0x17   : > { %449 = vmatpush.msra.mxu1 %v416_v2  ;;  %v420_v14 = vld [vmem:[#allocation2 + $0x160] sm:$0xff]  ;;  %v401_v15 = vld [vmem:[#allocation2 + $0xc8] sm:$0xff]  ;;  %v403_v16 = vld [vmem:[#allocation2 + $0xd8] sm:$0xff]  ;;  %470 = vmatpush.msra.mxu2 %v423_v13  ;;  %s373_s23 = scalar_lea.vmem %s1796_s8, %s1564_s22 }
  0x18   : > { %426 = vmatpush.msra.mxu0 %v415_v6  ;;  %v417_v17 = vld [vmem:[#allocation2 + $0x148] sm:$0xff]  ;;  %v398_v18 = vld [vmem:[#allocation2 + $0xb0] sm:$0xff]  ;;  %v400_v19 = vld [vmem:[#allocation2 + $0xc0] sm:$0xff]  ;;  %v497_v6 = vshrl.u32 %v496_v3, 7 }
  0x19   : > { %450 = vmatpush.msra.mxu1 %v413_v5  ;;  %471 = vmatpush.msra.mxu2 %v420_v14  ;;  %v414_v20 = vld [vmem:[#allocation2 + $0x130] sm:$0xff]  ;;  %v395_v21 = vld [vmem:[#allocation2 + $0x98] sm:$0xff]  ;;  %v397_v22 = vld [vmem:[#allocation2 + $0xa8] sm:$0xff] }
  0x1a   : > { %427 = vmatpush.msra.mxu0 %v412_v8  ;;  %v411_v23 = vld [vmem:[#allocation2 + $0x118] sm:$0xff]  ;;  %v392_v24 = vld [vmem:[#allocation2 + $0x80] sm:$0xff]  ;;  %v394_v25 = vld [vmem:[#allocation2 + $0x90] sm:$0xff]  ;;  %vm519_vm6 = vcmp.le.s32.totalorder %v500_v4, %v497_v6  ;;  %v1477_v8 = vmov 0.0  }
  0x1b   : > { %451 = vmatpush.msra.mxu1 %v410_v7  ;;  %472 = vmatpush.msra.mxu2 %v417_v17  ;;  %v408_v26 = vld [vmem:[#allocation2 + $0x100] sm:$0xff]  ;;  %v389_v28 = vld [vmem:[#allocation2 + $0x68] sm:$0xff]  ;;  %v391_v29 = vld [vmem:[#allocation2 + $0x78] sm:$0xff] }
  0x1c   : > { %428 = vmatpush.msra.mxu0 %v409_v10  ;;  %v494_v27 = vld [vmem:[%s1570_s25] sm:$0xff]  ;;  %v405_v31 = vld [vmem:[#allocation2 + $0xe8] sm:$0xff]  ;;  %v386_v33 = vld [vmem:[#allocation2 + $0x50] sm:$0xff]  ;;  %v498_v10 = vadd.s32 8, %v497_v6 }
  0x1d   : > { %452 = vmatpush.msra.mxu1 %v407_v9  ;;  %473 = vmatpush.msra.mxu2 %v414_v20  ;;  %vm502_vm0 = vcmp.gt.f32.partialorder %v494_v27, 0.5  ;;  %v388_v34 = vld [vmem:[#allocation2 + $0x60] sm:$0xff]  ;;  %v402_v35 = vld [vmem:[#allocation2 + $0xd0] sm:$0xff]  ;;  %v383_v36 = vld [vmem:[#allocation2 + $0x38] sm:$0xff] }
  0x1e   : > { %429 = vmatpush.msra.mxu0 %v406_v12  ;;  %v507_v32 = vsel %vm502_vm0, 1, %v1473_v30  ;;  %v385_v37 = vld [vmem:[#allocation2 + $0x48] sm:$0xff]  ;;  %v399_v38 = vld [vmem:[#allocation2 + $0xb8] sm:$0xff]  ;;  %v380_v39 = vld [vmem:[#allocation2 + $0x20] sm:$0xff]  ;;  %vm520_vm10 = vcmp.le.s32.totalorder %v500_v4, %v498_v10 }
  0x1f   : > { %453 = vmatpush.msra.mxu1 %v404_v11  ;;  %474 = vmatpush.msra.mxu2 %v411_v23  ;;  %v382_v40 = vld [vmem:[#allocation2 + $0x30] sm:$0xff]  ;;  %v396_v41 = vld [vmem:[#allocation2 + $0xa0] sm:$0xff]  ;;  %v377_v42 = vld [vmem:[#allocation2 + $0x8] sm:$0xff] }
  0x20   : > { %430 = vmatpush.msra.mxu0 %v403_v16  ;;  %510 = vperm.xlu0 %1334, %v507_v32   ;;  %v379_v43 = vld [vmem:[#allocation2 + $0x18] sm:$0xff]  ;;  %v1579_v44 = vld [vmem:[%s360_s29] sm:$0xff]  ;;  %v393_v45 = vld [vmem:[#allocation2 + $0x88] sm:$0xff] }
  0x21   : > { %454 = vmatpush.msra.mxu1 %v401_v15  ;;  %475 = vmatpush.msra.mxu2 %v408_v26  ;;  %v376_v46 = vld [vmem:[#allocation2] sm:$0xff]  ;;  %v390_v47 = vld [vmem:[#allocation2 + $0x70] sm:$0xff]  ;;  %v387_v48 = vld [vmem:[#allocation2 + $0x58] sm:$0xff] }
  0x22   : > { %431 = vmatpush.msra.mxu0 %v400_v19  ;;  %v384_v49 = vld [vmem:[#allocation2 + $0x40] sm:$0xff]  ;;  %v1583_v50 = vld [vmem:[%s360_s29 + $0x8] sm:$0xff]  ;;  %v378_v52 = vld [vmem:[#allocation2 + $0x10] sm:$0xff] }
  0x23   : > { %455 = vmatpush.msra.mxu1 %v398_v18  ;;  %476 = vmatpush.msra.mxu2 %v405_v31  ;;  %v381_v51 = vld [vmem:[#allocation2 + $0x28] sm:$0xff]  ;;  %v493_v63 = vld [vmem:[%s368_s14] sm:$0x1] }
  0x24   : > { %432 = vmatpush.msra.mxu0 %v397_v22  ;;  %v495_v53 = vld [vmem:[%s1570_s25 + $0x8] sm:$0xff]  ;;  %vm501_vm3 = vcmp.gt.f32.partialorder %v493_v63, 0.5 }
  0x25   : > { %456 = vmatpush.msra.mxu1 %v395_v21  ;;  %477 = vmatpush.msra.mxu2 %v402_v35  ;;  %vm503_vm1 = vcmp.gt.f32.partialorder %v495_v53, 0.5  ;;  %v504_v0 = vsel %vm501_vm3, 1, %v1473_v30 }
  0x26   : > { %433 = vmatpush.msra.mxu0 %v394_v25  ;;  %v508_v54 = vsel %vm503_vm1, 1, %v1473_v30  ;;  %v505_v2 = vperm.slane %v504_v0, 0 }
  0x27   : > { %457 = vmatpush.msra.mxu1 %v392_v24  ;;  %478 = vmatpush.msra.mxu2 %v399_v38 }
  0x28   : > { %434 = vmatpush.msra.mxu0 %v391_v29  ;;  %513 = vperm.xlu0 %1334, %v508_v54   ;;  %vm1623_vm4 = vcmp.eq.s32.totalorder %v505_v2, 1 }
  0x29   : > { %458 = vmatpush.msra.mxu1 %v389_v28  ;;  %479 = vmatpush.msra.mxu2 %v396_v41 }
  0x2a   : > { %435 = vmatpush.msra.mxu0 %v388_v34 }
  0x2b   : > { %459 = vmatpush.msra.mxu1 %v386_v33  ;;  %480 = vmatpush.msra.mxu2 %v393_v45 }
  0x2c   : > { %436 = vmatpush.msra.mxu0 %v385_v37 }
  0x2d   : > { %460 = vmatpush.msra.mxu1 %v383_v36  ;;  %481 = vmatpush.msra.mxu2 %v390_v47 }
  0x2e   : > { %437 = vmatpush.msra.mxu0 %v382_v40 }
  0x2f   : > { %461 = vmatpush.msra.mxu1 %v380_v39  ;;  %482 = vmatpush.msra.mxu2 %v387_v48 }
  0x30   : > { %438 = vmatpush.msra.mxu0 %v379_v43 }
  0x31   : > { %462 = vmatpush.msra.mxu1 %v377_v42  ;;  %483 = vmatpush.msra.mxu2 %v384_v49 }
  0x32   : > { %463 = vmatmul.f32.vlgmr.msra.gmra.mxu1 %v1579_v44  ;;  %439 = vmatpush.msra.mxu0 %v376_v46 }
  0x33   : > { %440 = vmatmul.f32.vlgmr.msra.gmra.mxu0 %v1579_v44  ;;  %484 = vmatpush.msra.mxu2 %v381_v51 }
  0x35   : > { %485 = vmatpush.msra.mxu2 %v378_v52 }
  0x36   : > { %486 = vmatmul.f32.vlgmr.msra.gmra.mxu2 %v1579_v44 }
  0x3a   : > { %466 = vmatmul.f32.gmra.mxu1 %v1583_v50 }
  0x3b   : > { %443 = vmatmul.f32.gmra.mxu0 %v1583_v50 }
  0x3e   : > { %489 = vmatmul.f32.gmra.mxu2 %v1583_v50 }
  0x92   : > { %v511_v61 = vpop.permute.xlu0 %510 }
  0x93   : > { %vm515_vm5 = vcmp.eq.s32.totalorder %v511_v61, 1 }
  0x94   : > { %vm517_vm7 = vmand %vm1623_vm4, %vm515_vm5 }
  0x95   : > { %vm521_vm8 = vmand %vm517_vm7, %vm519_vm6 }
  0x96   : > { %v1264_v9 = vsel %vm521_vm8, 1.0, %v1477_v8 }
  0x97   : > { %v527_v12 = vsub.f32 1.0, %v1264_v9 }
  0x99   : > { %v1633_v13 = vmul.f32 -3.4028235e+38, %v527_v12 }
  0x9a   : > { %v514_v62 = vpop.permute.xlu0 %513 }
  0x9b   : > { %vm516_vm9 = vcmp.eq.s32.totalorder %v514_v62, 1 }
  0x9c   : > { %vm518_vm11 = vmand %vm1623_vm4, %vm516_vm9 }
  0x9d   : > { %vm522_vm12 = vmand %vm518_vm11, %vm520_vm10 }
  0x9e   : > { %v1265_v14 = vsel %vm522_vm12, 1.0, %v1477_v8 }
  0x9f   : > { %v528_v17 = vsub.f32 1.0, %v1265_v14 }
  0xa1   : > { %v1637_v19 = vmul.f32 -3.4028235e+38, %v528_v17 }
  0xaf   : > { %v1591_v55 = vpop.f32.mrf.mxu1 }
  0xb0   : > { %v1593_v56 = vpop.f32.mrf.mxu0 }
  0xb1   : > { %645 = vrot.lane.b32.xlu2 %v1593_v56, %s1474_s30 }
  0xb7   : > { %v467_v57 = vpop.f32.mrf.mxu1 }
  0xb8   : > { %651 = vrot.lane.b32.xlu0 %v467_v57, %s1474_s30  ;;  %1266 = vmatpush.xpose.msk.msra.mxu3 %vm531_vm2, %v467_v57  ;;  %v444_v58 = vpop.f32.mrf.mxu0 }
  0xb9   : > { %v1611_v59 = vpop.f32.mrf.mxu2 }
  0xbc   : > { %1267 = vmatpush.xpose.msk.msra.mxu3 %vm531_vm2, %v1591_v55 }
  0xbf   : > { %1268 = vmatmul.msk.f32.vlgmr.msra.gmra.mxu3 %vm531_vm2, %v1593_v56 }
  0xc0   : > { %775 = vrot.lane.b32.xlu0 %v467_v57, %s1475_s10 }
  0xc1   : > { %v1613_v60 = vpop.f32.mrf.mxu2 }
  0xc2   : > { %636 = vmatpush.msrb.mxu3 %v1613_v60 }
  0xc4   : > { %637 = vmatpush.msrb.mxu3 %v1611_v59 }
  0xc7   : > { %1269 = vmatmul.msk.f32.gmra.mxu3 %vm531_vm2, %v444_v58 }
  0xc8   : > { %773 = vrot.lane.b32.xlu0 %v1591_v55, %s1475_s10 }
  0xd0   : > { %647 = vrot.lane.b32.xlu0 %v444_v58, %s1474_s30 }
  0xd8   : > { %895 = vrot.lane.b32.xlu0 %v1591_v55, %s1476_s11 }
  0xe0   : > { %893 = vrot.lane.b32.xlu0 %v444_v58, %s1476_s11 }
 0x10b   : > { %v646_v34 = vpop.permute.xlu2 %645 }
 0x12a   : > { %v652_v1 = vpop.permute.xlu0 %651 }
 0x12b   : > { %1272 = vmatpush.xpose.msk.msra.mxu3 %vm531_vm2, %v652_v1 }
 0x132   : > { %v776_v7 = vpop.permute.xlu0 %775 }
 0x133   : > { %1278 = vmatpush.xpose.msk.msrb.mxu2 %vm531_vm2, %v776_v7 }
 0x13a   : > { %v774_v11 = vpop.permute.xlu0 %773 }
 0x13b   : > { %1279 = vmatpush.xpose.msk.msrb.mxu2 %vm531_vm2, %v774_v11 }
 0x142   : > { %v561_v15 = vpop.f32.mrf.mxu3  ;;  %v648_v43 = vpop.permute.xlu0 %647 }
 0x143   : > { %v562_v16 = vadd.f32 %v561_v15, %v1633_v13 }
 0x145   : > { %v568_v18 = vsel %vm567_vm13, %v562_v16, -inf }
 0x146   : > { %569 = vmax.xlane.f32.xlu1 %v568_v18 }
 0x14a   : > { %v564_v20 = vpop.f32.mrf.mxu3  ;;  %v896_v63 = vpop.permute.xlu0 %895 }
 0x14b   : > { %v565_v21 = vadd.f32 %v564_v20, %v1637_v19 }
 0x14d   : > { %v571_v22 = vsel %vm567_vm13, %v565_v21, -inf }
 0x14e   : > { %572 = vmax.xlane.f32.xlu1 %v571_v22 }
 0x152   : > { %v894_v5 = vpop.permute.xlu0 %893 }
 0x167   : > { %649 = vrot.lane.b32.xlu1 %v1591_v55, %s1474_s30 }
 0x16f   : > { %897 = vrot.lane.b32.xlu1 %v467_v57, %s1476_s11 }
 0x177   : > { %771 = vrot.lane.b32.xlu1 %v444_v58, %s1475_s10 }
 0x1b9   : > { %v570_v23 = vpop.xlane.xlu1 %569 }
 0x1ba   : > { %v574_v24 = vsub.f32 %v562_v16, %v570_v23 }
 0x1bc   : > { %v576_v25 = vmul.f32 1.442695, %v574_v24 }
 0x1be   : > { %1353 = vpow2.f32 %v576_v25 }
 0x1c1   : > { %v573_v26 = vpop.xlane.xlu1 %572 }
 0x1c2   : > { %v575_v27 = vsub.f32 %v565_v21, %v573_v26 }
 0x1c4   : > { %v1354_v28 = vpop.eup %1353  ;;  %v578_v29 = vmul.f32 1.442695, %v575_v27 }
 0x1c5   : > { %v580_v30 = vsel %vm567_vm13, %v1354_v28, 0.0 }
 0x1c6   : > { %1355 = vpow2.f32 %v578_v29  ;;  %581 = vadd.xlane.f32.xlu2 %v580_v30 }
 0x1cc   : > { %v1356_v31 = vpop.eup %1355 }
 0x1cd   : > { %v583_v32 = vsel %vm567_vm13, %v1356_v31, 0.0 }
 0x1ce   : > { %584 = vadd.xlane.f32.xlu2 %v583_v32 }
 0x1d9   : > { %v650_v33 = vpop.permute.xlu1 %649 }
 0x1da   : > { %1273 = vmatpush.xpose.msk.msra.mxu3 %vm531_vm2, %v650_v33 }
 0x1e1   : > { %v898_v45 = vpop.permute.xlu1 %897 }
 0x1e6   : > { %769 = vrot.lane.b32.xlu2 %v1593_v56, %s1475_s10 }
 0x1e9   : > { %v772_v0 = vpop.permute.xlu1 %771 }
 0x1ee   : > { %891 = vrot.lane.b32.xlu2 %v1593_v56, %s1476_s11 }
 0x239   : > { %v582_v35 = vpop.xlane.xlu2 %581 }
 0x23a   : > { %1357 = vrcp.f32 %v582_v35  ;;  %v597_v40 = vand.u32 2147483648, %v582_v35  ;;  %v595_v42 = vand.u32 2147483647, %v582_v35  ;;  %vm591_vm15 = vweird.f32 %v582_v35 }
 0x23c   : > { %v598_v48 = vor.u32 1.1754944e-38, %v597_v40  ;;  %vm596_vm1 = vcmp.eq.f32.partialorder %v595_v42, 8.507059e+37 }
 0x240   : > { %v1358_v36 = vpop.eup %1357 }
 0x241   : > { %v587_v37 = vmul.f32 %v1358_v36, %v582_v35  ;;  %v585_v38 = vpop.xlane.xlu2 %584  ;;  %vm592_vm14 = vweird.f32 %v1358_v36 }
 0x242   : > { %1359 = vrcp.f32 %v585_v38  ;;  %vm593_vm0 = vmor %vm591_vm15, %vm592_vm14  ;;  %v612_v56 = vand.u32 2147483648, %v585_v38  ;;  %v610_v58 = vand.u32 2147483647, %v585_v38  ;;  %vm606_vm4 = vweird.f32 %v585_v38 }
 0x243   : > { %v588_v39 = vsub.f32 1.0, %v587_v37 }
 0x244   : > { %v613_v62 = vor.u32 1.1754944e-38, %v612_v56  ;;  %vm611_vm6 = vcmp.eq.f32.partialorder %v610_v58, 8.507059e+37  ;;  %v1335_v58 = vpack.i.bf16 %v1611_v59, %v1613_v60 }
 0x245   : > { %v589_v41 = vmul.f32 %v1358_v36, %v588_v39 }
 0x247   : > { %v590_v46 = vadd.f32 %v1358_v36, %v589_v41 }
 0x248   : > { %v1360_v47 = vpop.eup %1359 }
 0x249   : > { %v602_v49 = vmul.f32 %v1360_v47, %v585_v38  ;;  %v770_v51 = vpop.permute.xlu2 %769  ;;  %v594_v52 = vsel %vm593_vm0, %v1358_v36, %v590_v46  ;;  %vm607_vm3 = vweird.f32 %v1360_v47 }
 0x24a   : > { %1280 = vmatmul.msk.f32.vlgmr.msrb.gmra.mxu2 %vm531_vm2, %v770_v51  ;;  %v599_v53 = vsel %vm596_vm1, %v598_v48, %v594_v52  ;;  %vm608_vm5 = vmor %vm606_vm4, %vm607_vm3 }
 0x24b   : > { %v603_v54 = vsub.f32 1.0, %v602_v49  ;;  %v600_v55 = vmul.f32 %v1354_v28, %v599_v53 }
 0x24d   : > { %v604_v57 = vmul.f32 %v1360_v47, %v603_v54  ;;  %1270 = vmatmul.msk.f32.vlgmr.msrb.gmra.mxu3 %vm567_vm13, %v600_v55 }
 0x24e   : > { %1284 = vmatpush.xpose.msk.msrb.mxu3 %vm531_vm2, %v898_v45 }
 0x24f   : > { %v605_v61 = vadd.f32 %v1360_v47, %v604_v57 }
 0x251   : > { %v609_v1 = vsel %vm608_vm5, %v1360_v47, %v605_v61  ;;  %v892_v4 = vpop.permute.xlu2 %891 }
 0x252   : > { %1285 = vmatpush.xpose.msk.msrb.mxu3 %vm531_vm2, %v896_v63  ;;  %1281 = vmatmul.msk.f32.gmra.mxu2 %vm531_vm2, %v772_v0  ;;  %v614_v2 = vsel %vm611_vm6, %v613_v62, %v609_v1 }
 0x253   : > { %v615_v3 = vmul.f32 %v1356_v31, %v614_v2 }
 0x255   : > { %1271 = vmatmul.msk.f32.gmra.mxu3 %vm567_vm13, %v615_v3 }
 0x25d   : > { %1274 = vmatmul.msk.f32.vlgmr.msra.gmra.mxu3 %vm531_vm2, %v646_v34 }
 0x265   : > { %1275 = vmatmul.msk.f32.gmra.mxu3 %vm531_vm2, %v648_v43 }
 0x26d   : > { %1286 = vmatmul.msk.f32.vlgmr.msrb.gmra.mxu3 %vm531_vm2, %v892_v4 }
 0x275   : > { %1287 = vmatmul.msk.f32.gmra.mxu3 %vm531_vm2, %v894_v5 }
 0x2cd   : > { %v802_v6 = vpop.f32.mrf.mxu2 }
 0x2ce   : > { %v803_v7 = vadd.f32 %v802_v6, %v1633_v13 }
 0x2d0   : > { %v1663_v8 = vpop.f32.mrf.mxu3  ;;  %v808_v9 = vsel %vm567_vm13, %v803_v7, -inf }
 0x2d1   : > { %809 = vmax.xlane.f32.xlu0 %v808_v9 }
 0x2d5   : > { %v805_v18 = vpop.f32.mrf.mxu2 }
 0x2d6   : > { %v806_v20 = vadd.f32 %v805_v18, %v1637_v19 }
 0x2d8   : > { %v1666_v10 = vpop.f32.mrf.mxu3  ;;  %v811_v24 = vsel %vm567_vm13, %v806_v20, -inf }
 0x2e0   : > { %v678_v11 = vpop.f32.mrf.mxu3 }
 0x2e1   : > { %v679_v12 = vadd.f32 %v678_v11, %v1633_v13 }
 0x2e3   : > { %v684_v14 = vsel %vm567_vm13, %v679_v12, -inf }
 0x2e4   : > { %685 = vmax.xlane.f32.xlu2 %v684_v14 }
 0x2e8   : > { %v681_v15 = vpop.f32.mrf.mxu3 }
 0x2e9   : > { %v682_v16 = vadd.f32 %v681_v15, %v1637_v19 }
 0x2eb   : > { %v687_v17 = vsel %vm567_vm13, %v682_v16, -inf }
 0x2ec   : > { %688 = vmax.xlane.f32.xlu1 %v687_v17 }
 0x2f0   : > { %v924_v21 = vpop.f32.mrf.mxu3 }
 0x2f1   : > { %v925_v22 = vadd.f32 %v924_v21, %v1633_v13 }
 0x2f3   : > { %v930_v23 = vsel %vm567_vm13, %v925_v22, -inf }
 0x2f4   : > { %931 = vmax.xlane.f32.xlu2 %v930_v23  ;;  %812 = vmax.xlane.f32.xlu1 %v811_v24 }
 0x2f8   : > { %v927_v25 = vpop.f32.mrf.mxu3 }
 0x2f9   : > { %v928_v26 = vadd.f32 %v927_v25, %v1637_v19 }
 0x2fb   : > { %v933_v27 = vsel %vm567_vm13, %v928_v26, -inf }
 0x2fc   : > { %934 = vmax.xlane.f32.xlu2 %v933_v27 }
 0x344   : > { %v810_v28 = vpop.xlane.xlu0 %809 }
 0x345   : > { %v814_v29 = vsub.f32 %v803_v7, %v810_v28 }
 0x347   : > { %v816_v30 = vmul.f32 1.442695, %v814_v29 }
 0x349   : > { %1361 = vpow2.f32 %v816_v30 }
 0x34f   : > { %v1678_v31 = vpop.eup %1361 }
 0x350   : > { %v820_v13 = vsel %vm567_vm13, %v1678_v31, 0.0 }
 0x351   : > { %821 = vadd.xlane.f32.xlu2 %v820_v13 }
 0x357   : > { %v686_v32 = vpop.xlane.xlu2 %685 }
 0x358   : > { %v690_v33 = vsub.f32 %v679_v12, %v686_v32 }
 0x35a   : > { %v692_v34 = vmul.f32 1.442695, %v690_v33 }
 0x35c   : > { %1363 = vpow2.f32 %v692_v34  ;;  %v1053_v34 = vld [vmem:[#allocation4 + $0x40] sm:$0xff] }
 0x35f   : > { %v689_v35 = vpop.xlane.xlu1 %688 }
 0x360   : > { %v691_v36 = vsub.f32 %v682_v16, %v689_v35 }
 0x362   : > { %v1682_v19 = vpop.eup %1363  ;;  %v694_v37 = vmul.f32 1.442695, %v691_v36 }
 0x363   : > { %v696_v38 = vsel %vm567_vm13, %v1682_v19, 0.0 }
 0x364   : > { %1365 = vpow2.f32 %v694_v37  ;;  %697 = vadd.xlane.f32.xlu0 %v696_v38 }
 0x367   : > { %v932_v39 = vpop.xlane.xlu2 %931  ;;  %v813_v40 = vpop.xlane.xlu1 %812 }
 0x368   : > { %v936_v41 = vsub.f32 %v925_v22, %v932_v39  ;;  %v815_v42 = vsub.f32 %v806_v20, %v813_v40 }
 0x36a   : > { %v1686_v43 = vpop.eup %1365  ;;  %v938_v45 = vmul.f32 1.442695, %v936_v41  ;;  %v818_v46 = vmul.f32 1.442695, %v815_v42 }
 0x36b   : > { %v699_v47 = vsel %vm567_vm13, %v1686_v43, 0.0 }
 0x36c   : > { %1367 = vpow2.f32 %v938_v45  ;;  %700 = vadd.xlane.f32.xlu1 %v699_v47 }
 0x36d   : > { %1369 = vpow2.f32 %v818_v46 }
 0x36f   : > { %v935_v48 = vpop.xlane.xlu2 %934 }
 0x370   : > { %v937_v49 = vsub.f32 %v928_v26, %v935_v48 }
 0x372   : > { %v1690_v51 = vpop.eup %1367  ;;  %v940_v52 = vmul.f32 1.442695, %v937_v49 }
 0x373   : > { %v1692_v53 = vpop.eup %1369  ;;  %v942_v54 = vsel %vm567_vm13, %v1690_v51, 0.0 }
 0x374   : > { %1371 = vpow2.f32 %v940_v52  ;;  %943 = vadd.xlane.f32.xlu0 %v942_v54  ;;  %v823_v55 = vsel %vm567_vm13, %v1692_v53, 0.0 }
 0x375   : > { %824 = vadd.xlane.f32.xlu2 %v823_v55 }
 0x37a   : > { %v1698_v56 = vpop.eup %1371 }
 0x37b   : > { %v945_v57 = vsel %vm567_vm13, %v1698_v56, 0.0 }
 0x37c   : > { %946 = vadd.xlane.f32.xlu0 %v945_v57 }
 0x385   : > { %1336 = vrot.lane.b32.xlu1 %v1335_v58, %s1474_s30 }
 0x38d   : > { %1341 = vrot.lane.b32.xlu2 %v1335_v58, %s1475_s10 }
 0x390   : > { %1346 = vrot.lane.b32.xlu0 %v1335_v58, %s1476_s11 }
 0x3c4   : > { %v822_v61 = vpop.xlane.xlu2 %821 }
 0x3c5   : > { %1373 = vrcp.f32 %v822_v61  ;;  %v837_v7 = vand.u32 2147483648, %v822_v61  ;;  %vm831_vm8 = vweird.f32 %v822_v61  ;;  %v835_v12 = vand.u32 2147483647, %v822_v61 }
 0x3c7   : > { %v838_v15 = vor.u32 1.1754944e-38, %v837_v7  ;;  %vm836_vm10 = vcmp.eq.f32.partialorder %v835_v12, 8.507059e+37 }
 0x3cb   : > { %v1374_v62 = vpop.eup %1373 }
 0x3cc   : > { %v827_v0 = vmul.f32 %v1374_v62, %v822_v61  ;;  %vm832_vm7 = vweird.f32 %v1374_v62 }
 0x3cd   : > { %vm833_vm9 = vmor %vm831_vm8, %vm832_vm7 }
 0x3ce   : > { %v828_v1 = vsub.f32 1.0, %v827_v0 }
 0x3d0   : > { %v829_v4 = vmul.f32 %v1374_v62, %v828_v1 }
 0x3d2   : > { %v830_v5 = vadd.f32 %v1374_v62, %v829_v4 }
 0x3d4   : > { %v834_v14 = vsel %vm833_vm9, %v1374_v62, %v830_v5 }
 0x3d5   : > { %v839_v20 = vsel %vm836_vm10, %v838_v15, %v834_v14 }
 0x3d6   : > { %v840_v30 = vmul.f32 %v1678_v31, %v839_v20 }
 0x3d7   : > { %v698_v63 = vpop.xlane.xlu0 %697 }
 0x3d8   : > { %1375 = vrcp.f32 %v698_v63  ;;  %v713_v28 = vand.u32 2147483648, %v698_v63  ;;  %vm707_vm12 = vweird.f32 %v698_v63  ;;  %v711_v13 = vand.u32 2147483647, %v698_v63 }
 0x3da   : > { %v714_v39 = vor.u32 1.1754944e-38, %v713_v28  ;;  %vm712_vm1 = vcmp.eq.f32.partialorder %v711_v13, 8.507059e+37  ;;  %v1059_v28 = vld [vmem:[#allocation4 + $0x70] sm:$0xff]  ;;  %v1056_v13 = vld [vmem:[#allocation4 + $0x58] sm:$0xff] }
 0x3de   : > { %v1376_v3 = vpop.eup %1375 }
 0x3df   : > { %v1707_v2 = vpop.xlane.xlu1 %700  ;;  %v703_v59 = vmul.f32 %v1376_v3, %v698_v63  ;;  %vm708_vm11 = vweird.f32 %v1376_v3 }
 0x3e0   : > { %1377 = vrcp.f32 %v1707_v2  ;;  %vm1722_vm14 = vmor %vm707_vm12, %vm708_vm11  ;;  %v728_v55 = vand.u32 2147483648, %v1707_v2  ;;  %vm722_vm6 = vweird.f32 %v1707_v2  ;;  %v726_v61 = vand.u32 2147483647, %v1707_v2 }
 0x3e1   : > { %v704_v9 = vsub.f32 1.0, %v703_v59 }
 0x3e2   : > { %vm727_vm8 = vcmp.eq.f32.partialorder %v726_v61, 8.507059e+37 }
 0x3e3   : > { %v705_v16 = vmul.f32 %v1376_v3, %v704_v9 }
 0x3e5   : > { %v706_v23 = vadd.f32 %v1376_v3, %v705_v16 }
 0x3e6   : > { %v1712_v11 = vpop.eup %1377 }
 0x3e7   : > { %v1710_v60 = vpop.xlane.xlu0 %943  ;;  %v718_v17 = vmul.f32 %v1712_v11, %v1707_v2  ;;  %v710_v31 = vsel %vm1722_vm14, %v1376_v3, %v706_v23  ;;  %vm723_vm5 = vweird.f32 %v1712_v11  ;;  %v729_v3 = vor.u32 1.1754944e-38, %v728_v55 }
 0x3e8   : > { %v825_v6 = vpop.xlane.xlu2 %824  ;;  %v715_v46 = vsel %vm712_vm1, %v714_v39, %v710_v31  ;;  %vm724_vm7 = vmor %vm722_vm6, %vm723_vm5  ;;  %vm953_vm10 = vweird.f32 %v1710_v60  ;;  %v957_v5 = vand.u32 2147483647, %v1710_v60  ;;  %v1048_v31 = vld [vmem:[#allocation4 + $0x18] sm:$0xff]  ;;  %v1047_v39 = vld [vmem:[#allocation4 + $0x10] sm:$0xff] }
 0x3e9   : > { %1379 = vrcp.f32 %v825_v6  ;;  %v719_v24 = vsub.f32 1.0, %v718_v17  ;;  %v852_v32 = vand.u32 2147483648, %v825_v6  ;;  %v850_v36 = vand.u32 2147483647, %v825_v6 }
 0x3ea   : > { %1381 = vrcp.f32 %v1710_v60  ;;  %vm846_vm0 = vweird.f32 %v825_v6  ;;  %v716_v58 = vmul.f32 %v1682_v19, %v715_v46  ;;  %vm958_vm12 = vcmp.eq.f32.partialorder %v957_v5, 8.507059e+37 }
 0x3eb   : > { %v720_v37 = vmul.f32 %v1712_v11, %v719_v24  ;;  %v853_v41 = vor.u32 1.1754944e-38, %v852_v32  ;;  %vm851_vm4 = vcmp.eq.f32.partialorder %v850_v36, 8.507059e+37  ;;  %v1055_v32 = vld [vmem:[#allocation4 + $0x50] sm:$0xff] }
 0x3ec   : > { %v1051_v36 = vld [vmem:[#allocation4 + $0x30] sm:$0xff] }
 0x3ed   : > { %v721_v52 = vadd.f32 %v1712_v11, %v720_v37  ;;  %v1050_v37 = vld [vmem:[#allocation4 + $0x28] sm:$0xff] }
 0x3ef   : > { %v1380_v18 = vpop.eup %1379  ;;  %v1717_v25 = vpop.xlane.xlu0 %946  ;;  %v725_v1 = vsel %vm724_vm7, %v1712_v11, %v721_v52 }
 0x3f0   : > { %v842_v21 = vmul.f32 %v1380_v18, %v825_v6  ;;  %v1342_v22 = vpop.permute.xlu2 %1341  ;;  %v1719_v27 = vpop.eup %1381  ;;  %1383 = vrcp.f32 %v1717_v25  ;;  %vm847_vm15 = vweird.f32 %v1380_v18  ;;  %v730_v4 = vsel %vm727_vm8, %v729_v3, %v725_v1 }
 0x3f1   : > { %v1343_v26 = vunpack.i.l.bf16 %v1342_v22  ;;  %v1344_v33 = vunpack.i.h.bf16 %v1342_v22  ;;  %v949_v38 = vmul.f32 %v1719_v27, %v1710_v60  ;;  %vm848_vm3 = vmor %vm846_vm0, %vm847_vm15  ;;  %vm954_vm9 = vweird.f32 %v1719_v27 }
 0x3f2   : > { %v843_v29 = vsub.f32 1.0, %v842_v21  ;;  %v731_v7 = vmul.f32 %v1686_v43, %v730_v4  ;;  %vm955_vm11 = vmor %vm953_vm10, %vm954_vm9  ;;  %v974_v17 = vand.u32 2147483648, %v1717_v25  ;;  %vm968_vm15 = vweird.f32 %v1717_v25 }
 0x3f3   : > { %882 = vmatpush.msra.mxu2 %v1343_v26  ;;  %v950_v48 = vsub.f32 1.0, %v949_v38  ;;  %v1049_v38 = vld [vmem:[#allocation4 + $0x20] sm:$0xff] }
 0x3f4   : > { %v844_v35 = vmul.f32 %v1380_v18, %v843_v29  ;;  %v975_v20 = vor.u32 1.1754944e-38, %v974_v17  ;;  %v1058_v29 = vld [vmem:[#allocation4 + $0x68] sm:$0xff] }
 0x3f5   : > { %883 = vmatpush.msra.mxu2 %v1344_v33  ;;  %v951_v63 = vmul.f32 %v1719_v27, %v950_v48  ;;  %v1054_v33 = vld [vmem:[#allocation4 + $0x48] sm:$0xff] }
 0x3f6   : > { %1282 = vmatmul.msk.f32.vlgmr.msra.gmra.mxu2 %vm567_vm13, %v840_v30  ;;  %v845_v40 = vadd.f32 %v1380_v18, %v844_v35  ;;  %v1384_v54 = vpop.eup %1383  ;;  %v1057_v30 = vld [vmem:[#allocation4 + $0x60] sm:$0xff]  ;;  %v1052_v35 = vld [vmem:[#allocation4 + $0x38] sm:$0xff] }
 0x3f7   : > { %v1337_v42 = vpop.permute.xlu1 %1336  ;;  %v964_v0 = vmul.f32 %v1384_v54, %v1717_v25  ;;  %v952_v19 = vadd.f32 %v1719_v27, %v951_v63  ;;  %vm969_vm14 = vweird.f32 %v1384_v54 }
 0x3f8   : > { %v1338_v45 = vunpack.i.l.bf16 %v1337_v42  ;;  %v849_v47 = vsel %vm848_vm3, %v1380_v18, %v845_v40  ;;  %v1339_v57 = vunpack.i.h.bf16 %v1337_v42  ;;  %vm970_vm0 = vmor %vm968_vm15, %vm969_vm14  ;;  %v1046_v40 = vld [vmem:[#allocation4 + $0x8] sm:$0xff]  ;;  %vm1042_vm3 = vcmask 785408  }
 0x3f9   : > { %v854_v49 = vsel %vm851_vm4, %v853_v41, %v849_v47  ;;  %v965_v2 = vsub.f32 1.0, %v964_v0  ;;  %v956_v9 = vsel %vm955_vm11, %v1719_v27, %v952_v19  ;;  %v1045_v41 = vld [vmem:[#allocation4] sm:$0xff]  ;;  %v1478_v19 = vmov 128.0  }
 0x3fa   : > { %760 = vmatpush.msrb.mxu0 %v1338_v45  ;;  %v855_v62 = vmul.f32 %v1692_v53, %v854_v49  ;;  %v959_v53 = vand.u32 2147483648, %v1710_v60  ;;  %v972_v60 = vand.u32 2147483647, %v1717_v25  ;;  %1385 = vrcp.f32 %v1478_v19 }
 0x3fb   : > { %v966_v11 = vmul.f32 %v1384_v54, %v965_v2 }
 0x3fc   : > { %761 = vmatpush.msrb.mxu0 %v1339_v57  ;;  %v960_v12 = vor.u32 1.1754944e-38, %v959_v53  ;;  %vm973_vm1 = vcmp.eq.f32.partialorder %v972_v60, 8.507059e+37 }
 0x3fd   : > { %1276 = vmatmul.msk.f32.vlgmr.msrb.gmra.mxu0 %vm567_vm13, %v716_v58  ;;  %v967_v16 = vadd.f32 %v1384_v54, %v966_v11 }
 0x3fe   : > { %1283 = vmatmul.msk.f32.gmra.mxu2 %vm567_vm13, %v855_v62  ;;  %v961_v15 = vsel %vm958_vm12, %v960_v12, %v956_v9  ;;  %v1350_v62 = vld [vmem:[%s1793_s5] ss:$0 sm:$0xff] }
 0x3ff   : > { %v962_v43 = vmul.f32 %v1690_v51, %v961_v15  ;;  %v971_v18 = vsel %vm970_vm0, %v1384_v54, %v967_v16 }
 0x400   : > { %v976_v21 = vsel %vm973_vm1, %v975_v20, %v971_v18 }
 0x401   : > { %v977_v22 = vmul.f32 %v1698_v56, %v976_v21  ;;  %v1060_v56 = vld [vmem:[#allocation4 + $0x78] sm:$0xff] }
 0x402   : > { %v1347_v59 = vpop.permute.xlu0 %1346  ;;  %1065 = vmatpush.msrb.mxu1 %v1060_v56  ;;  %v1351_v56 = vld [vmem:[%s1794_s6] ss:$0 sm:$0xff] }
 0x403   : > { %v1348_v6 = vunpack.i.l.bf16 %v1347_v59  ;;  %v1349_v14 = vunpack.i.h.bf16 %v1347_v59 }
 0x404   : > { %1066 = vmatpush.msrb.mxu1 %v1059_v28 }
 0x405   : > { %1277 = vmatmul.msk.f32.gmra.mxu0 %vm567_vm13, %v731_v7 }
 0x406   : > { %1004 = vmatpush.msra.mxu0 %v1348_v6  ;;  %1067 = vmatpush.msrb.mxu1 %v1058_v29 }
 0x408   : > { %1005 = vmatpush.msra.mxu0 %v1349_v14  ;;  %1068 = vmatpush.msrb.mxu1 %v1057_v30  ;;  %v1352_v30 = vld [vmem:[%s1795_s7] ss:$0 sm:$0xff] }
 0x40a   : > { %1069 = vmatpush.msrb.mxu1 %v1056_v13 }
 0x40c   : > { %1070 = vmatpush.msrb.mxu1 %v1055_v32 }
 0x40d   : > { %1288 = vmatmul.msk.f32.vlgmr.msra.gmra.mxu0 %vm567_vm13, %v962_v43 }
 0x40e   : > { %1071 = vmatpush.msrb.mxu1 %v1054_v33 }
 0x410   : > { %1072 = vmatpush.msrb.mxu1 %v1053_v34 }
 0x412   : > { %1073 = vmatpush.msrb.mxu1 %v1052_v35 }
 0x414   : > { %1074 = vmatpush.msrb.mxu1 %v1051_v36 }
 0x415   : > { %1289 = vmatmul.msk.f32.gmra.mxu0 %vm567_vm13, %v977_v22  ;;  %vm1039_vm13 = vcmask 523264  }
 0x416   : > { %1075 = vmatpush.msrb.mxu1 %v1050_v37 }
 0x418   : > { %1076 = vmatpush.msrb.mxu1 %v1049_v38 }
 0x41a   : > { %1077 = vmatpush.msrb.mxu1 %v1048_v31 }
 0x41c   : > { %1078 = vmatpush.msrb.mxu1 %v1047_v39 }
 0x41e   : > { %1079 = vmatpush.msrb.mxu1 %v1046_v40 }
 0x420   : > { %1080 = vmatpush.msrb.mxu1 %v1045_v41 }
 0x479   : > { %v885_v24 = vpop.f32.mrf.mxu2 }
 0x47a   : > { %v763_v23 = vpop.f32.mrf.mxu0 }
 0x47b   : > { %1015 = vrot.lane.b32.xlu1 %v763_v23, %s1476_s11 }
 0x481   : > { %v888_v51 = vpop.f32.mrf.mxu2 }
 0x482   : > { %v766_v26 = vpop.f32.mrf.mxu0 }
 0x483   : > { %1023 = vrot.lane.b32.xlu1 %v885_v24, %s1475_s10  ;;  %1017 = vrot.lane.b32.xlu2 %v766_v26, %s1476_s11 }
 0x48a   : > { %v1007_v25 = vpop.f32.mrf.mxu0 }
 0x48b   : > { %1025 = vrot.lane.b32.xlu1 %v888_v51, %s1475_s10  ;;  %1031 = vrot.lane.b32.xlu0 %v1007_v25, %s1474_s30 }
 0x492   : > { %v1010_v27 = vpop.f32.mrf.mxu0 }
 0x493   : > { %1033 = vrot.lane.b32.xlu0 %v1010_v27, %s1474_s30 }
 0x4dd   : > { %v1018_v52 = vpop.permute.xlu2 %1017 }
 0x4de   : > { %v1038_v55 = vsel %vm531_vm2, %v1666_v10, %v1018_v52  ;;  %v1386_v10 = vpop.eup %1385 }
 0x4df   : > { %v1097_v2 = vmul.f32 128.0, %v1386_v10 }
 0x4e1   : > { %v1098_v53 = vsub.f32 1.0, %v1097_v2 }
 0x4e3   : > { %v1099_v59 = vmul.f32 %v1386_v10, %v1098_v53 }
 0x4e5   : > { %v1100_v5 = vadd.f32 %v1386_v10, %v1099_v59 }
 0x4ed   : > { %v1016_v42 = vpop.permute.xlu1 %1015 }
 0x4ee   : > { %v1037_v46 = vsel %vm531_vm2, %v1663_v8, %v1016_v42  ;;  %vm1101_vm2 = vweird.f32 %v1386_v10 }
 0x4ef   : > { %v1102_v6 = vsel %vm1101_vm2, %v1386_v10, %v1100_v5 }
 0x4f5   : > { %v1024_v45 = vpop.permute.xlu1 %1023 }
 0x4f6   : > { %v1040_v47 = vsel %vm1039_vm13, %v1037_v46, %v1024_v45 }
 0x4fd   : > { %v1032_v48 = vpop.permute.xlu0 %1031  ;;  %v1026_v54 = vpop.permute.xlu1 %1025 }
 0x4fe   : > { %v1043_v49 = vsel %vm1042_vm3, %v1040_v47, %v1032_v48  ;;  %v1041_v57 = vsel %vm1039_vm13, %v1038_v55, %v1026_v54 }
 0x4ff   : > { %1081 = vmatmul.f32.vlgmr.msrb.gmra.mxu1 %v1043_v49 }
 0x505   : > { %v1034_v58 = vpop.permute.xlu0 %1033 }
 0x506   : > { %v1044_v61 = vsel %vm1042_vm3, %v1041_v57, %v1034_v58 }
 0x507   : > { %1084 = vmatmul.f32.gmra.mxu1 %v1044_v61 }
 0x57c   : > { %v1082_v63 = vpop.f32.mrf.mxu1 }
 0x57d   : > { %v1083_v0 = vadd.f32 %v1350_v62, %v1082_v63 }
 0x57f   : > { %v1088_v8 = vadd.f32 %v1083_v0, %v1579_v44 }
 0x581   : > { %1092 = vadd.xlane.f32.xlu2 %v1088_v8 }
 0x584   : > { %v1085_v1 = vpop.f32.mrf.mxu1 }
 0x585   : > { %v1086_v3 = vadd.f32 %v1350_v62, %v1085_v1 }
 0x587   : > { %v1089_v4 = vadd.f32 %v1086_v3, %v1583_v50 }
 0x589   : > { %1094 = vadd.xlane.f32.xlu1 %v1089_v4 }
 0x5f4   : > { %v1093_v7 = vpop.xlane.xlu2 %1092 }
 0x5f5   : > { %v1103_v9 = vmul.f32 %v1102_v6, %v1093_v7 }
 0x5f7   : > { %v1105_v11 = vsub.f32 %v1088_v8, %v1103_v9 }
 0x5f9   : > { %v1107_v12 = vmul.f32 %v1105_v11, %v1105_v11 }
 0x5fb   : > { %1109 = vadd.xlane.f32.xlu0 %v1107_v12 }
 0x5fc   : > { %v1095_v44 = vpop.xlane.xlu1 %1094 }
 0x5fd   : > { %v1104_v14 = vmul.f32 %v1102_v6, %v1095_v44 }
 0x5ff   : > { %v1106_v15 = vsub.f32 %v1089_v4, %v1104_v14 }
 0x601   : > { %v1108_v16 = vmul.f32 %v1106_v15, %v1106_v15 }
 0x603   : > { %1111 = vadd.xlane.f32.xlu2 %v1108_v16 }
 0x66e   : > { %v1110_v50 = vpop.xlane.xlu0 %1109 }
 0x66f   : > { %v1113_v17 = vmul.f32 %v1110_v50, %v1102_v6 }
 0x671   : > { %v1115_v43 = vadd.f32 1e-08, %v1113_v17 }
 0x673   : > { %1387 = vrsqrt.f32 %v1115_v43  ;;  %vm1123_vm5 = vweird.f32 %v1115_v43 }
 0x676   : > { %v1112_v60 = vpop.xlane.xlu2 %1111 }
 0x677   : > { %v1114_v18 = vmul.f32 %v1112_v60, %v1102_v6 }
 0x679   : > { %v1388_v20 = vpop.eup %1387  ;;  %v1116_v21 = vadd.f32 1e-08, %v1114_v18 }
 0x67a   : > { %v1118_v22 = vmul.f32 %v1388_v20, %v1115_v43  ;;  %vm1124_vm4 = vweird.f32 %v1388_v20 }
 0x67b   : > { %1389 = vrsqrt.f32 %v1116_v21  ;;  %vm1125_vm6 = vmor %vm1123_vm5, %vm1124_vm4  ;;  %vm1133_vm8 = vweird.f32 %v1116_v21 }
 0x67c   : > { %v1119_v23 = vmul.f32 %v1388_v20, %v1118_v22 }
 0x67e   : > { %v1120_v24 = vmul.f32 0.5, %v1119_v23 }
 0x680   : > { %v1121_v26 = vsub.f32 1.5, %v1120_v24 }
 0x681   : > { %v1390_v51 = vpop.eup %1389 }
 0x682   : > { %v1122_v25 = vmul.f32 %v1388_v20, %v1121_v26  ;;  %v1128_v27 = vmul.f32 %v1390_v51, %v1116_v21  ;;  %vm1134_vm7 = vweird.f32 %v1390_v51 }
 0x683   : > { %vm1135_vm9 = vmor %vm1133_vm8, %vm1134_vm7 }
 0x684   : > { %v1126_v28 = vsel %vm1125_vm6, %v1388_v20, %v1122_v25  ;;  %v1129_v29 = vmul.f32 %v1390_v51, %v1128_v27 }
 0x685   : > { %v1137_v13 = vmul.f32 %v1126_v28, %v1105_v11 }
 0x686   : > { %v1130_v32 = vmul.f32 0.5, %v1129_v29 }
 0x687   : > { %v1142_v33 = vmul.f32 %v1351_v56, %v1137_v13 }
 0x688   : > { %v1131_v34 = vsub.f32 1.5, %v1130_v32 }
 0x689   : > { %v1147_v35 = vadd.f32 %v1352_v30, %v1142_v33 }
 0x68a   : > { %v1132_v36 = vmul.f32 %v1390_v51, %v1131_v34 }
 0x68b   : > { %1149 = vst [vmem:[%s373_s23] sm:$0xff] %v1147_v35 }
 0x68c   : > { %v1136_v37 = vsel %vm1135_vm9, %v1390_v51, %v1132_v36 }
 0x68d   : > { %v1138_v38 = vmul.f32 %v1136_v37, %v1106_v15 }
 0x68f   : > { %v1143_v31 = vmul.f32 %v1351_v56, %v1138_v38 }
 0x691   : > { %v1148_v39 = vadd.f32 %v1352_v30, %v1143_v31 }
 0x693   : > { %1150 = vst [vmem:[%s373_s23 + $0x8] sm:$0xff] %v1148_v39 }
 0x694 PF: > { %s20_s27 = sadd.s32 1, %s1465_s27  }
 0x695   : > { %p17_p7 = scmp.ge.s32.totalorder %s20_s27, 4  }
 0x697   :  { %19 = sbr.rel (!%p17_p7) target bundleno = 2 (0x2), region = 97 }
 0x69c   :  { %1172 = vsyncpa [#allocation3], 1 }
 0x69d   :  { %1174 = vsyncpa [#allocation3 + $0x1], 1 }
 0x69e   :  { %1175 = vsyncpa [#allocation5], 1 }

</bundles_post_ra>
